<compile_context>
chip_gen: v7x
topology: tpu7x:2x2x1
jax: 0.10.0
libtpu: 0.0.40
codegen_flags: <defaults>
</compile_context>

<pallas_src>
import jax
import jax.numpy as jnp
from jax.experimental import pallas as pl
from jax.experimental.pallas import tpu as pltpu

BN_EPS = 1e-5
K1 = 784              # 28*28, natural fc1 input width (full last dim of x)
NCLS_PAD = 128        # 10 logits padded up to one full lane group
NEG_BIG = -1e30       # padded-class bias -> exp underflows to 0 in log_softmax
TILE_B_MAX = 2048     # per-step footprint ~20-30 MiB: fits v7x 64 MiB/TC with
                      # headroom, and comfortably inside v5e/v6e 128 MiB
VMEM_LIMIT = 48 << 20 # > v5e's 16 MiB scoped default, < v7x's 64 MiB physical


def _mlp_kernel(x_ref, w1_ref, b1_ref, w2_ref, b2_ref, w3_ref, b3_ref, o_ref):
    # Cast activations to bf16 in-kernel (no host pre-pass).
    x = x_ref[...].astype(jnp.bfloat16)                              # (tb, 784)

    # fc1 (+folded BN1) + ReLU   (dropout = identity in eval mode)
    h = jnp.dot(x, w1_ref[...], preferred_element_type=jnp.float32) + b1_ref[...]
    h = jnp.maximum(h, 0.0).astype(jnp.bfloat16)

    # fc2 (+folded BN2) + ReLU
    h = jnp.dot(h, w2_ref[...], preferred_element_type=jnp.float32) + b2_ref[...]
    h = jnp.maximum(h, 0.0).astype(jnp.bfloat16)

    # fc3 (padded to 128 classes) + log_softmax.  Padded classes have zero
    # weights and bias = -1e30, so exp(...) == 0 and they drop out of the lse.
    logits = jnp.dot(h, w3_ref[...], preferred_element_type=jnp.float32) + b3_ref[...]
    m = jnp.max(logits, axis=-1, keepdims=True)
    shifted = logits - m
    lse = jnp.log(jnp.sum(jnp.exp(shifted), axis=-1, keepdims=True))
    o_ref[...] = shifted - lse


def _round_up(n, m):
    return (n + m - 1) // m * m


def _choose_tile_b(B):
    """Batch tile: multiple of 256, >=256, <=TILE_B_MAX, >=2 grid steps when possible."""
    if B <= 256:
        return 256                     # single full-width tile; extra rows masked
    # split roughly in half (>=2 grid steps -> v7x dual-TC sharding), 256-aligned
    return min(TILE_B_MAX, _round_up(pl.cdiv(B, 2), 256))


def fold_params(p):
    """Fold eval-mode BN into fc weights/biases, pad classes, cast weights to bf16."""
    scale1 = p["g1"] * jax.lax.rsqrt(p["v1"] + BN_EPS)               # (1, 512)
    w1 = p["w1"] * scale1                                            # (784, 512)
    b1 = (p["b1"] - p["m1"]) * scale1 + p["be1"]                     # (1, 512)

    scale2 = p["g2"] * jax.lax.rsqrt(p["v2"] + BN_EPS)
    w2 = p["w2"] * scale2                                            # (512, 256)
    b2 = (p["b2"] - p["m2"]) * scale2 + p["be2"]                     # (1, 256)

    w3 = jnp.pad(p["w3"], ((0, 0), (0, NCLS_PAD - p["w3"].shape[1])))  # (256, 128)
    b3 = jnp.pad(p["b3"], ((0, 0), (0, NCLS_PAD - p["b3"].shape[1])),
                 constant_values=NEG_BIG)                            # (1, 128)

    return {
        "w1": w1.astype(jnp.bfloat16), "b1": b1.astype(jnp.float32),
        "w2": w2.astype(jnp.bfloat16), "b2": b2.astype(jnp.float32),
        "w3": w3.astype(jnp.bfloat16), "b3": b3.astype(jnp.float32),
    }


def net_forward(x_nchw, folded):
    """x_nchw: (B, 1, 28, 28) float32 -> (B, 10) log-probabilities."""
    B = x_nchw.shape[0]
    # Free reshape/view; no padding, no dtype pre-pass -> no extra HBM traffic.
    x = x_nchw.reshape(B, K1).astype(jnp.float32)

    tile_b = _choose_tile_b(B)
    grid = (pl.cdiv(B, tile_b),)       # final block (or the only block) is masked

    def const_spec(shape):
        # whole-array block, same block every grid step -> stays VMEM-resident
        return pl.BlockSpec(shape, lambda i: tuple(0 for _ in shape))

    out_pad = pl.pallas_call(
        _mlp_kernel,
        out_shape=jax.ShapeDtypeStruct((B, NCLS_PAD), jnp.float32),
        grid=grid,
        in_specs=[
            pl.BlockSpec((tile_b, K1), lambda i: (i, 0)),   # x (f32, full last dim)
            const_spec(folded["w1"].shape),
            const_spec(folded["b1"].shape),
            const_spec(folded["w2"].shape),
            const_spec(folded["b2"].shape),
            const_spec(folded["w3"].shape),
            const_spec(folded["b3"].shape),
        ],
        out_specs=pl.BlockSpec((tile_b, NCLS_PAD), lambda i: (i, 0)),
        compiler_params=pltpu.CompilerParams(
            dimension_semantics=("parallel",),
            vmem_limit_bytes=VMEM_LIMIT),
    )(x, folded["w1"], folded["b1"], folded["w2"], folded["b2"],
      folded["w3"], folded["b3"])

    return out_pad[:B, :10]


def init_params(key):
    """Torch-default Linear init + fresh BatchNorm running stats (f32)."""
    ks = jax.random.split(key, 6)

    def lin(kw, kb, fan_in, fan_out):
        bound = 1.0 / jnp.sqrt(fan_in)
        w = jax.random.uniform(kw, (fan_in, fan_out), jnp.float32, -bound, bound)
        b = jax.random.uniform(kb, (1, fan_out), jnp.float32, -bound, bound)
        return w, b

    w1, b1 = lin(ks[0], ks[1], 28 * 28, 512)
    w2, b2 = lin(ks[2], ks[3], 512, 256)
    w3, b3 = lin(ks[4], ks[5], 256, 10)

    return {
        "w1": w1, "b1": b1,
        "g1": jnp.ones((1, 512), jnp.float32), "be1": jnp.zeros((1, 512), jnp.float32),
        "m1": jnp.zeros((1, 512), jnp.float32), "v1": jnp.ones((1, 512), jnp.float32),
        "w2": w2, "b2": b2,
        "g2": jnp.ones((1, 256), jnp.float32), "be2": jnp.zeros((1, 256), jnp.float32),
        "m2": jnp.zeros((1, 256), jnp.float32), "v2": jnp.ones((1, 256), jnp.float32),
        "w3": w3, "b3": b3,
    }


def _reference(x_nchw, p):
    # pure-JAX f32 reference of the original module (eval mode)
    x = x_nchw.reshape(x_nchw.shape[0], -1)
    h = x @ p["w1"] + p["b1"]
    h = (h - p["m1"]) * (p["g1"] / jnp.sqrt(p["v1"] + BN_EPS)) + p["be1"]
    h = jnp.maximum(h, 0.0)
    h = h @ p["w2"] + p["b2"]
    h = (h - p["m2"]) * (p["g2"] / jnp.sqrt(p["v2"] + BN_EPS)) + p["be2"]
    h = jnp.maximum(h, 0.0)
    logits = h @ p["w3"] + p["b3"]
    return jax.nn.log_softmax(logits, axis=-1)


if __name__ == "__main__":
    key = jax.random.PRNGKey(0)
    k_x, k_p = jax.random.split(key)

    B = 8
    x = jax.random.normal(k_x, (B, 1, 28, 28), jnp.float32)  # NCHW, MNIST-like
    params = init_params(k_p)
    folded = fold_params(params)

    out = net_forward(x, folded)
    out = jax.block_until_ready(out)

    ref = _reference(x, params)
    assert out.shape == (B, 10)
    # bf16 weights/activations vs f32 reference -> loose-but-meaningful tolerance
    assert jnp.allclose(out, ref, atol=5e-2, rtol=5e-2), "mismatch vs JAX reference"

    print("KERNEL_OK")
</pallas_src>

<mosaic_0001>
module attributes {stable_mosaic.version = 11 : i64} {
  func.func @_mlp_kernel(%arg0: i32, %arg1: memref<256x784xf32, #tpu.memory_space<vmem>>, %arg2: memref<784x512xbf16, #tpu.memory_space<vmem>>, %arg3: memref<1x512xf32, #tpu.memory_space<vmem>>, %arg4: memref<512x256xbf16, #tpu.memory_space<vmem>>, %arg5: memref<1x256xf32, #tpu.memory_space<vmem>>, %arg6: memref<256x128xbf16, #tpu.memory_space<vmem>>, %arg7: memref<1x128xf32, #tpu.memory_space<vmem>>, %arg8: memref<256x128xf32, #tpu.memory_space<vmem>>) attributes {dimension_semantics = [#tpu.dimension_semantics<parallel>], iteration_bounds = array<i64: 1>, scalar_prefetch = 0 : i64, scratch_operands = 0 : i64, tpu.core_type = #tpu.core_type<tc>, window_params = [{transform_indices = @transform_0, window_bounds = array<i64: 256, 784>}, {pipeline_mode = #tpu.pipeline_mode<synchronous>, transform_indices = @transform_1, window_bounds = array<i64: 784, 512>}, {pipeline_mode = #tpu.pipeline_mode<synchronous>, transform_indices = @transform_2, window_bounds = array<i64: 1, 512>}, {pipeline_mode = #tpu.pipeline_mode<synchronous>, transform_indices = @transform_3, window_bounds = array<i64: 512, 256>}, {pipeline_mode = #tpu.pipeline_mode<synchronous>, transform_indices = @transform_4, window_bounds = array<i64: 1, 256>}, {pipeline_mode = #tpu.pipeline_mode<synchronous>, transform_indices = @transform_5, window_bounds = array<i64: 256, 128>}, {pipeline_mode = #tpu.pipeline_mode<synchronous>, transform_indices = @transform_6, window_bounds = array<i64: 1, 128>}, {transform_indices = @transform_7, window_bounds = array<i64: 256, 128>}]} {
    %c0 = arith.constant 0 : index
    %c0_0 = arith.constant 0 : index
    %0 = vector.load %arg1[%c0, %c0_0] : memref<256x784xf32, #tpu.memory_space<vmem>>, vector<256x784xf32>
    %1 = arith.truncf %0 : vector<256x784xf32> to vector<256x784xbf16>
    %c0_1 = arith.constant 0 : index
    %c0_2 = arith.constant 0 : index
    %2 = vector.load %arg2[%c0_1, %c0_2] : memref<784x512xbf16, #tpu.memory_space<vmem>>, vector<784x512xbf16>
    %cst = arith.constant dense<0.000000e+00> : vector<256x512xf32>
    %3 = tpu.matmul %1, %2, %cst {dimension_numbers = #tpu.dot_dimension_numbers<[1], [0], [0], [1], [0, 0, 1, 1], [], []>} : vector<256x784xbf16>, vector<784x512xbf16>, vector<256x512xf32> -> vector<256x512xf32>
    %c0_3 = arith.constant 0 : index
    %c0_4 = arith.constant 0 : index
    %4 = vector.load %arg3[%c0_3, %c0_4] : memref<1x512xf32, #tpu.memory_space<vmem>>, vector<1x512xf32>
    %5 = vector.broadcast %4 : vector<1x512xf32> to vector<256x512xf32>
    %6 = arith.addf %3, %5 : vector<256x512xf32>
    %cst_5 = arith.constant 0.000000e+00 : f32
    %7 = vector.broadcast %cst_5 : f32 to vector<256x512xf32>
    %8 = arith.maximumf %6, %7 : vector<256x512xf32>
    %9 = arith.truncf %8 : vector<256x512xf32> to vector<256x512xbf16>
    %c0_6 = arith.constant 0 : index
    %c0_7 = arith.constant 0 : index
    %10 = vector.load %arg4[%c0_6, %c0_7] : memref<512x256xbf16, #tpu.memory_space<vmem>>, vector<512x256xbf16>
    %cst_8 = arith.constant dense<0.000000e+00> : vector<256x256xf32>
    %11 = tpu.matmul %9, %10, %cst_8 {dimension_numbers = #tpu.dot_dimension_numbers<[1], [0], [0], [1], [0, 0, 1, 1], [], []>} : vector<256x512xbf16>, vector<512x256xbf16>, vector<256x256xf32> -> vector<256x256xf32>
    %c0_9 = arith.constant 0 : index
    %c0_10 = arith.constant 0 : index
    %12 = vector.load %arg5[%c0_9, %c0_10] : memref<1x256xf32, #tpu.memory_space<vmem>>, vector<1x256xf32>
    %13 = vector.broadcast %12 : vector<1x256xf32> to vector<256x256xf32>
    %14 = arith.addf %11, %13 : vector<256x256xf32>
    %cst_11 = arith.constant 0.000000e+00 : f32
    %15 = vector.broadcast %cst_11 : f32 to vector<256x256xf32>
    %16 = arith.maximumf %14, %15 : vector<256x256xf32>
    %17 = arith.truncf %16 : vector<256x256xf32> to vector<256x256xbf16>
    %c0_12 = arith.constant 0 : index
    %c0_13 = arith.constant 0 : index
    %18 = vector.load %arg6[%c0_12, %c0_13] : memref<256x128xbf16, #tpu.memory_space<vmem>>, vector<256x128xbf16>
    %cst_14 = arith.constant dense<0.000000e+00> : vector<256x128xf32>
    %19 = tpu.matmul %17, %18, %cst_14 {dimension_numbers = #tpu.dot_dimension_numbers<[1], [0], [0], [1], [0, 0, 1, 1], [], []>} : vector<256x256xbf16>, vector<256x128xbf16>, vector<256x128xf32> -> vector<256x128xf32>
    %c0_15 = arith.constant 0 : index
    %c0_16 = arith.constant 0 : index
    %20 = vector.load %arg7[%c0_15, %c0_16] : memref<1x128xf32, #tpu.memory_space<vmem>>, vector<1x128xf32>
    %21 = vector.broadcast %20 : vector<1x128xf32> to vector<256x128xf32>
    %22 = arith.addf %19, %21 : vector<256x128xf32>
    %cst_17 = arith.constant dense<0xFF800000> : vector<256xf32>
    %23 = vector.multi_reduction <maximumf>, %22, %cst_17 [1] : vector<256x128xf32> to vector<256xf32>
    %24 = vector.shape_cast %23 : vector<256xf32> to vector<256x1xf32>
    %25 = vector.broadcast %24 : vector<256x1xf32> to vector<256x128xf32>
    %26 = arith.subf %22, %25 : vector<256x128xf32>
    %27 = math.exp %26 : vector<256x128xf32>
    %cst_18 = arith.constant dense<0.000000e+00> : vector<256xf32>
    %28 = vector.multi_reduction <add>, %27, %cst_18 [1] : vector<256x128xf32> to vector<256xf32>
    %29 = vector.shape_cast %28 : vector<256xf32> to vector<256x1xf32>
    %30 = math.log %29 : vector<256x1xf32>
    %31 = vector.broadcast %30 : vector<256x1xf32> to vector<256x128xf32>
    %32 = arith.subf %26, %31 : vector<256x128xf32>
    %c0_19 = arith.constant 0 : index
    %c0_20 = arith.constant 0 : index
    %33 = vector.load %arg8[%c0_19, %c0_20] : memref<256x128xf32, #tpu.memory_space<vmem>>, vector<256x128xf32>
    tpu.vector_store %arg8[%c0_19, %c0_20], %32 {strides = array<i32>} : memref<256x128xf32, #tpu.memory_space<vmem>>, vector<256x128xf32>,
    return
  }
  func.func @transform_0(%arg0: i32) -> (i32, i32) {
    %c0_i32 = arith.constant 0 : i32
    %c0_i32_0 = arith.constant 0 : i32
    return %arg0, %c0_i32 : i32, i32
  }
  func.func @transform_1(%arg0: i32) -> (i32, i32) {
    %c0_i32 = arith.constant 0 : i32
    %c0_i32_0 = arith.constant 0 : i32
    %c0_i32_1 = arith.constant 0 : i32
    return %c0_i32, %c0_i32_0 : i32, i32
  }
  func.func @transform_2(%arg0: i32) -> (i32, i32) {
    %c0_i32 = arith.constant 0 : i32
    %c0_i32_0 = arith.constant 0 : i32
    %c0_i32_1 = arith.constant 0 : i32
    return %c0_i32, %c0_i32_0 : i32, i32
  }
  func.func @transform_3(%arg0: i32) -> (i32, i32) {
    %c0_i32 = arith.constant 0 : i32
    %c0_i32_0 = arith.constant 0 : i32
    %c0_i32_1 = arith.constant 0 : i32
    return %c0_i32, %c0_i32_0 : i32, i32
  }
  func.func @transform_4(%arg0: i32) -> (i32, i32) {
    %c0_i32 = arith.constant 0 : i32
    %c0_i32_0 = arith.constant 0 : i32
    %c0_i32_1 = arith.constant 0 : i32
    return %c0_i32, %c0_i32_0 : i32, i32
  }
  func.func @transform_5(%arg0: i32) -> (i32, i32) {
    %c0_i32 = arith.constant 0 : i32
    %c0_i32_0 = arith.constant 0 : i32
    %c0_i32_1 = arith.constant 0 : i32
    return %c0_i32, %c0_i32_0 : i32, i32
  }
  func.func @transform_6(%arg0: i32) -> (i32, i32) {
    %c0_i32 = arith.constant 0 : i32
    %c0_i32_0 = arith.constant 0 : i32
    %c0_i32_1 = arith.constant 0 : i32
    return %c0_i32, %c0_i32_0 : i32, i32
  }
  func.func @transform_7(%arg0: i32) -> (i32, i32) {
    %c0_i32 = arith.constant 0 : i32
    %c0_i32_0 = arith.constant 0 : i32
    return %arg0, %c0_i32 : i32, i32
  }
}

</mosaic_0001>

<bundles_post_ra>
// kernel: tpu_custom_call.1
= control target key start
LH: loop header
LB: loop body
LE: loop exit
PB: predicated region body
PF: predicated region fallthrough
CT: control target
= control target key end

     0   :  { %12 = vsyncpa [#allocation3], 0  ;;  %s7957_s0 = inlined_call_operand.hbm [shape: f32[8,784], index: 0, kind: input, shape index: {}]   ;;  %s7958_s1 = inlined_call_operand.hbm [shape: bf16[784,512], index: 1, kind: input, shape index: {}]   ;;  %s7959_s2 = inlined_call_operand.vmem [shape: f32[1,512], index: 2, kind: input, shape index: {}]   ;;  %s7960_s3 = inlined_call_operand.hbm [shape: bf16[512,256], index: 3, kind: input, shape index: {}]   ;;  %s7961_s4 = inlined_call_operand.vmem [shape: f32[1,256], index: 4, kind: input, shape index: {}]   ;;  %s7962_s5 = inlined_call_operand.hbm [shape: bf16[256,128], index: 5, kind: input, shape index: {}]   ;;  %s7963_s6 = inlined_call_operand.vmem [shape: f32[1,128], index: 6, kind: input, shape index: {}]   ;;  %s7964_s7 = inlined_call_operand.hbm [shape: f32[8,128], index: 7, kind: output, shape index: {}]  }
   0x1   :  { %13 = vsyncpa [#allocation6], 0 }
   0x2   :  { %14 = vsyncpa [#allocation9], 0 }
   0x3   :  { %15 = vsyncpa [#allocation4], 0 }
   0x4   :  { %20 = vsyncadd [#allocation3], 27776  ;;  %s6706_s24 = smov [#allocation5]   ;;  %s6588_s28 = scalar_lea.hbm %s7958_s1, 25088 }
   0x5   :  { %s33_s25 = sshll.u32 %s6706_s24, 4  ;;  %p6589_p0 = scmp.ne.s32.totalorder %s7958_s1, %s6588_s28  ;;  %s34_s25 = int_to_ptr.vmem [resolvable:$true] %s33_s25 }
   0x6   :  { %p6592_p1 = scmp.lt.u32.totalorder %s6588_s28, %s7958_s1 }
   0x8   :  { %p6594_p2 = pnand %p6592_p1, %p6589_p0 }
   0xa   :  { %6597 = shalt.err (!%p6594_p2)
}
   0xb   :  { %s6598_s10 = scalar_lea.vmem %s34_s25, 25088  ;;  %p6603_p4 = scmp.lt.s32.totalorder %s34_s25, %s34_s25 }
   0xc   :  { %p6599_p3 = scmp.ne.s32.totalorder %s34_s25, %s6598_s10  ;;  %p6604_p5 = scmp.lt.s32.totalorder %s6598_s10, %s6598_s10 }
   0xe   :  { %p6605_p6 = por %p6604_p5, %p6603_p4 }
  0x10   :  { %p6606_p7 = pnand %p6605_p6, %p6599_p3 }
  0x12   :  { %6609 = shalt.err (!%p6606_p7)
}
  0x13   :  { %s6707_s11 = smov 256   ;;  %s6708_s12 = smov 16  }
  0x14   :  { %39 = dma.hbm_to_vmem [thread:$0]  %s7958_s1, 25088, %s34_s25, [#allocation6], %s6707_s11, %s6707_s11, %s6708_s12  }
  0x15   :  { %s6709_s15 = smov [#allocation2]   ;;  %s6610_s19 = scalar_lea.hbm %s7957_s0, 896 }
  0x16   :  { %s21_s16 = sshll.u32 %s6709_s15, 4  ;;  %p6611_p8 = scmp.ne.s32.totalorder %s7957_s0, %s6610_s19  ;;  %s22_s16 = int_to_ptr.vmem [resolvable:$true] %s21_s16 }
  0x17   :  { %p6614_p9 = scmp.lt.u32.totalorder %s6610_s19, %s7957_s0 }
  0x19   :  { %p6616_p10 = pnand %p6614_p9, %p6611_p8 }
  0x1b   :  { %6619 = shalt.err (!%p6616_p10)
}
  0x1c   :  { %s6620_s24 = scalar_lea.vmem %s22_s16, 896  ;;  %s6624_s1 = scalar_lea.vmem %s22_s16, 28672 }
  0x1d   :  { %p6621_p11 = scmp.ne.s32.totalorder %s22_s16, %s6620_s24  ;;  %p6625_p12 = scmp.lt.s32.totalorder %s22_s16, %s22_s16 }
  0x1e   :  { %p6626_p13 = scmp.lt.s32.totalorder %s6624_s1, %s6620_s24 }
  0x20   :  { %p6627_p0 = por %p6626_p13, %p6625_p12 }
  0x22   :  { %p6628_p1 = pnand %p6627_p0, %p6621_p11 }
  0x24   :  { %6631 = shalt.err (!%p6628_p1)
}
  0x25   :  { %s6710_s25 = smov 896   ;;  %s6711_s26 = smov 56  }
  0x26   :  { %27 = dma.hbm_to_vmem [thread:$0]  %s7957_s0, 896, %s22_s16, [#allocation3], %s6710_s25, %s6710_s25, %s6711_s26  }
  0x27   :  { %s6712_s29 = smov [#allocation7]   ;;  %s6632_s10 = scalar_lea.hbm %s7960_s3, 8192 }
  0x28   :  { %s47_s30 = sshll.u32 %s6712_s29, 4  ;;  %p6633_p2 = scmp.ne.s32.totalorder %s7960_s3, %s6632_s10  ;;  %s48_s30 = int_to_ptr.vmem [resolvable:$true] %s47_s30 }
  0x29   :  { %p6636_p3 = scmp.lt.u32.totalorder %s6632_s10, %s7960_s3 }
  0x2b   :  { %p6638_p4 = pnand %p6636_p3, %p6633_p2 }
  0x2d   :  { %6641 = shalt.err (!%p6638_p4)
}
  0x2e   :  { %s6642_s15 = scalar_lea.vmem %s48_s30, 8192  ;;  %p6647_p6 = scmp.lt.s32.totalorder %s48_s30, %s48_s30 }
  0x2f   :  { %p6643_p5 = scmp.ne.s32.totalorder %s48_s30, %s6642_s15  ;;  %p6648_p7 = scmp.lt.s32.totalorder %s6642_s15, %s6642_s15 }
  0x31   :  { %p6649_p8 = por %p6648_p7, %p6647_p6 }
  0x33   :  { %p6650_p9 = pnand %p6649_p8, %p6643_p5 }
  0x35   :  { %6653 = shalt.err (!%p6650_p9)
}
  0x36   :  { %s6713_s0 = smov 128   ;;  %s6714_s16 = smov 8  }
  0x37   :  { %53 = dma.hbm_to_vmem [thread:$0]  %s7960_s3, 8192, %s48_s30, [#allocation6], %s6713_s0, %s6713_s0, %s6714_s16  }
  0x38   :  { %s6715_s19 = smov [#allocation8]   ;;  %s6654_s23 = scalar_lea.hbm %s7962_s5, 2048 }
  0x39   :  { %s61_s20 = sshll.u32 %s6715_s19, 4  ;;  %p6655_p10 = scmp.ne.s32.totalorder %s7962_s5, %s6654_s23  ;;  %s62_s20 = int_to_ptr.vmem [resolvable:$true] %s61_s20 }
  0x3a   :  { %p6658_p11 = scmp.lt.u32.totalorder %s6654_s23, %s7962_s5 }
  0x3c   :  { %p6660_p12 = pnand %p6658_p11, %p6655_p10 }
  0x3e   :  { %6663 = shalt.err (!%p6660_p12)
}
  0x3f   :  { %s6664_s27 = scalar_lea.vmem %s62_s20, 2048  ;;  %p6669_p0 = scmp.lt.s32.totalorder %s62_s20, %s62_s20 }
  0x40   :  { %p6665_p13 = scmp.ne.s32.totalorder %s62_s20, %s6664_s27  ;;  %p6670_p1 = scmp.lt.s32.totalorder %s6664_s27, %s6664_s27 }
  0x42   :  { %p6671_p2 = por %p6670_p1, %p6669_p0 }
  0x44   :  { %p6672_p3 = pnand %p6671_p2, %p6665_p13 }
  0x46   :  { %6675 = shalt.err (!%p6672_p3)
}
  0x47   :  { %s6716_s3 = smov 64   ;;  %s6717_s28 = smov 4  }
  0x48   :  { %67 = dma.hbm_to_vmem [thread:$0]  %s7962_s5, 2048, %s62_s20, [#allocation9], %s6716_s3, %s6716_s3, %s6717_s28  }
  0x49   :  { %6698 = dma.done.wait [#allocation3], 28672  }
  0x4a   :  { %6699 = vsyncadd [#allocation3], 4294938624 }
  0x4b   :  { %6700 = dma.done.wait [#allocation6], 33280  }
  0x4c   :  { %6701 = vsyncadd [#allocation6], 4294934016 }
  0x4d   :  { %6702 = dma.done.wait [#allocation9], 2048  }
  0x4e   :  { %6703 = vsyncadd [#allocation9], 4294965248  ;;  %v6054_v0 = vld [vmem:[#allocation5 + $0x4] ss:$16 sps:$4 sm:$0xff]   ;;  %v6056_v1 = vld [vmem:[#allocation5] ss:$16 sps:$4 sm:$0xff]  }
  0x4f   :  { %1666 = vmatprep.subr.bf16.mxu0 %v6054_v0  ;;  %5368 = vmatprep.subr.bf16.mxu1 %v6054_v0  ;;  %v6057_v2 = vld [vmem:[#allocation5 + $0x24] ss:$16 sps:$4 sm:$0xff]   ;;  %v6059_v3 = vld [vmem:[#allocation5 + $0x20] ss:$16 sps:$4 sm:$0xff]   ;;  %v84_v13 = vld [vmem:[#allocation2 + $0x8] sm:$0xff]  ;;  %vm1617_vm0 = vcmask 130048  }
  0x50   :  { %1667 = vmatpush1.bf16.msra.mxu0 %v6056_v1  ;;  %5384 = vmatpush1.bf16.msra.mxu1 %v6056_v1  ;;  %v6060_v4 = vld [vmem:[#allocation5 + $0x44] ss:$16 sps:$4 sm:$0xff]   ;;  %v6062_v5 = vld [vmem:[#allocation5 + $0x40] ss:$16 sps:$4 sm:$0xff]   ;;  %v196_v16 = vld [vmem:[#allocation2 + $0x388] sm:$0xff] }
  0x51   :  { %1668 = vmatprep.subr.bf16.mxu0 %v6057_v2  ;;  %5369 = vmatprep.subr.bf16.mxu1 %v6057_v2  ;;  %v6063_v6 = vld [vmem:[#allocation5 + $0x64] ss:$16 sps:$4 sm:$0xff]   ;;  %v6065_v7 = vld [vmem:[#allocation5 + $0x60] ss:$16 sps:$4 sm:$0xff]   ;;  %v90_v39 = vld [vmem:[#allocation2 + $0x38] sm:$0xff] }
  0x52   :  { %v6066_v8 = vld [vmem:[#allocation5 + $0x84] ss:$16 sps:$4 sm:$0xff]   ;;  %v6068_v9 = vld [vmem:[#allocation5 + $0x80] ss:$16 sps:$4 sm:$0xff]   ;;  %v202_v41 = vld [vmem:[#allocation2 + $0x3b8] sm:$0xff] }
  0x53   :  { %v6069_v10 = vld [vmem:[#allocation5 + $0xa4] ss:$16 sps:$4 sm:$0xff]   ;;  %v6071_v11 = vld [vmem:[#allocation5 + $0xa0] ss:$16 sps:$4 sm:$0xff]   ;;  %v6107_v43 = vld [vmem:[#allocation5 + $0xc] ss:$16 sps:$4 sm:$0xff]  }
  0x54   :  { %1669 = vmatpush1.bf16.msra.mxu0 %v6059_v3  ;;  %5385 = vmatpush1.bf16.msra.mxu1 %v6059_v3  ;;  %v6072_v12 = vld [vmem:[#allocation5 + $0xc4] ss:$16 sps:$4 sm:$0xff]   ;;  %v6074_v18 = vld [vmem:[#allocation5 + $0xc0] ss:$16 sps:$4 sm:$0xff]   ;;  %v98_v44 = vld [vmem:[#allocation2 + $0x78] sm:$0xff] }
  0x55   :  { %1670 = vmatprep.subr.bf16.mxu0 %v6060_v4  ;;  %5370 = vmatprep.subr.bf16.mxu1 %v6060_v4  ;;  %v91_v14 = vld [vmem:[#allocation2 + $0x40] sm:$0xff]  ;;  %v105_v47 = vld [vmem:[#allocation2 + $0xb0] sm:$0xff]  ;;  %v210_v48 = vld [vmem:[#allocation2 + $0x3f8] sm:$0xff] }
  0x56   :  { %v6811_v15 = vpack.c.bf16 %v91_v14, %v84_v13  ;;  %v203_v17 = vld [vmem:[#allocation2 + $0x3c0] sm:$0xff]  ;;  %v217_v49 = vld [vmem:[#allocation2 + $0x430] sm:$0xff]  ;;  %v6105_v51 = vld [vmem:[#allocation5 + $0x8] ss:$16 sps:$4 sm:$0xff]   ;;  %v6821_v56 = vpack.c.bf16 %v105_v47, %v98_v44 }
  0x57   :  { %v6813_v19 = vpack.c.bf16 %v203_v17, %v196_v16  ;;  %v6075_v20 = vld [vmem:[#allocation5 + $0xe4] ss:$16 sps:$4 sm:$0xff]   ;;  %v6077_v21 = vld [vmem:[#allocation5 + $0xe0] ss:$16 sps:$4 sm:$0xff]   ;;  %v6113_v53 = vld [vmem:[#allocation5 + $0x2c] ss:$16 sps:$4 sm:$0xff]   ;;  %v6823_v57 = vpack.c.bf16 %v217_v49, %v210_v48 }
  0x58   :  { %1671 = vmatpush1.bf16.msra.mxu0 %v6062_v5  ;;  %5386 = vmatpush1.bf16.msra.mxu1 %v6062_v5  ;;  %v6078_v22 = vld [vmem:[#allocation5 + $0x104] ss:$16 sps:$4 sm:$0xff]   ;;  %v6080_v23 = vld [vmem:[#allocation5 + $0x100] ss:$16 sps:$4 sm:$0xff]   ;;  %v6111_v55 = vld [vmem:[#allocation5 + $0x28] ss:$16 sps:$4 sm:$0xff]  }
  0x59   :  { %1672 = vmatprep.subr.bf16.mxu0 %v6063_v6  ;;  %5371 = vmatprep.subr.bf16.mxu1 %v6063_v6  ;;  %v6081_v24 = vld [vmem:[#allocation5 + $0x124] ss:$16 sps:$4 sm:$0xff]   ;;  %v6083_v25 = vld [vmem:[#allocation5 + $0x120] ss:$16 sps:$4 sm:$0xff]   ;;  %v104_v59 = vld [vmem:[#allocation2 + $0xa8] sm:$0xff] }
  0x5a   :  { %1698 = vmatprep.mubr.bf16.mxu0 %v6811_v15  ;;  %1778 = vmatprep.mubr.bf16.mxu1 %v6813_v19  ;;  %v6084_v26 = vld [vmem:[#allocation5 + $0x144] ss:$16 sps:$4 sm:$0xff]   ;;  %v6086_v27 = vld [vmem:[#allocation5 + $0x140] ss:$16 sps:$4 sm:$0xff]   ;;  %v216_v61 = vld [vmem:[#allocation2 + $0x428] sm:$0xff] }
  0x5b   :  { %v6087_v28 = vld [vmem:[#allocation5 + $0x164] ss:$16 sps:$4 sm:$0xff]   ;;  %v6089_v29 = vld [vmem:[#allocation5 + $0x160] ss:$16 sps:$4 sm:$0xff]   ;;  %v6119_v63 = vld [vmem:[#allocation5 + $0x4c] ss:$16 sps:$4 sm:$0xff]  }
  0x5c   :  { %1673 = vmatpush1.bf16.msra.mxu0 %v6065_v7  ;;  %5387 = vmatpush1.bf16.msra.mxu1 %v6065_v7  ;;  %v6090_v30 = vld [vmem:[#allocation5 + $0x184] ss:$16 sps:$4 sm:$0xff]   ;;  %v6092_v31 = vld [vmem:[#allocation5 + $0x180] ss:$16 sps:$4 sm:$0xff]   ;;  %v112_v0 = vld [vmem:[#allocation2 + $0xe8] sm:$0xff] }
  0x5d   :  { %1674 = vmatprep.subr.bf16.mxu0 %v6066_v8  ;;  %5372 = vmatprep.subr.bf16.mxu1 %v6066_v8  ;;  %v6093_v32 = vld [vmem:[#allocation5 + $0x1a4] ss:$16 sps:$4 sm:$0xff]   ;;  %v6095_v33 = vld [vmem:[#allocation5 + $0x1a0] ss:$16 sps:$4 sm:$0xff]   ;;  %v224_v4 = vld [vmem:[#allocation2 + $0x468] sm:$0xff] }
  0x5e   :  { %v6096_v34 = vld [vmem:[#allocation5 + $0x1c4] ss:$16 sps:$4 sm:$0xff]   ;;  %v6098_v35 = vld [vmem:[#allocation5 + $0x1c0] ss:$16 sps:$4 sm:$0xff]   ;;  %v6117_v7 = vld [vmem:[#allocation5 + $0x48] ss:$16 sps:$4 sm:$0xff]  }
  0x5f   :  { %v6099_v36 = vld [vmem:[#allocation5 + $0x1e4] ss:$16 sps:$4 sm:$0xff]   ;;  %v6101_v37 = vld [vmem:[#allocation5 + $0x1e0] ss:$16 sps:$4 sm:$0xff]   ;;  %v118_v16 = vld [vmem:[#allocation2 + $0x118] sm:$0xff] }
  0x60   :  { %1675 = vmatpush1.bf16.msra.mxu0 %v6068_v9  ;;  %5388 = vmatpush1.bf16.msra.mxu1 %v6068_v9  ;;  %v83_v38 = vld [vmem:[#allocation2] sm:$0xff]  ;;  %v97_v58 = vld [vmem:[#allocation2 + $0x70] sm:$0xff]  ;;  %v6125_v9 = vld [vmem:[#allocation5 + $0x6c] ss:$16 sps:$4 sm:$0xff]  }
  0x61   :  { %1676 = vmatprep.subr.bf16.mxu0 %v6069_v10  ;;  %5373 = vmatprep.subr.bf16.mxu1 %v6069_v10  ;;  %v195_v40 = vld [vmem:[#allocation2 + $0x380] sm:$0xff]  ;;  %v6817_v45 = vpack.c.bf16 %v90_v39, %v83_v38  ;;  %v209_v60 = vld [vmem:[#allocation2 + $0x3f0] sm:$0xff]  ;;  %v6829_v1 = vpack.c.bf16 %v104_v59, %v97_v58  ;;  %v244_v39 = vld [vmem:[#allocation2 + $0x508] sm:$0xff] }
  0x62   :  { %v6104_v42 = vld [vmem:[#allocation5 + $0x204] ss:$16 sps:$4 sm:$0xff]   ;;  %v6819_v46 = vpack.c.bf16 %v202_v41, %v195_v40  ;;  %v6102_v50 = vld [vmem:[#allocation5 + $0x200] ss:$16 sps:$4 sm:$0xff]   ;;  %v6831_v2 = vpack.c.bf16 %v216_v61, %v209_v60  ;;  %v6143_v41 = vld [vmem:[#allocation5 + $0xcc] ss:$16 sps:$4 sm:$0xff]  }
  0x63   :  { %v6110_v52 = vld [vmem:[#allocation5 + $0x224] ss:$16 sps:$4 sm:$0xff]   ;;  %v6108_v54 = vld [vmem:[#allocation5 + $0x220] ss:$16 sps:$4 sm:$0xff]   ;;  %v252_v49 = vld [vmem:[#allocation2 + $0x548] sm:$0xff] }
  0x64   :  { %1677 = vmatpush1.bf16.msra.mxu0 %v6071_v11  ;;  %5389 = vmatpush1.bf16.msra.mxu1 %v6071_v11  ;;  %v6116_v62 = vld [vmem:[#allocation5 + $0x244] ss:$16 sps:$4 sm:$0xff]   ;;  %v6114_v6 = vld [vmem:[#allocation5 + $0x240] ss:$16 sps:$4 sm:$0xff]   ;;  %v6123_v11 = vld [vmem:[#allocation5 + $0x68] ss:$16 sps:$4 sm:$0xff]  }
  0x65   :  { %1678 = vmatprep.subr.bf16.mxu0 %v6072_v12  ;;  %5374 = vmatprep.subr.bf16.mxu1 %v6072_v12  ;;  %v119_v3 = vld [vmem:[#allocation2 + $0x120] sm:$0xff]  ;;  %v237_v38 = vld [vmem:[#allocation2 + $0x4d0] sm:$0xff]  ;;  %v146_v61 = vld [vmem:[#allocation2 + $0x1f8] sm:$0xff] }
  0x66   :  { %v231_v5 = vld [vmem:[#allocation2 + $0x4a0] sm:$0xff]  ;;  %v6833_v12 = vpack.c.bf16 %v119_v3, %v112_v0  ;;  %v6855_v48 = vpack.c.bf16 %v244_v39, %v237_v38  ;;  %v6155_v3 = vld [vmem:[#allocation5 + $0x10c] ss:$16 sps:$4 sm:$0xff]   ;;  %v6165_v39 = vld [vmem:[#allocation5 + $0x148] ss:$16 sps:$4 sm:$0xff]  }
  0x67   :  { %v6122_v8 = vld [vmem:[#allocation5 + $0x264] ss:$16 sps:$4 sm:$0xff]   ;;  %v6120_v10 = vld [vmem:[#allocation5 + $0x260] ss:$16 sps:$4 sm:$0xff]   ;;  %v6835_v13 = vpack.c.bf16 %v231_v5, %v224_v4  ;;  %v154_v5 = vld [vmem:[#allocation2 + $0x238] sm:$0xff] }
  0x68   :  { %1679 = vmatpush1.bf16.msra.mxu0 %v6074_v18  ;;  %5390 = vmatpush1.bf16.msra.mxu1 %v6074_v18  ;;  %v111_v14 = vld [vmem:[#allocation2 + $0xe0] sm:$0xff]  ;;  %v230_v18 = vld [vmem:[#allocation2 + $0x498] sm:$0xff] }
  0x69   :  { %1680 = vmatprep.subr.bf16.mxu0 %v6075_v20  ;;  %5375 = vmatprep.subr.bf16.mxu1 %v6075_v20  ;;  %v223_v17 = vld [vmem:[#allocation2 + $0x460] sm:$0xff] }
  0x6a   :  { %v6128_v20 = vld [vmem:[#allocation5 + $0x284] ss:$16 sps:$4 sm:$0xff]   ;;  %v6150_v4 = vld [vmem:[#allocation5 + $0x300] ss:$16 sps:$4 sm:$0xff]  }
  0x6b   :  { %v6140_v40 = vld [vmem:[#allocation5 + $0x2c4] ss:$16 sps:$4 sm:$0xff]  }
  0x6c   :  { %1681 = vmatpush1.bf16.msra.mxu0 %v6077_v21  ;;  %5391 = vmatpush1.bf16.msra.mxu1 %v6077_v21  ;;  %v6131_v21 = vld [vmem:[#allocation5 + $0x8c] ss:$16 sps:$4 sm:$0xff]   ;;  %v147_v44 = vld [vmem:[#allocation2 + $0x200] sm:$0xff] }
  0x6d   :  { %1682 = vmatprep.subr.bf16.mxu0 %v6078_v22  ;;  %5376 = vmatprep.subr.bf16.mxu1 %v6078_v22  ;;  %v126_v22 = vld [vmem:[#allocation2 + $0x158] sm:$0xff]  ;;  %v139_v60 = vld [vmem:[#allocation2 + $0x1c0] sm:$0xff] }
  0x6e   :  { %v6152_v0 = vld [vmem:[#allocation5 + $0x304] ss:$16 sps:$4 sm:$0xff]  }
  0x6f   :  { %v287_v38 = vld [vmem:[#allocation2 + $0x660] sm:$0xff] }
  0x70   :  { %1683 = vmatpush1.bf16.msra.mxu0 %v6080_v23  ;;  %5392 = vmatpush1.bf16.msra.mxu1 %v6080_v23  ;;  %v6841_v23 = vpack.c.bf16 %v118_v16, %v111_v14  ;;  %v6158_v14 = vld [vmem:[#allocation5 + $0x324] ss:$16 sps:$4 sm:$0xff]   ;;  %v6161_v16 = vld [vmem:[#allocation5 + $0x12c] ss:$16 sps:$4 sm:$0xff]  }
  0x71   :  { %1684 = vmatprep.subr.bf16.mxu0 %v6081_v24  ;;  %5377 = vmatprep.subr.bf16.mxu1 %v6081_v24  ;;  %v6843_v24 = vpack.c.bf16 %v230_v18, %v223_v17  ;;  %v6156_v17 = vld [vmem:[#allocation5 + $0x320] ss:$16 sps:$4 sm:$0xff]   ;;  %v6159_v18 = vld [vmem:[#allocation5 + $0x128] ss:$16 sps:$4 sm:$0xff]  }
  0x74   :  { %1685 = vmatpush1.bf16.msra.mxu0 %v6083_v25  ;;  %5393 = vmatpush1.bf16.msra.mxu1 %v6083_v25  ;;  %v133_v25 = vld [vmem:[#allocation2 + $0x190] sm:$0xff] }
  0x75   :  { %1686 = vmatprep.subr.bf16.mxu0 %v6084_v26  ;;  %5378 = vmatprep.subr.bf16.mxu1 %v6084_v26  ;;  %v238_v26 = vld [vmem:[#allocation2 + $0x4d8] sm:$0xff] }
  0x78   :  { %1687 = vmatpush1.bf16.msra.mxu0 %v6086_v27  ;;  %5394 = vmatpush1.bf16.msra.mxu1 %v6086_v27  ;;  %v245_v27 = vld [vmem:[#allocation2 + $0x510] sm:$0xff] }
  0x79   :  { %1688 = vmatprep.subr.bf16.mxu0 %v6087_v28  ;;  %5379 = vmatprep.subr.bf16.mxu1 %v6087_v28  ;;  %v6126_v28 = vld [vmem:[#allocation5 + $0x280] ss:$16 sps:$4 sm:$0xff]  }
  0x7c   :  { %1689 = vmatpush1.bf16.msra.mxu0 %v6089_v29  ;;  %5395 = vmatpush1.bf16.msra.mxu1 %v6089_v29  ;;  %v6129_v29 = vld [vmem:[#allocation5 + $0x88] ss:$16 sps:$4 sm:$0xff]  }
  0x7d   :  { %1690 = vmatprep.subr.bf16.mxu0 %v6090_v30  ;;  %5380 = vmatprep.subr.bf16.mxu1 %v6090_v30  ;;  %v6134_v30 = vld [vmem:[#allocation5 + $0x2a4] ss:$16 sps:$4 sm:$0xff]  }
  0x80   :  { %1691 = vmatpush1.bf16.msra.mxu0 %v6092_v31  ;;  %5396 = vmatpush1.bf16.msra.mxu1 %v6092_v31  ;;  %v6137_v31 = vld [vmem:[#allocation5 + $0xac] ss:$16 sps:$4 sm:$0xff]  }
  0x81   :  { %1692 = vmatprep.subr.bf16.mxu0 %v6093_v32  ;;  %5381 = vmatprep.subr.bf16.mxu1 %v6093_v32  ;;  %v6132_v32 = vld [vmem:[#allocation5 + $0x2a0] ss:$16 sps:$4 sm:$0xff]  }
  0x84   :  { %1693 = vmatpush1.bf16.msra.mxu0 %v6095_v33  ;;  %5397 = vmatpush1.bf16.msra.mxu1 %v6095_v33  ;;  %v6135_v33 = vld [vmem:[#allocation5 + $0xa8] ss:$16 sps:$4 sm:$0xff]  }
  0x85   :  { %1694 = vmatprep.subr.bf16.mxu0 %v6096_v34  ;;  %5382 = vmatprep.subr.bf16.mxu1 %v6096_v34  ;;  %v6845_v34 = vpack.c.bf16 %v133_v25, %v126_v22  ;;  %v153_v22 = vld [vmem:[#allocation2 + $0x230] sm:$0xff]  ;;  %v160_v25 = vld [vmem:[#allocation2 + $0x268] sm:$0xff] }
  0x88   :  { %1695 = vmatpush1.bf16.msra.mxu0 %v6098_v35  ;;  %5398 = vmatpush1.bf16.msra.mxu1 %v6098_v35  ;;  %v6847_v35 = vpack.c.bf16 %v245_v27, %v238_v26  ;;  %v265_v26 = vld [vmem:[#allocation2 + $0x5b0] sm:$0xff]  ;;  %v272_v27 = vld [vmem:[#allocation2 + $0x5e8] sm:$0xff] }
  0x89   :  { %1696 = vmatprep.subr.bf16.mxu0 %v6099_v36  ;;  %5383 = vmatprep.subr.bf16.mxu1 %v6099_v36  ;;  %v125_v36 = vld [vmem:[#allocation2 + $0x150] sm:$0xff] }
  0x8c   :  { %1697 = vmatpush1.bf16.msra.mxu0 %v6101_v37  ;;  %5399 = vmatpush1.bf16.msra.mxu1 %v6101_v37  ;;  %v132_v37 = vld [vmem:[#allocation2 + $0x188] sm:$0xff] }
  0x8d   :  { %1859 = vmatprep.subr.bf16.mxu0 %v6104_v42  ;;  %2438 = vmatprep.subr.bf16.mxu1 %v6107_v43  ;;  %v6138_v42 = vld [vmem:[#allocation5 + $0x2c0] ss:$16 sps:$4 sm:$0xff]   ;;  %v140_v43 = vld [vmem:[#allocation2 + $0x1c8] sm:$0xff]  ;;  %v6853_v47 = vpack.c.bf16 %v132_v37, %v125_v36  ;;  %v6879_v36 = vpack.c.bf16 %v272_v27, %v265_v26  ;;  %v6188_v26 = vld [vmem:[#allocation5 + $0x3c4] ss:$16 sps:$4 sm:$0xff]  }
  0x8e   :  { %v6857_v58 = vpack.c.bf16 %v147_v44, %v140_v43  ;;  %v280_v37 = vld [vmem:[#allocation2 + $0x628] sm:$0xff] }
  0x8f   :  { %1699 = vmatmul.mubr.bf16.vlgmr.msra.gmra.mrb[0].mxu0 %v6817_v45  ;;  %1779 = vmatmul.mubr.bf16.vlgmr.msra.gmra.mrb[0].mxu1 %v6819_v46  ;;  %v6171_v43 = vld [vmem:[#allocation5 + $0x168] ss:$16 sps:$4 sm:$0xff]   ;;  %v6191_v27 = vld [vmem:[#allocation5 + $0x1cc] ss:$16 sps:$4 sm:$0xff]  }
  0x90   :  { %1860 = vmatpush1.bf16.msra.mxu0 %v6102_v50  ;;  %2439 = vmatpush1.bf16.msra.mxu1 %v6105_v51  ;;  %v259_v50 = vld [vmem:[#allocation2 + $0x580] sm:$0xff]  ;;  %v6141_v51 = vld [vmem:[#allocation5 + $0xc8] ss:$16 sps:$4 sm:$0xff]  }
  0x91   :  { %1861 = vmatprep.subr.bf16.mxu0 %v6110_v52  ;;  %2440 = vmatprep.subr.bf16.mxu1 %v6113_v53  ;;  %v6146_v52 = vld [vmem:[#allocation5 + $0x2e4] ss:$16 sps:$4 sm:$0xff]   ;;  %v6149_v53 = vld [vmem:[#allocation5 + $0xec] ss:$16 sps:$4 sm:$0xff]   ;;  %v6859_v59 = vpack.c.bf16 %v259_v50, %v252_v49  ;;  %v6883_v49 = vpack.c.bf16 %v287_v38, %v280_v37  ;;  %v6189_v37 = vld [vmem:[#allocation5 + $0x1c8] ss:$16 sps:$4 sm:$0xff]  }
  0x92   :  { %1708 = vmatprep.mubr.bf16.mxu0 %v6821_v56  ;;  %1788 = vmatprep.mubr.bf16.mxu1 %v6823_v57  ;;  %v167_v50 = vld [vmem:[#allocation2 + $0x2a0] sm:$0xff] }
  0x93   :  { %v6194_v38 = vld [vmem:[#allocation5 + $0x3e4] ss:$16 sps:$4 sm:$0xff]  }
  0x94   :  { %1862 = vmatpush1.bf16.msra.mxu0 %v6108_v54  ;;  %2441 = vmatpush1.bf16.msra.mxu1 %v6111_v55  ;;  %v6144_v54 = vld [vmem:[#allocation5 + $0x2e0] ss:$16 sps:$4 sm:$0xff]   ;;  %v6147_v55 = vld [vmem:[#allocation5 + $0xe8] ss:$16 sps:$4 sm:$0xff]  }
  0x95   :  { %1863 = vmatprep.subr.bf16.mxu0 %v6116_v62  ;;  %2442 = vmatprep.subr.bf16.mxu1 %v6119_v63  ;;  %v251_v62 = vld [vmem:[#allocation2 + $0x540] sm:$0xff]  ;;  %v258_v63 = vld [vmem:[#allocation2 + $0x578] sm:$0xff] }
  0x97   :  { %1709 = vmatmul.mubr.bf16.gmra.mrb[4].mxu0 %v6829_v1  ;;  %1789 = vmatmul.mubr.bf16.gmra.mrb[4].mxu1 %v6831_v2 }
  0x98   :  { %1864 = vmatpush1.bf16.msra.mxu0 %v6114_v6  ;;  %2443 = vmatpush1.bf16.msra.mxu1 %v6117_v7  ;;  %v161_v6 = vld [vmem:[#allocation2 + $0x270] sm:$0xff]  ;;  %v6865_v7 = vpack.c.bf16 %v146_v61, %v139_v60  ;;  %v182_v61 = vld [vmem:[#allocation2 + $0x318] sm:$0xff] }
  0x99   :  { %1865 = vmatprep.subr.bf16.mxu0 %v6122_v8  ;;  %2444 = vmatprep.subr.bf16.mxu1 %v6125_v9  ;;  %v6867_v8 = vpack.c.bf16 %v258_v63, %v251_v62  ;;  %v266_v9 = vld [vmem:[#allocation2 + $0x5b8] sm:$0xff]  ;;  %v6174_v60 = vld [vmem:[#allocation5 + $0x380] ss:$16 sps:$4 sm:$0xff]  }
  0x9a   :  { %1718 = vmatprep.mubr.bf16.mxu0 %v6833_v12  ;;  %1798 = vmatprep.mubr.bf16.mxu1 %v6835_v13  ;;  %v189_v62 = vld [vmem:[#allocation2 + $0x350] sm:$0xff] }
  0x9c   :  { %1866 = vmatpush1.bf16.msra.mxu0 %v6120_v10  ;;  %2445 = vmatpush1.bf16.msra.mxu1 %v6123_v11  ;;  %v273_v10 = vld [vmem:[#allocation2 + $0x5f0] sm:$0xff]  ;;  %v6153_v11 = vld [vmem:[#allocation5 + $0x108] ss:$16 sps:$4 sm:$0xff]  }
  0x9d   :  { %1867 = vmatprep.subr.bf16.mxu0 %v6128_v20  ;;  %2446 = vmatprep.subr.bf16.mxu1 %v6131_v21  ;;  %v6869_v20 = vpack.c.bf16 %v161_v6, %v154_v5  ;;  %v6871_v21 = vpack.c.bf16 %v273_v10, %v266_v9  ;;  %v6177_v5 = vld [vmem:[#allocation5 + $0x188] ss:$16 sps:$4 sm:$0xff]   ;;  %v6182_v6 = vld [vmem:[#allocation5 + $0x3a4] ss:$16 sps:$4 sm:$0xff]   ;;  %v6185_v9 = vld [vmem:[#allocation5 + $0x1ac] ss:$16 sps:$4 sm:$0xff]  }
  0x9e   :  { %v6180_v10 = vld [vmem:[#allocation5 + $0x3a0] ss:$16 sps:$4 sm:$0xff]  }
  0x9f   :  { %1719 = vmatmul.mubr.bf16.gmra.mrb[8].mxu0 %v6841_v23  ;;  %1799 = vmatmul.mubr.bf16.gmra.mrb[8].mxu1 %v6843_v24 }
  0xa0   :  { %1868 = vmatpush1.bf16.msra.mxu0 %v6126_v28  ;;  %2447 = vmatpush1.bf16.msra.mxu1 %v6129_v29  ;;  %v6164_v28 = vld [vmem:[#allocation5 + $0x344] ss:$16 sps:$4 sm:$0xff]   ;;  %v6167_v29 = vld [vmem:[#allocation5 + $0x14c] ss:$16 sps:$4 sm:$0xff]  }
  0xa1   :  { %1869 = vmatprep.subr.bf16.mxu0 %v6134_v30  ;;  %2448 = vmatprep.subr.bf16.mxu1 %v6137_v31  ;;  %v6162_v30 = vld [vmem:[#allocation5 + $0x340] ss:$16 sps:$4 sm:$0xff]   ;;  %v168_v31 = vld [vmem:[#allocation2 + $0x2a8] sm:$0xff] }
  0xa2   :  { %1728 = vmatprep.mubr.bf16.mxu0 %v6845_v34  ;;  %1808 = vmatprep.mubr.bf16.mxu1 %v6847_v35 }
  0xa4   :  { %1870 = vmatpush1.bf16.msra.mxu0 %v6132_v32  ;;  %2449 = vmatpush1.bf16.msra.mxu1 %v6135_v33  ;;  %v175_v32 = vld [vmem:[#allocation2 + $0x2e0] sm:$0xff]  ;;  %v6877_v33 = vpack.c.bf16 %v160_v25, %v153_v22  ;;  %v293_v22 = vld [vmem:[#allocation2 + $0x690] sm:$0xff]  ;;  %v300_v25 = vld [vmem:[#allocation2 + $0x6c8] sm:$0xff] }
  0xa5   :  { %1871 = vmatprep.subr.bf16.mxu0 %v6140_v40  ;;  %2450 = vmatprep.subr.bf16.mxu1 %v6143_v41  ;;  %v6170_v40 = vld [vmem:[#allocation5 + $0x364] ss:$16 sps:$4 sm:$0xff]   ;;  %v6173_v41 = vld [vmem:[#allocation5 + $0x16c] ss:$16 sps:$4 sm:$0xff]   ;;  %v6881_v44 = vpack.c.bf16 %v175_v32, %v168_v31 }
  0xa6   :  { %v86_v31 = vld [vmem:[#allocation2 + $0x18] sm:$0xff]  ;;  %v93_v32 = vld [vmem:[#allocation2 + $0x50] sm:$0xff] }
  0xa7   :  { %1729 = vmatmul.mubr.bf16.gmra.mrb[12].mxu0 %v6853_v47  ;;  %1809 = vmatmul.mubr.bf16.gmra.mrb[12].mxu1 %v6855_v48 }
  0xa8   :  { %1872 = vmatpush1.bf16.msra.mxu0 %v6138_v42  ;;  %2451 = vmatpush1.bf16.msra.mxu1 %v6141_v51  ;;  %v6168_v42 = vld [vmem:[#allocation5 + $0x360] ss:$16 sps:$4 sm:$0xff]   ;;  %v174_v51 = vld [vmem:[#allocation2 + $0x2d8] sm:$0xff] }
  0xa9   :  { %1873 = vmatprep.subr.bf16.mxu0 %v6146_v52  ;;  %2452 = vmatprep.subr.bf16.mxu1 %v6149_v53  ;;  %v279_v52 = vld [vmem:[#allocation2 + $0x620] sm:$0xff]  ;;  %v286_v53 = vld [vmem:[#allocation2 + $0x658] sm:$0xff]  ;;  %v6889_v63 = vpack.c.bf16 %v174_v51, %v167_v50  ;;  %v92_v50 = vld [vmem:[#allocation2 + $0x48] sm:$0xff] }
  0xaa   :  { %1738 = vmatprep.mubr.bf16.mxu0 %v6857_v58  ;;  %1818 = vmatprep.mubr.bf16.mxu1 %v6859_v59  ;;  %v6200_v51 = vld [vmem:[#allocation5 + $0x404] ss:$16 sps:$4 sm:$0xff]  }
  0xac   :  { %1874 = vmatpush1.bf16.msra.mxu0 %v6144_v54  ;;  %2453 = vmatpush1.bf16.msra.mxu1 %v6147_v55  ;;  %v6176_v54 = vld [vmem:[#allocation5 + $0x384] ss:$16 sps:$4 sm:$0xff]   ;;  %v6179_v55 = vld [vmem:[#allocation5 + $0x18c] ss:$16 sps:$4 sm:$0xff]  }
  0xad   :  { %1875 = vmatprep.subr.bf16.mxu0 %v6152_v0  ;;  %2454 = vmatprep.subr.bf16.mxu1 %v6155_v3  ;;  %v6891_v0 = vpack.c.bf16 %v286_v53, %v279_v52  ;;  %v294_v3 = vld [vmem:[#allocation2 + $0x698] sm:$0xff]  ;;  %v100_v53 = vld [vmem:[#allocation2 + $0x88] sm:$0xff] }
  0xae   :  { %v6203_v52 = vld [vmem:[#allocation5 + $0x20c] ss:$16 sps:$4 sm:$0xff]  }
  0xaf   :  { %1739 = vmatmul.mubr.bf16.gmra.mrb[16].mxu0 %v6865_v7  ;;  %1819 = vmatmul.mubr.bf16.gmra.mrb[16].mxu1 %v6867_v8 }
  0xb0   :  { %1876 = vmatpush1.bf16.msra.mxu0 %v6150_v4  ;;  %2455 = vmatpush1.bf16.msra.mxu1 %v6153_v11  ;;  %v301_v4 = vld [vmem:[#allocation2 + $0x6d0] sm:$0xff]  ;;  %v6183_v11 = vld [vmem:[#allocation5 + $0x1a8] ss:$16 sps:$4 sm:$0xff]  }
  0xb1   :  { %1877 = vmatprep.subr.bf16.mxu0 %v6158_v14  ;;  %2456 = vmatprep.subr.bf16.mxu1 %v6161_v16  ;;  %v6893_v14 = vpack.c.bf16 %v189_v62, %v182_v61  ;;  %v6895_v16 = vpack.c.bf16 %v301_v4, %v294_v3  ;;  %v6201_v61 = vld [vmem:[#allocation5 + $0x208] ss:$16 sps:$4 sm:$0xff]   ;;  %v99_v3 = vld [vmem:[#allocation2 + $0x80] sm:$0xff] }
  0xb2   :  { %1748 = vmatprep.mubr.bf16.mxu0 %v6869_v20  ;;  %1828 = vmatprep.mubr.bf16.mxu1 %v6871_v21  ;;  %v106_v4 = vld [vmem:[#allocation2 + $0xb8] sm:$0xff] }
  0xb4   :  { %1878 = vmatpush1.bf16.msra.mxu0 %v6156_v17  ;;  %2457 = vmatpush1.bf16.msra.mxu1 %v6159_v18  ;;  %v181_v17 = vld [vmem:[#allocation2 + $0x310] sm:$0xff]  ;;  %v188_v18 = vld [vmem:[#allocation2 + $0x348] sm:$0xff] }
  0xb5   :  { %1879 = vmatprep.subr.bf16.mxu0 %v6164_v28  ;;  %2458 = vmatprep.subr.bf16.mxu1 %v6167_v29  ;;  %v6186_v28 = vld [vmem:[#allocation5 + $0x3c0] ss:$16 sps:$4 sm:$0xff]   ;;  %v6901_v29 = vpack.c.bf16 %v188_v18, %v181_v17  ;;  %v6212_v17 = vld [vmem:[#allocation5 + $0x444] ss:$16 sps:$4 sm:$0xff]   ;;  %v6215_v18 = vld [vmem:[#allocation5 + $0x24c] ss:$16 sps:$4 sm:$0xff]  }
  0xb7   :  { %1749 = vmatmul.mubr.bf16.gmra.mrb[20].mxu0 %v6877_v33  ;;  %1829 = vmatmul.mubr.bf16.gmra.mrb[20].mxu1 %v6879_v36 }
  0xb8   :  { %1880 = vmatpush1.bf16.msra.mxu0 %v6162_v30  ;;  %2459 = vmatpush1.bf16.msra.mxu1 %v6165_v39  ;;  %v6903_v30 = vpack.c.bf16 %v300_v25, %v293_v22  ;;  %v6197_v39 = vld [vmem:[#allocation5 + $0x1ec] ss:$16 sps:$4 sm:$0xff]   ;;  %v6919_v22 = vpack.c.bf16 %v106_v4, %v99_v3  ;;  %v6228_v3 = vld [vmem:[#allocation5 + $0x4a0] ss:$16 sps:$4 sm:$0xff]   ;;  %v6231_v4 = vld [vmem:[#allocation5 + $0x2a8] ss:$16 sps:$4 sm:$0xff]  }
  0xb9   :  { %1881 = vmatprep.subr.bf16.mxu0 %v6170_v40  ;;  %2460 = vmatprep.subr.bf16.mxu1 %v6173_v41  ;;  %v6192_v40 = vld [vmem:[#allocation5 + $0x3e0] ss:$16 sps:$4 sm:$0xff]   ;;  %v6905_v41 = vpack.c.bf16 %v93_v32, %v86_v31  ;;  %v6221_v31 = vld [vmem:[#allocation5 + $0x26c] ss:$16 sps:$4 sm:$0xff]  }
  0xba   :  { %1758 = vmatprep.mubr.bf16.mxu0 %v6881_v44  ;;  %1838 = vmatprep.mubr.bf16.mxu1 %v6883_v49  ;;  %v128_v32 = vld [vmem:[#allocation2 + $0x168] sm:$0xff] }
  0xbc   :  { %1882 = vmatpush1.bf16.msra.mxu0 %v6168_v42  ;;  %2461 = vmatpush1.bf16.msra.mxu1 %v6171_v43  ;;  %v6195_v42 = vld [vmem:[#allocation5 + $0x1e8] ss:$16 sps:$4 sm:$0xff]   ;;  %v85_v43 = vld [vmem:[#allocation2 + $0x10] sm:$0xff] }
  0xbd   :  { %1883 = vmatprep.subr.bf16.mxu0 %v6176_v54  ;;  %2462 = vmatprep.subr.bf16.mxu1 %v6179_v55  ;;  %v107_v54 = vld [vmem:[#allocation2 + $0xc0] sm:$0xff]  ;;  %v6911_v55 = vpack.c.bf16 %v92_v50, %v85_v43 }
  0xbe   :  { %v6913_v62 = vpack.c.bf16 %v107_v54, %v100_v53  ;;  %v6233_v53 = vld [vmem:[#allocation5 + $0x2ac] ss:$16 sps:$4 sm:$0xff]  }
  0xbf   :  { %1759 = vmatmul.mubr.bf16.gmra.mrb[24].mxu0 %v6889_v63  ;;  %1839 = vmatmul.mubr.bf16.gmra.mrb[24].mxu1 %v6891_v0  ;;  %v134_v54 = vld [vmem:[#allocation2 + $0x198] sm:$0xff] }
  0xc0   :  { %1884 = vmatpush1.bf16.msra.mxu0 %v6174_v60  ;;  %2463 = vmatpush1.bf16.msra.mxu1 %v6177_v5  ;;  %v6198_v60 = vld [vmem:[#allocation5 + $0x400] ss:$16 sps:$4 sm:$0xff]  }
  0xc1   :  { %1885 = vmatprep.subr.bf16.mxu0 %v6182_v6  ;;  %2464 = vmatprep.subr.bf16.mxu1 %v6185_v9  ;;  %v6204_v5 = vld [vmem:[#allocation5 + $0x420] ss:$16 sps:$4 sm:$0xff]   ;;  %v6206_v6 = vld [vmem:[#allocation5 + $0x424] ss:$16 sps:$4 sm:$0xff]   ;;  %v6209_v9 = vld [vmem:[#allocation5 + $0x22c] ss:$16 sps:$4 sm:$0xff]  }
  0xc2   :  { %1768 = vmatprep.mubr.bf16.mxu0 %v6893_v14  ;;  %1848 = vmatprep.mubr.bf16.mxu1 %v6895_v16 }
  0xc4   :  { %1886 = vmatpush1.bf16.msra.mxu0 %v6180_v10  ;;  %2465 = vmatpush1.bf16.msra.mxu1 %v6183_v11  ;;  %v114_v10 = vld [vmem:[#allocation2 + $0xf8] sm:$0xff]  ;;  %v121_v11 = vld [vmem:[#allocation2 + $0x130] sm:$0xff] }
  0xc5   :  { %1887 = vmatprep.subr.bf16.mxu0 %v6188_v26  ;;  %2466 = vmatprep.subr.bf16.mxu1 %v6191_v27  ;;  %v6921_v25 = vpack.c.bf16 %v121_v11, %v114_v10  ;;  %v6213_v26 = vld [vmem:[#allocation5 + $0x248] ss:$16 sps:$4 sm:$0xff]   ;;  %v113_v27 = vld [vmem:[#allocation2 + $0xf0] sm:$0xff]  ;;  %v6245_v11 = vld [vmem:[#allocation5 + $0x2ec] ss:$16 sps:$4 sm:$0xff]  }
  0xc6   :  { %v6237_v10 = vld [vmem:[#allocation5 + $0x2c8] ss:$16 sps:$4 sm:$0xff]  }
  0xc7   :  { %1769 = vmatmul.mubr.bf16.gmra.mrb[28].mxu0 %v6901_v29  ;;  %1849 = vmatmul.mubr.bf16.gmra.mrb[28].mxu1 %v6903_v30 }
  0xc8   :  { %1888 = vmatpush1.bf16.msra.mxu0 %v6186_v28  ;;  %2467 = vmatpush1.bf16.msra.mxu1 %v6189_v37  ;;  %v6218_v28 = vld [vmem:[#allocation5 + $0x464] ss:$16 sps:$4 sm:$0xff]  }
  0xc9   :  { %1889 = vmatprep.subr.bf16.mxu0 %v6194_v38  ;;  %2468 = vmatprep.subr.bf16.mxu1 %v6197_v39  ;;  %v135_v37 = vld [vmem:[#allocation2 + $0x1a0] sm:$0xff]  ;;  %v6219_v39 = vld [vmem:[#allocation5 + $0x268] ss:$16 sps:$4 sm:$0xff]  }
  0xca   :  { %1891 = vmatprep.mubr.bf16.mxu0 %v6905_v41  ;;  %2470 = vmatprep.mubr.bf16.mxu1 %v6811_v15  ;;  %v6207_v15 = vld [vmem:[#allocation5 + $0x228] ss:$16 sps:$4 sm:$0xff]   ;;  %v6216_v38 = vld [vmem:[#allocation5 + $0x460] ss:$16 sps:$4 sm:$0xff]   ;;  %v6929_v50 = vpack.c.bf16 %v135_v37, %v128_v32 }
  0xcc   :  { %1890 = vmatpush1.bf16.msra.mxu0 %v6192_v40  ;;  %2469 = vmatpush1.bf16.msra.mxu1 %v6195_v42  ;;  %v6224_v40 = vld [vmem:[#allocation5 + $0x484] ss:$16 sps:$4 sm:$0xff]   ;;  %v6227_v42 = vld [vmem:[#allocation5 + $0x28c] ss:$16 sps:$4 sm:$0xff]  }
  0xcd   :  { %2052 = vmatprep.subr.bf16.mxu0 %v6200_v51  ;;  %2631 = vmatprep.subr.bf16.mxu1 %v6203_v52  ;;  %v6225_v51 = vld [vmem:[#allocation5 + $0x288] ss:$16 sps:$4 sm:$0xff]   ;;  %v127_v52 = vld [vmem:[#allocation2 + $0x160] sm:$0xff] }
  0xcf   :  { %1892 = vmatmul.mubr.bf16.vlgmr.msra.gmra.mrb[0].mxu0 %v6911_v55  ;;  %2471 = vmatmul.mubr.bf16.vlgmr.msra.gmra.mrb[32].mxu1 %v6817_v45  ;;  %v6210_v45 = vld [vmem:[#allocation5 + $0x440] ss:$16 sps:$4 sm:$0xff]  }
  0xd0   :  { %2053 = vmatpush1.bf16.msra.mxu0 %v6198_v60  ;;  %2632 = vmatpush1.bf16.msra.mxu1 %v6201_v61  ;;  %v142_v60 = vld [vmem:[#allocation2 + $0x1d8] sm:$0xff]  ;;  %v149_v61 = vld [vmem:[#allocation2 + $0x210] sm:$0xff] }
  0xd1   :  { %1901 = vmatprep.mubr.bf16.mxu0 %v6913_v62  ;;  %2480 = vmatprep.mubr.bf16.mxu1 %v6821_v56  ;;  %v120_v56 = vld [vmem:[#allocation2 + $0x128] sm:$0xff] }
  0xd2   :  { %2054 = vmatprep.subr.bf16.mxu0 %v6206_v6  ;;  %2633 = vmatprep.subr.bf16.mxu1 %v6209_v9  ;;  %v6927_v43 = vpack.c.bf16 %v120_v56, %v113_v27  ;;  %v6239_v6 = vld [vmem:[#allocation5 + $0x2cc] ss:$16 sps:$4 sm:$0xff]   ;;  %v6935_v9 = vpack.c.bf16 %v134_v54, %v127_v52  ;;  %v6240_v27 = vld [vmem:[#allocation5 + $0x4e0] ss:$16 sps:$4 sm:$0xff]  }
  0xd3   :  { %v6251_v56 = vld [vmem:[#allocation5 + $0x30c] ss:$16 sps:$4 sm:$0xff]   ;;  %v6252_v52 = vld [vmem:[#allocation5 + $0x520] ss:$16 sps:$4 sm:$0xff]  }
  0xd4   :  { %2055 = vmatpush1.bf16.msra.mxu0 %v6204_v5  ;;  %2634 = vmatpush1.bf16.msra.mxu1 %v6207_v15  ;;  %v6236_v5 = vld [vmem:[#allocation5 + $0x4c4] ss:$16 sps:$4 sm:$0xff]   ;;  %v6937_v15 = vpack.c.bf16 %v149_v61, %v142_v60  ;;  %v6263_v54 = vld [vmem:[#allocation5 + $0x34c] ss:$16 sps:$4 sm:$0xff]   ;;  %v6258_v61 = vld [vmem:[#allocation5 + $0x540] ss:$16 sps:$4 sm:$0xff]  }
  0xd5   :  { %2056 = vmatprep.subr.bf16.mxu0 %v6212_v17  ;;  %2635 = vmatprep.subr.bf16.mxu1 %v6215_v18  ;;  %v141_v17 = vld [vmem:[#allocation2 + $0x1d0] sm:$0xff]  ;;  %v148_v18 = vld [vmem:[#allocation2 + $0x208] sm:$0xff] }
  0xd6   :  { %v6943_v32 = vpack.c.bf16 %v148_v18, %v141_v17  ;;  %v6272_v17 = vld [vmem:[#allocation5 + $0x584] ss:$16 sps:$4 sm:$0xff]   ;;  %v6275_v18 = vld [vmem:[#allocation5 + $0x38c] ss:$16 sps:$4 sm:$0xff]  }
  0xd7   :  { %1902 = vmatmul.mubr.bf16.gmra.mrb[4].mxu0 %v6919_v22  ;;  %2481 = vmatmul.mubr.bf16.gmra.mrb[36].mxu1 %v6829_v1  ;;  %v6222_v1 = vld [vmem:[#allocation5 + $0x480] ss:$16 sps:$4 sm:$0xff]  }
  0xd8   :  { %1911 = vmatprep.mubr.bf16.mxu0 %v6921_v25  ;;  %2490 = vmatprep.mubr.bf16.mxu1 %v6833_v12  ;;  %v6230_v12 = vld [vmem:[#allocation5 + $0x4a4] ss:$16 sps:$4 sm:$0xff]  }
  0xd9   :  { %2057 = vmatpush1.bf16.msra.mxu0 %v6210_v45  ;;  %2636 = vmatpush1.bf16.msra.mxu1 %v6213_v26  ;;  %v156_v45 = vld [vmem:[#allocation2 + $0x248] sm:$0xff]  ;;  %v163_v26 = vld [vmem:[#allocation2 + $0x280] sm:$0xff] }
  0xda   :  { %2058 = vmatprep.subr.bf16.mxu0 %v6218_v28  ;;  %2637 = vmatprep.subr.bf16.mxu1 %v6221_v31  ;;  %v6243_v28 = vld [vmem:[#allocation5 + $0x2e8] ss:$16 sps:$4 sm:$0xff]   ;;  %v6248_v31 = vld [vmem:[#allocation5 + $0x504] ss:$16 sps:$4 sm:$0xff]   ;;  %v6945_v37 = vpack.c.bf16 %v163_v26, %v156_v45  ;;  %v6270_v26 = vld [vmem:[#allocation5 + $0x580] ss:$16 sps:$4 sm:$0xff]  }
  0xdd   :  { %2059 = vmatpush1.bf16.msra.mxu0 %v6216_v38  ;;  %2638 = vmatpush1.bf16.msra.mxu1 %v6219_v39  ;;  %v6249_v38 = vld [vmem:[#allocation5 + $0x308] ss:$16 sps:$4 sm:$0xff]   ;;  %v155_v39 = vld [vmem:[#allocation2 + $0x240] sm:$0xff] }
  0xde   :  { %2060 = vmatprep.subr.bf16.mxu0 %v6224_v40  ;;  %2639 = vmatprep.subr.bf16.mxu1 %v6227_v42  ;;  %v6254_v40 = vld [vmem:[#allocation5 + $0x524] ss:$16 sps:$4 sm:$0xff]   ;;  %v6257_v42 = vld [vmem:[#allocation5 + $0x32c] ss:$16 sps:$4 sm:$0xff]  }
  0xdf   :  { %1912 = vmatmul.mubr.bf16.gmra.mrb[8].mxu0 %v6927_v43  ;;  %2491 = vmatmul.mubr.bf16.gmra.mrb[40].mxu1 %v6841_v23  ;;  %v6234_v23 = vld [vmem:[#allocation5 + $0x4c0] ss:$16 sps:$4 sm:$0xff]  }
  0xe0   :  { %1921 = vmatprep.mubr.bf16.mxu0 %v6929_v50  ;;  %2500 = vmatprep.mubr.bf16.mxu1 %v6845_v34  ;;  %v6242_v34 = vld [vmem:[#allocation5 + $0x4e4] ss:$16 sps:$4 sm:$0xff]  }
  0xe1   :  { %2061 = vmatpush1.bf16.msra.mxu0 %v6222_v1  ;;  %2640 = vmatpush1.bf16.msra.mxu1 %v6225_v51  ;;  %v170_v1 = vld [vmem:[#allocation2 + $0x2b8] sm:$0xff]  ;;  %v177_v51 = vld [vmem:[#allocation2 + $0x2f0] sm:$0xff] }
  0xe2   :  { %2062 = vmatprep.subr.bf16.mxu0 %v6230_v12  ;;  %2641 = vmatprep.subr.bf16.mxu1 %v6233_v53  ;;  %v6255_v12 = vld [vmem:[#allocation5 + $0x328] ss:$16 sps:$4 sm:$0xff]   ;;  %v6260_v53 = vld [vmem:[#allocation5 + $0x544] ss:$16 sps:$4 sm:$0xff]  }
  0xe5   :  { %2063 = vmatpush1.bf16.msra.mxu0 %v6228_v3  ;;  %2642 = vmatpush1.bf16.msra.mxu1 %v6231_v4  ;;  %v6261_v3 = vld [vmem:[#allocation5 + $0x348] ss:$16 sps:$4 sm:$0xff]   ;;  %v6953_v4 = vpack.c.bf16 %v177_v51, %v170_v1  ;;  %v6282_v51 = vld [vmem:[#allocation5 + $0x5c0] ss:$16 sps:$4 sm:$0xff]  }
  0xe6   :  { %2064 = vmatprep.subr.bf16.mxu0 %v6236_v5  ;;  %2643 = vmatprep.subr.bf16.mxu1 %v6239_v6  ;;  %v6269_v5 = vld [vmem:[#allocation5 + $0x36c] ss:$16 sps:$4 sm:$0xff]   ;;  %v169_v6 = vld [vmem:[#allocation2 + $0x2b0] sm:$0xff] }
  0xe7   :  { %1922 = vmatmul.mubr.bf16.gmra.mrb[12].mxu0 %v6935_v9  ;;  %2501 = vmatmul.mubr.bf16.gmra.mrb[44].mxu1 %v6853_v47  ;;  %v6246_v47 = vld [vmem:[#allocation5 + $0x500] ss:$16 sps:$4 sm:$0xff]  }
  0xe8   :  { %1931 = vmatprep.mubr.bf16.mxu0 %v6937_v15  ;;  %2510 = vmatprep.mubr.bf16.mxu1 %v6857_v58  ;;  %v162_v58 = vld [vmem:[#allocation2 + $0x278] sm:$0xff] }
  0xe9   :  { %2065 = vmatpush1.bf16.msra.mxu0 %v6234_v23  ;;  %2644 = vmatpush1.bf16.msra.mxu1 %v6237_v10  ;;  %v6951_v60 = vpack.c.bf16 %v162_v58, %v155_v39  ;;  %v176_v23 = vld [vmem:[#allocation2 + $0x2e8] sm:$0xff]  ;;  %v191_v10 = vld [vmem:[#allocation2 + $0x360] sm:$0xff] }
  0xea   :  { %2066 = vmatprep.subr.bf16.mxu0 %v6242_v34  ;;  %2645 = vmatprep.subr.bf16.mxu1 %v6245_v11  ;;  %v6264_v34 = vld [vmem:[#allocation5 + $0x560] ss:$16 sps:$4 sm:$0xff]   ;;  %v6267_v11 = vld [vmem:[#allocation5 + $0x368] ss:$16 sps:$4 sm:$0xff]   ;;  %v6959_v45 = vpack.c.bf16 %v176_v23, %v169_v6  ;;  %v6296_v6 = vld [vmem:[#allocation5 + $0x604] ss:$16 sps:$4 sm:$0xff]  }
  0xeb   :  { %v6276_v39 = vld [vmem:[#allocation5 + $0x5a0] ss:$16 sps:$4 sm:$0xff]   ;;  %v6279_v58 = vld [vmem:[#allocation5 + $0x3a8] ss:$16 sps:$4 sm:$0xff]   ;;  %v6299_v23 = vld [vmem:[#allocation5 + $0x40c] ss:$16 sps:$4 sm:$0xff]  }
  0xed   :  { %2067 = vmatpush1.bf16.msra.mxu0 %v6240_v27  ;;  %2646 = vmatpush1.bf16.msra.mxu1 %v6243_v28  ;;  %v6273_v27 = vld [vmem:[#allocation5 + $0x388] ss:$16 sps:$4 sm:$0xff]  }
  0xee   :  { %2068 = vmatprep.subr.bf16.mxu0 %v6248_v31  ;;  %2647 = vmatprep.subr.bf16.mxu1 %v6251_v56  ;;  %v6281_v31 = vld [vmem:[#allocation5 + $0x3ac] ss:$16 sps:$4 sm:$0xff]   ;;  %v183_v56 = vld [vmem:[#allocation2 + $0x320] sm:$0xff] }
  0xef   :  { %1932 = vmatmul.mubr.bf16.gmra.mrb[16].mxu0 %v6943_v32  ;;  %2511 = vmatmul.mubr.bf16.gmra.mrb[48].mxu1 %v6865_v7  ;;  %v6266_v7 = vld [vmem:[#allocation5 + $0x564] ss:$16 sps:$4 sm:$0xff]  }
  0xf0   :  { %1941 = vmatprep.mubr.bf16.mxu0 %v6945_v37  ;;  %2520 = vmatprep.mubr.bf16.mxu1 %v6869_v20  ;;  %v184_v20 = vld [vmem:[#allocation2 + $0x328] sm:$0xff] }
  0xf1   :  { %2069 = vmatpush1.bf16.msra.mxu0 %v6246_v47  ;;  %2648 = vmatpush1.bf16.msra.mxu1 %v6249_v38  ;;  %v6961_v28 = vpack.c.bf16 %v191_v10, %v184_v20  ;;  %v190_v47 = vld [vmem:[#allocation2 + $0x358] sm:$0xff]  ;;  %v205_v38 = vld [vmem:[#allocation2 + $0x3d0] sm:$0xff] }
  0xf2   :  { %2070 = vmatprep.subr.bf16.mxu0 %v6254_v40  ;;  %2649 = vmatprep.subr.bf16.mxu1 %v6257_v42  ;;  %v6284_v40 = vld [vmem:[#allocation5 + $0x5c4] ss:$16 sps:$4 sm:$0xff]   ;;  %v6287_v42 = vld [vmem:[#allocation5 + $0x3cc] ss:$16 sps:$4 sm:$0xff]   ;;  %v6967_v1 = vpack.c.bf16 %v190_v47, %v183_v56 }
  0xf3   :  { %v254_v47 = vld [vmem:[#allocation2 + $0x558] sm:$0xff] }
  0xf5   :  { %2071 = vmatpush1.bf16.msra.mxu0 %v6252_v52  ;;  %2650 = vmatpush1.bf16.msra.mxu1 %v6255_v12  ;;  %v6285_v52 = vld [vmem:[#allocation5 + $0x3c8] ss:$16 sps:$4 sm:$0xff]  }
  0xf6   :  { %2072 = vmatprep.subr.bf16.mxu0 %v6260_v53  ;;  %2651 = vmatprep.subr.bf16.mxu1 %v6263_v54  ;;  %v6293_v53 = vld [vmem:[#allocation5 + $0x3ec] ss:$16 sps:$4 sm:$0xff]   ;;  %v197_v54 = vld [vmem:[#allocation2 + $0x390] sm:$0xff] }
  0xf7   :  { %1942 = vmatmul.mubr.bf16.gmra.mrb[20].mxu0 %v6951_v60  ;;  %2521 = vmatmul.mubr.bf16.gmra.mrb[52].mxu1 %v6877_v33  ;;  %v6278_v33 = vld [vmem:[#allocation5 + $0x5a4] ss:$16 sps:$4 sm:$0xff]  }
  0xf8   :  { %1951 = vmatprep.mubr.bf16.mxu0 %v6953_v4  ;;  %2530 = vmatprep.mubr.bf16.mxu1 %v6881_v44  ;;  %v198_v44 = vld [vmem:[#allocation2 + $0x398] sm:$0xff] }
  0xf9   :  { %2073 = vmatpush1.bf16.msra.mxu0 %v6258_v61  ;;  %2652 = vmatpush1.bf16.msra.mxu1 %v6261_v3  ;;  %v6969_v12 = vpack.c.bf16 %v205_v38, %v198_v44  ;;  %v204_v61 = vld [vmem:[#allocation2 + $0x3c8] sm:$0xff]  ;;  %v219_v3 = vld [vmem:[#allocation2 + $0x440] sm:$0xff]  ;;  %v261_v44 = vld [vmem:[#allocation2 + $0x590] sm:$0xff] }
  0xfa   :  { %2074 = vmatprep.subr.bf16.mxu0 %v6266_v7  ;;  %2653 = vmatprep.subr.bf16.mxu1 %v6269_v5  ;;  %v6288_v7 = vld [vmem:[#allocation5 + $0x5e0] ss:$16 sps:$4 sm:$0xff]   ;;  %v6291_v5 = vld [vmem:[#allocation5 + $0x3e8] ss:$16 sps:$4 sm:$0xff]   ;;  %v6975_v20 = vpack.c.bf16 %v204_v61, %v197_v54 }
  0xfb   :  { %v288_v54 = vld [vmem:[#allocation2 + $0x668] sm:$0xff] }
  0xfc   :  { %v296_v61 = vld [vmem:[#allocation2 + $0x6a8] sm:$0xff] }
  0xfd   :  { %2075 = vmatpush1.bf16.msra.mxu0 %v6264_v34  ;;  %2654 = vmatpush1.bf16.msra.mxu1 %v6267_v11  ;;  %v218_v34 = vld [vmem:[#allocation2 + $0x438] sm:$0xff]  ;;  %v233_v11 = vld [vmem:[#allocation2 + $0x4b0] sm:$0xff] }
  0xfe   :  { %2076 = vmatprep.subr.bf16.mxu0 %v6272_v17  ;;  %2655 = vmatprep.subr.bf16.mxu1 %v6275_v18 }
  0xff   :  { %1952 = vmatmul.mubr.bf16.gmra.mrb[24].mxu0 %v6959_v45  ;;  %2531 = vmatmul.mubr.bf16.gmra.mrb[56].mxu1 %v6889_v63  ;;  %v6290_v63 = vld [vmem:[#allocation5 + $0x5e4] ss:$16 sps:$4 sm:$0xff]  }
 0x100   :  { %1961 = vmatprep.mubr.bf16.mxu0 %v6961_v28  ;;  %2540 = vmatprep.mubr.bf16.mxu1 %v6893_v14  ;;  %v212_v14 = vld [vmem:[#allocation2 + $0x408] sm:$0xff] }
 0x101   :  { %2077 = vmatpush1.bf16.msra.mxu0 %v6270_v26  ;;  %2656 = vmatpush1.bf16.msra.mxu1 %v6273_v27  ;;  %v6977_v10 = vpack.c.bf16 %v219_v3, %v212_v14  ;;  %v225_v26 = vld [vmem:[#allocation2 + $0x470] sm:$0xff]  ;;  %v232_v27 = vld [vmem:[#allocation2 + $0x4a8] sm:$0xff] }
 0x102   :  { %2078 = vmatprep.subr.bf16.mxu0 %v6278_v33  ;;  %2657 = vmatprep.subr.bf16.mxu1 %v6281_v31  ;;  %v240_v33 = vld [vmem:[#allocation2 + $0x4e8] sm:$0xff]  ;;  %v247_v31 = vld [vmem:[#allocation2 + $0x520] sm:$0xff] }
 0x103   :  { %v6993_v56 = vpack.c.bf16 %v247_v31, %v240_v33  ;;  %v6302_v33 = vld [vmem:[#allocation5 + $0x42c] ss:$16 sps:$4 sm:$0xff]  }
 0x104   :  { %v108_v31 = vld [vmem:[#allocation2 + $0xc8] sm:$0xff] }
 0x105   :  { %2079 = vmatpush1.bf16.msra.mxu0 %v6276_v39  ;;  %2658 = vmatpush1.bf16.msra.mxu1 %v6279_v58  ;;  %v7001_v39 = vpack.c.bf16 %v261_v44, %v254_v47  ;;  %v268_v58 = vld [vmem:[#allocation2 + $0x5c8] sm:$0xff] }
 0x106   :  { %2080 = vmatprep.subr.bf16.mxu0 %v6284_v40  ;;  %2659 = vmatprep.subr.bf16.mxu1 %v6287_v42  ;;  %v275_v40 = vld [vmem:[#allocation2 + $0x600] sm:$0xff]  ;;  %v6305_v47 = vld [vmem:[#allocation5 + $0x44c] ss:$16 sps:$4 sm:$0xff]  }
 0x107   :  { %1962 = vmatmul.mubr.bf16.gmra.mrb[28].mxu0 %v6967_v1  ;;  %2541 = vmatmul.mubr.bf16.gmra.mrb[60].mxu1 %v6901_v29  ;;  %v211_v29 = vld [vmem:[#allocation2 + $0x400] sm:$0xff]  ;;  %v7009_v42 = vpack.c.bf16 %v275_v40, %v268_v58  ;;  %v122_v58 = vld [vmem:[#allocation2 + $0x138] sm:$0xff] }
 0x108   :  { %1971 = vmatprep.mubr.bf16.mxu0 %v6969_v12  ;;  %2550 = vmatprep.mubr.bf16.mxu1 %v6813_v19  ;;  %v226_v19 = vld [vmem:[#allocation2 + $0x478] sm:$0xff]  ;;  %v6983_v17 = vpack.c.bf16 %v218_v34, %v211_v29 }
 0x109   :  { %2081 = vmatpush1.bf16.msra.mxu0 %v6282_v51  ;;  %2660 = vmatpush1.bf16.msra.mxu1 %v6285_v52  ;;  %v6985_v18 = vpack.c.bf16 %v233_v11, %v226_v19  ;;  %v274_v51 = vld [vmem:[#allocation2 + $0x5f8] sm:$0xff]  ;;  %v6294_v11 = vld [vmem:[#allocation5 + $0x600] ss:$16 sps:$4 sm:$0xff]  }
 0x10a   :  { %2082 = vmatprep.subr.bf16.mxu0 %v6290_v63  ;;  %2661 = vmatprep.subr.bf16.mxu1 %v6293_v53  ;;  %v282_v52 = vld [vmem:[#allocation2 + $0x638] sm:$0xff] }
 0x10b   :  { %v94_v29 = vld [vmem:[#allocation2 + $0x58] sm:$0xff] }
 0x10c   :  { %v102_v34 = vld [vmem:[#allocation2 + $0x98] sm:$0xff] }
 0x10d   :  { %2083 = vmatpush1.bf16.msra.mxu0 %v6288_v7  ;;  %2662 = vmatpush1.bf16.msra.mxu1 %v6291_v5  ;;  %v302_v7 = vld [vmem:[#allocation2 + $0x6d8] sm:$0xff]  ;;  %v88_v5 = vld [vmem:[#allocation2 + $0x28] sm:$0xff] }
 0x10e   :  { %2245 = vmatprep.subr.bf16.mxu0 %v6296_v6  ;;  %2824 = vmatprep.subr.bf16.mxu1 %v6299_v23  ;;  %v130_v40 = vld [vmem:[#allocation2 + $0x178] sm:$0xff] }
 0x10f   :  { %1972 = vmatmul.mubr.bf16.gmra.mrb[32].mxu0 %v6975_v20  ;;  %2551 = vmatmul.mubr.bf16.gmra.mrb[64].mxu1 %v6819_v46  ;;  %v6991_v46 = vpack.c.bf16 %v232_v27, %v225_v26  ;;  %v6297_v26 = vld [vmem:[#allocation5 + $0x408] ss:$16 sps:$4 sm:$0xff]  }
 0x110   :  { %1981 = vmatprep.mubr.bf16.mxu0 %v6977_v10  ;;  %2560 = vmatprep.mubr.bf16.mxu1 %v6823_v57  ;;  %v239_v57 = vld [vmem:[#allocation2 + $0x4e0] sm:$0xff] }
 0x117   :  { %1982 = vmatmul.mubr.bf16.gmra.mrb[36].mxu0 %v6983_v17  ;;  %2561 = vmatmul.mubr.bf16.gmra.mrb[68].mxu1 %v6831_v2  ;;  %v246_v2 = vld [vmem:[#allocation2 + $0x518] sm:$0xff] }
 0x118   :  { %1991 = vmatprep.mubr.bf16.mxu0 %v6985_v18  ;;  %2570 = vmatprep.mubr.bf16.mxu1 %v6835_v13  ;;  %v6999_v38 = vpack.c.bf16 %v246_v2, %v239_v57  ;;  %v253_v13 = vld [vmem:[#allocation2 + $0x550] sm:$0xff]  ;;  %v116_v57 = vld [vmem:[#allocation2 + $0x108] sm:$0xff]  ;;  %v123_v2 = vld [vmem:[#allocation2 + $0x140] sm:$0xff] }
 0x11f   :  { %1992 = vmatmul.mubr.bf16.gmra.mrb[40].mxu0 %v6991_v46  ;;  %2571 = vmatmul.mubr.bf16.gmra.mrb[72].mxu1 %v6843_v24  ;;  %v260_v24 = vld [vmem:[#allocation2 + $0x588] sm:$0xff] }
 0x120   :  { %2001 = vmatprep.mubr.bf16.mxu0 %v6993_v56  ;;  %2580 = vmatprep.mubr.bf16.mxu1 %v6847_v35  ;;  %v7007_v35 = vpack.c.bf16 %v260_v24, %v253_v13  ;;  %v7049_v13 = vpack.c.bf16 %v123_v2, %v116_v57  ;;  %v6303_v24 = vld [vmem:[#allocation5 + $0x448] ss:$16 sps:$4 sm:$0xff]   ;;  %v6323_v2 = vld [vmem:[#allocation5 + $0x50c] ss:$16 sps:$4 sm:$0xff]  }
 0x127   :  { %2002 = vmatmul.mubr.bf16.gmra.mrb[44].mxu0 %v6999_v38  ;;  %2581 = vmatmul.mubr.bf16.gmra.mrb[76].mxu1 %v6855_v48  ;;  %v267_v48 = vld [vmem:[#allocation2 + $0x5c0] sm:$0xff] }
 0x128   :  { %2011 = vmatprep.mubr.bf16.mxu0 %v7001_v39  ;;  %2590 = vmatprep.mubr.bf16.mxu1 %v6859_v59  ;;  %v289_v59 = vld [vmem:[#allocation2 + $0x670] sm:$0xff]  ;;  %v7015_v63 = vpack.c.bf16 %v274_v51, %v267_v48  ;;  %v6306_v51 = vld [vmem:[#allocation5 + $0x468] ss:$16 sps:$4 sm:$0xff]  }
 0x129   :  { %v7017_v53 = vpack.c.bf16 %v289_v59, %v282_v52  ;;  %v137_v48 = vld [vmem:[#allocation2 + $0x1b0] sm:$0xff]  ;;  %v6311_v52 = vld [vmem:[#allocation5 + $0x48c] ss:$16 sps:$4 sm:$0xff]  }
 0x12f   :  { %2012 = vmatmul.mubr.bf16.gmra.mrb[48].mxu0 %v7007_v35  ;;  %2591 = vmatmul.mubr.bf16.gmra.mrb[80].mxu1 %v6867_v8  ;;  %v281_v8 = vld [vmem:[#allocation2 + $0x630] sm:$0xff] }
 0x130   :  { %2021 = vmatprep.mubr.bf16.mxu0 %v7009_v42  ;;  %2600 = vmatprep.mubr.bf16.mxu1 %v6871_v21  ;;  %v303_v21 = vld [vmem:[#allocation2 + $0x6e0] sm:$0xff]  ;;  %v7023_v14 = vpack.c.bf16 %v288_v54, %v281_v8  ;;  %v7057_v8 = vpack.c.bf16 %v137_v48, %v130_v40  ;;  %v6309_v54 = vld [vmem:[#allocation5 + $0x488] ss:$16 sps:$4 sm:$0xff]   ;;  %v157_v40 = vld [vmem:[#allocation2 + $0x250] sm:$0xff] }
 0x131   :  { %v7025_v3 = vpack.c.bf16 %v303_v21, %v296_v61  ;;  %v136_v61 = vld [vmem:[#allocation2 + $0x1a8] sm:$0xff] }
 0x132   :  { %v144_v21 = vld [vmem:[#allocation2 + $0x1e8] sm:$0xff] }
 0x133   :  { %v164_v48 = vld [vmem:[#allocation2 + $0x288] sm:$0xff] }
 0x137   :  { %2022 = vmatmul.mubr.bf16.gmra.mrb[52].mxu0 %v7015_v63  ;;  %2601 = vmatmul.mubr.bf16.gmra.mrb[84].mxu1 %v6879_v36  ;;  %v295_v36 = vld [vmem:[#allocation2 + $0x6a0] sm:$0xff] }
 0x138   :  { %2031 = vmatprep.mubr.bf16.mxu0 %v7017_v53  ;;  %2610 = vmatprep.mubr.bf16.mxu1 %v6883_v49  ;;  %v95_v49 = vld [vmem:[#allocation2 + $0x60] sm:$0xff]  ;;  %v7031_v6 = vpack.c.bf16 %v302_v7, %v295_v36  ;;  %v6312_v7 = vld [vmem:[#allocation5 + $0x4a8] ss:$16 sps:$4 sm:$0xff]  }
 0x139   :  { %v7033_v23 = vpack.c.bf16 %v95_v49, %v88_v5  ;;  %v151_v36 = vld [vmem:[#allocation2 + $0x220] sm:$0xff]  ;;  %v6317_v49 = vld [vmem:[#allocation5 + $0x4cc] ss:$16 sps:$4 sm:$0xff]  }
 0x13f   :  { %2032 = vmatmul.mubr.bf16.gmra.mrb[56].mxu0 %v7023_v14  ;;  %2611 = vmatmul.mubr.bf16.gmra.mrb[88].mxu1 %v6891_v0  ;;  %v87_v0 = vld [vmem:[#allocation2 + $0x20] sm:$0xff] }
 0x140   :  { %2041 = vmatprep.mubr.bf16.mxu0 %v7025_v3  ;;  %2620 = vmatprep.mubr.bf16.mxu1 %v6895_v16  ;;  %v109_v16 = vld [vmem:[#allocation2 + $0xd0] sm:$0xff]  ;;  %v7039_v19 = vpack.c.bf16 %v94_v29, %v87_v0 }
 0x141   :  { %v7041_v27 = vpack.c.bf16 %v109_v16, %v102_v34 }
 0x147   :  { %2042 = vmatmul.mubr.bf16.gmra.mrb[60].mxu0 %v7031_v6  ;;  %2621 = vmatmul.mubr.bf16.gmra.mrb[92].mxu1 %v6903_v30  ;;  %v101_v30 = vld [vmem:[#allocation2 + $0x90] sm:$0xff] }
 0x148   :  { %2084 = vmatprep.mubr.bf16.mxu0 %v7033_v23  ;;  %2663 = vmatprep.mubr.bf16.mxu1 %v6905_v41  ;;  %v6300_v41 = vld [vmem:[#allocation5 + $0x428] ss:$16 sps:$4 sm:$0xff]   ;;  %v7047_v44 = vpack.c.bf16 %v108_v31, %v101_v30  ;;  %v165_v31 = vld [vmem:[#allocation2 + $0x290] sm:$0xff] }
 0x149   :  { %v158_v30 = vld [vmem:[#allocation2 + $0x258] sm:$0xff] }
 0x14f   :  { %2085 = vmatmul.mubr.bf16.vlgmr.msra.gmra.mrb[0].mxu0 %v7039_v19  ;;  %2664 = vmatmul.mubr.bf16.vlgmr.msra.gmra.mrb[32].mxu1 %v6911_v55  ;;  %v6308_v55 = vld [vmem:[#allocation5 + $0x46c] ss:$16 sps:$4 sm:$0xff]  }
 0x150   :  { %2246 = vmatpush1.bf16.msra.mxu0 %v6294_v11  ;;  %2825 = vmatpush1.bf16.msra.mxu1 %v6297_v26  ;;  %v6320_v11 = vld [vmem:[#allocation5 + $0x4ec] ss:$16 sps:$4 sm:$0xff]   ;;  %v143_v26 = vld [vmem:[#allocation2 + $0x1e0] sm:$0xff] }
 0x151   :  { %2094 = vmatprep.mubr.bf16.mxu0 %v7041_v27  ;;  %2673 = vmatprep.mubr.bf16.mxu1 %v6913_v62  ;;  %v115_v62 = vld [vmem:[#allocation2 + $0x100] sm:$0xff] }
 0x152   :  { %2826 = vmatprep.subr.bf16.mxu1 %v6302_v33  ;;  %v7055_v59 = vpack.c.bf16 %v122_v58, %v115_v62  ;;  %v150_v33 = vld [vmem:[#allocation2 + $0x218] sm:$0xff] }
 0x153   :  { %v6326_v58 = vld [vmem:[#allocation5 + $0x52c] ss:$16 sps:$4 sm:$0xff]  }
 0x154   :  { %2827 = vmatpush1.bf16.msra.mxu1 %v6300_v41  ;;  %v6318_v41 = vld [vmem:[#allocation5 + $0x4e8] ss:$16 sps:$4 sm:$0xff]  }
 0x155   :  { %2828 = vmatprep.subr.bf16.mxu1 %v6305_v47 }
 0x157   :  { %2095 = vmatmul.mubr.bf16.gmra.mrb[4].mxu0 %v7047_v44  ;;  %2674 = vmatmul.mubr.bf16.gmra.mrb[36].mxu1 %v6919_v22  ;;  %v6314_v22 = vld [vmem:[#allocation5 + $0x4ac] ss:$16 sps:$4 sm:$0xff]  }
 0x158   :  { %2104 = vmatprep.mubr.bf16.mxu0 %v7049_v13  ;;  %2683 = vmatprep.mubr.bf16.mxu1 %v6921_v25  ;;  %v129_v25 = vld [vmem:[#allocation2 + $0x170] sm:$0xff] }
 0x159   :  { %2829 = vmatpush1.bf16.msra.mxu1 %v6303_v24  ;;  %v7067_v29 = vpack.c.bf16 %v136_v61, %v129_v25  ;;  %v7083_v24 = vpack.c.bf16 %v150_v33, %v143_v26  ;;  %v6329_v25 = vld [vmem:[#allocation5 + $0x54c] ss:$16 sps:$4 sm:$0xff]   ;;  %v193_v33 = vld [vmem:[#allocation2 + $0x370] sm:$0xff] }
 0x15a   :  { %2830 = vmatprep.subr.bf16.mxu1 %v6308_v55  ;;  %v186_v26 = vld [vmem:[#allocation2 + $0x338] sm:$0xff] }
 0x15d   :  { %2831 = vmatpush1.bf16.msra.mxu1 %v6306_v51  ;;  %v172_v51 = vld [vmem:[#allocation2 + $0x2c8] sm:$0xff] }
 0x15e   :  { %2832 = vmatprep.subr.bf16.mxu1 %v6311_v52  ;;  %v179_v52 = vld [vmem:[#allocation2 + $0x300] sm:$0xff] }
 0x15f   :  { %2105 = vmatmul.mubr.bf16.gmra.mrb[8].mxu0 %v7055_v59  ;;  %2684 = vmatmul.mubr.bf16.gmra.mrb[40].mxu1 %v6927_v43  ;;  %v7071_v43 = vpack.c.bf16 %v151_v36, %v144_v21  ;;  %v7099_v21 = vpack.c.bf16 %v164_v48, %v157_v40  ;;  %v6338_v48 = vld [vmem:[#allocation5 + $0x5ac] ss:$16 sps:$4 sm:$0xff]  }
 0x160   :  { %2114 = vmatprep.mubr.bf16.mxu0 %v7057_v8  ;;  %2693 = vmatprep.mubr.bf16.mxu1 %v6929_v50  ;;  %v6315_v50 = vld [vmem:[#allocation5 + $0x4c8] ss:$16 sps:$4 sm:$0xff]  }
 0x161   :  { %2833 = vmatpush1.bf16.msra.mxu1 %v6309_v54  ;;  %v6324_v54 = vld [vmem:[#allocation5 + $0x528] ss:$16 sps:$4 sm:$0xff]  }
 0x162   :  { %v7063_v5 = vpop.f32.mrb[0].mxu1  ;;  %2834 = vmatprep.subr.bf16.mxu1 %v6314_v22 }
 0x163   :  { %v7065_v0 = vpop.f32.mrb[1].mxu1 }
 0x164   :  { %v7069_v34 = vpop.f32.mrb[2].mxu1 }
 0x165   :  { %v7073_v16 = vpop.f32.mrb[3].mxu1  ;;  %2835 = vmatpush1.bf16.msra.mxu1 %v6312_v7 }
 0x166   :  { %2836 = vmatprep.subr.bf16.mxu1 %v6317_v49  ;;  %v6332_v49 = vld [vmem:[#allocation5 + $0x56c] ss:$16 sps:$4 sm:$0xff]  }
 0x167   :  { %2115 = vmatmul.mubr.bf16.gmra.mrb[12].mxu0 %v7067_v29  ;;  %2694 = vmatmul.mubr.bf16.gmra.mrb[44].mxu1 %v6935_v9  ;;  %v7087_v9 = vpack.c.bf16 %v165_v31, %v158_v30  ;;  %v6330_v30 = vld [vmem:[#allocation5 + $0x568] ss:$16 sps:$4 sm:$0xff]  }
 0x168   :  { %2124 = vmatprep.mubr.bf16.mxu0 %v7071_v43  ;;  %2703 = vmatprep.mubr.bf16.mxu1 %v6937_v15  ;;  %v6321_v15 = vld [vmem:[#allocation5 + $0x508] ss:$16 sps:$4 sm:$0xff]  }
 0x169   :  { %2837 = vmatpush1.bf16.msra.mxu1 %v6315_v50  ;;  %v171_v50 = vld [vmem:[#allocation2 + $0x2c0] sm:$0xff] }
 0x16a   :  { %v7079_v57 = vpop.f32.mrb[4].mxu1  ;;  %2838 = vmatprep.subr.bf16.mxu1 %v6320_v11  ;;  %v178_v11 = vld [vmem:[#allocation2 + $0x2f8] sm:$0xff] }
 0x16b   :  { %v7081_v47 = vpop.f32.mrb[5].mxu1 }
 0x16c   :  { %v7085_v55 = vpop.f32.mrb[6].mxu1 }
 0x16d   :  { %v7089_v62 = vpop.f32.mrb[7].mxu1  ;;  %2839 = vmatpush1.bf16.msra.mxu1 %v6318_v41  ;;  %v6335_v41 = vld [vmem:[#allocation5 + $0x58c] ss:$16 sps:$4 sm:$0xff]  }
 0x16e   :  { %2840 = vmatprep.subr.bf16.mxu1 %v6323_v2 }
 0x16f   :  { %2125 = vmatmul.mubr.bf16.gmra.mrb[16].mxu0 %v7083_v24  ;;  %2704 = vmatmul.mubr.bf16.gmra.mrb[48].mxu1 %v6943_v32  ;;  %v7103_v32 = vpack.c.bf16 %v179_v52, %v172_v51  ;;  %v185_v51 = vld [vmem:[#allocation2 + $0x330] sm:$0xff]  ;;  %v192_v52 = vld [vmem:[#allocation2 + $0x368] sm:$0xff] }
 0x170   :  { %2134 = vmatprep.mubr.bf16.mxu0 %v7087_v9  ;;  %2713 = vmatprep.mubr.bf16.mxu1 %v6945_v37  ;;  %v6327_v37 = vld [vmem:[#allocation5 + $0x548] ss:$16 sps:$4 sm:$0xff]  }
 0x171   :  { %2841 = vmatpush1.bf16.msra.mxu1 %v6321_v15  ;;  %v7115_v15 = vpack.c.bf16 %v178_v11, %v171_v50  ;;  %v6341_v50 = vld [vmem:[#allocation5 + $0x5cc] ss:$16 sps:$4 sm:$0xff]  }
 0x172   :  { %v7095_v22 = vpop.f32.mrb[8].mxu1  ;;  %2842 = vmatprep.subr.bf16.mxu1 %v6326_v58 }
 0x173   :  { %v7097_v61 = vpop.f32.mrb[9].mxu1 }
 0x174   :  { %v7101_v36 = vpop.f32.mrb[10].mxu1 }
 0x175   :  { %v7105_v7 = vpop.f32.mrb[11].mxu1  ;;  %2843 = vmatpush1.bf16.msra.mxu1 %v6324_v54  ;;  %v200_v54 = vld [vmem:[#allocation2 + $0x3a8] sm:$0xff] }
 0x176   :  { %2844 = vmatprep.subr.bf16.mxu1 %v6329_v25  ;;  %v207_v25 = vld [vmem:[#allocation2 + $0x3e0] sm:$0xff] }
 0x177   :  { %2135 = vmatmul.mubr.bf16.gmra.mrb[20].mxu0 %v7099_v21  ;;  %2714 = vmatmul.mubr.bf16.gmra.mrb[52].mxu1 %v6951_v60  ;;  %v7119_v60 = vpack.c.bf16 %v193_v33, %v186_v26  ;;  %v7131_v26 = vpack.c.bf16 %v192_v52, %v185_v51  ;;  %v214_v51 = vld [vmem:[#allocation2 + $0x418] sm:$0xff]  ;;  %v221_v52 = vld [vmem:[#allocation2 + $0x450] sm:$0xff] }
 0x178   :  { %2144 = vmatprep.mubr.bf16.mxu0 %v7103_v32  ;;  %2723 = vmatprep.mubr.bf16.mxu1 %v6953_v4  ;;  %v6333_v4 = vld [vmem:[#allocation5 + $0x588] ss:$16 sps:$4 sm:$0xff]  }
 0x179   :  { %2845 = vmatpush1.bf16.msra.mxu1 %v6327_v37  ;;  %v6336_v37 = vld [vmem:[#allocation5 + $0x5a8] ss:$16 sps:$4 sm:$0xff]  }
 0x17a   :  { %v7111_v31 = vpop.f32.mrb[12].mxu1  ;;  %2846 = vmatprep.subr.bf16.mxu1 %v6332_v49 }
 0x17b   :  { %v7113_v2 = vpop.f32.mrb[13].mxu1 }
 0x17c   :  { %v7117_v58 = vpop.f32.mrb[14].mxu1 }
 0x17d   :  { %v7121_v40 = vpop.f32.mrb[15].mxu1  ;;  %2847 = vmatpush1.bf16.msra.mxu1 %v6330_v30 }
 0x17e   :  { %2848 = vmatprep.subr.bf16.mxu1 %v6335_v41  ;;  %v6344_v41 = vld [vmem:[#allocation5 + $0x5ec] ss:$16 sps:$4 sm:$0xff]  }
 0x17f   :  { %2145 = vmatmul.mubr.bf16.gmra.mrb[24].mxu0 %v7115_v15  ;;  %2724 = vmatmul.mubr.bf16.gmra.mrb[56].mxu1 %v6959_v45  ;;  %v7135_v45 = vpack.c.bf16 %v207_v25, %v200_v54  ;;  %v6342_v54 = vld [vmem:[#allocation5 + $0x5e8] ss:$16 sps:$4 sm:$0xff]  }
 0x180   :  { %2154 = vmatprep.mubr.bf16.mxu0 %v7119_v60  ;;  %2733 = vmatprep.mubr.bf16.mxu1 %v6961_v28  ;;  %v6339_v28 = vld [vmem:[#allocation5 + $0x5c8] ss:$16 sps:$4 sm:$0xff]  }
 0x181   :  { %2849 = vmatpush1.bf16.msra.mxu1 %v6333_v4  ;;  %v199_v4 = vld [vmem:[#allocation2 + $0x3a0] sm:$0xff] }
 0x182   :  { %v7127_v49 = vpop.f32.mrb[16].mxu1  ;;  %2850 = vmatprep.subr.bf16.mxu1 %v6338_v48  ;;  %v206_v48 = vld [vmem:[#allocation2 + $0x3d8] sm:$0xff] }
 0x183   :  { %v7129_v11 = vpop.f32.mrb[17].mxu1 }
 0x184   :  { %7965 = vst [vmem:[#allocation15_spill] sm:$0xff] %v7129_v11  ;;  %v7133_v33 = vpop.f32.mrb[18].mxu1 }
 0x185   :  { %7966 = vst [vmem:[#allocation16_spill] sm:$0xff] %v7133_v33  ;;  %v7137_v30 = vpop.f32.mrb[19].mxu1  ;;  %2851 = vmatpush1.bf16.msra.mxu1 %v6336_v37  ;;  %v6347_v37 = vld [vmem:[#allocation5 + $0x60c] ss:$16 sps:$4 sm:$0xff]  }
 0x186   :  { %7967 = vst [vmem:[#allocation17_spill] sm:$0xff] %v7137_v30  ;;  %2852 = vmatprep.subr.bf16.mxu1 %v6341_v50  ;;  %v7147_v30 = vpack.c.bf16 %v206_v48, %v199_v4  ;;  %v235_v4 = vld [vmem:[#allocation2 + $0x4c0] sm:$0xff] }
 0x187   :  { %2155 = vmatmul.mubr.bf16.gmra.mrb[28].mxu0 %v7131_v26  ;;  %2734 = vmatmul.mubr.bf16.gmra.mrb[60].mxu1 %v6967_v1  ;;  %v7151_v1 = vpack.c.bf16 %v221_v52, %v214_v51 }
 0x188   :  { %2164 = vmatprep.mubr.bf16.mxu0 %v7135_v45  ;;  %2743 = vmatprep.mubr.bf16.mxu1 %v6969_v12  ;;  %v213_v12 = vld [vmem:[#allocation2 + $0x410] sm:$0xff] }
 0x189   :  { %2853 = vmatpush1.bf16.msra.mxu1 %v6339_v28  ;;  %v220_v28 = vld [vmem:[#allocation2 + $0x448] sm:$0xff] }
 0x18a   :  { %v7143_v25 = vpop.f32.mrb[20].mxu1  ;;  %2854 = vmatprep.subr.bf16.mxu1 %v6344_v41  ;;  %v228_v41 = vld [vmem:[#allocation2 + $0x488] sm:$0xff]  ;;  %v7163_v52 = vpack.c.bf16 %v220_v28, %v213_v12 }
 0x18b   :  { %v7145_v50 = vpop.f32.mrb[21].mxu1 }
 0x18c   :  { %v7149_v33 = vpop.f32.mrb[22].mxu1 }
 0x18d   :  { %7968 = vst [vmem:[#allocation18_spill] sm:$0xff] %v7149_v33  ;;  %v7153_v11 = vpop.f32.mrb[23].mxu1  ;;  %2855 = vmatpush1.bf16.msra.mxu1 %v6342_v54 }
 0x18e   :  { %7969 = vst [vmem:[#allocation19_spill] sm:$0xff] %v7153_v11  ;;  %3017 = vmatprep.subr.bf16.mxu1 %v6347_v37  ;;  %v7167_v37 = vpack.c.bf16 %v235_v4, %v228_v41 }
 0x18f   :  { %2165 = vmatmul.mubr.bf16.gmra.mrb[32].mxu0 %v7147_v30  ;;  %2744 = vmatmul.mubr.bf16.gmra.mrb[64].mxu1 %v6975_v20  ;;  %v227_v20 = vld [vmem:[#allocation2 + $0x480] sm:$0xff] }
 0x190   :  { %2174 = vmatprep.mubr.bf16.mxu0 %v7151_v1  ;;  %2753 = vmatprep.mubr.bf16.mxu1 %v6977_v10  ;;  %v234_v10 = vld [vmem:[#allocation2 + $0x4b8] sm:$0xff] }
 0x191   :  { %v7179_v41 = vpack.c.bf16 %v234_v10, %v227_v20 }
 0x192   :  { %v7159_v48 = vpop.f32.mrb[24].mxu1 }
 0x193   :  { %7970 = vst [vmem:[#allocation20_spill] sm:$0xff] %v7159_v48  ;;  %v7161_v51 = vpop.f32.mrb[25].mxu1  ;;  %v242_v48 = vld [vmem:[#allocation2 + $0x4f8] sm:$0xff] }
 0x194   :  { %7971 = vst [vmem:[#allocation21_spill] sm:$0xff] %v7161_v51  ;;  %v7165_v54 = vpop.f32.mrb[26].mxu1  ;;  %v249_v51 = vld [vmem:[#allocation2 + $0x530] sm:$0xff] }
 0x195   :  { %7972 = vst [vmem:[#allocation22_spill] sm:$0xff] %v7165_v54  ;;  %v7169_v11 = vpop.f32.mrb[27].mxu1 }
 0x196   :  { %7973 = vst [vmem:[#allocation23_spill] sm:$0xff] %v7169_v11  ;;  %v7183_v11 = vpack.c.bf16 %v249_v51, %v242_v48  ;;  %v6350_v48 = vld [vmem:[#allocation7 + $0x4] ss:$8 sps:$4 sm:$0xff]   ;;  %v262_v51 = vld [vmem:[#allocation2 + $0x598] sm:$0xff] }
 0x197   :  { %2175 = vmatmul.mubr.bf16.gmra.mrb[36].mxu0 %v7163_v52  ;;  %2754 = vmatmul.mubr.bf16.gmra.mrb[68].mxu1 %v6983_v17  ;;  %v241_v17 = vld [vmem:[#allocation2 + $0x4f0] sm:$0xff] }
 0x198   :  { %2184 = vmatprep.mubr.bf16.mxu0 %v7167_v37  ;;  %2763 = vmatprep.mubr.bf16.mxu1 %v6985_v18  ;;  %v248_v18 = vld [vmem:[#allocation2 + $0x528] sm:$0xff] }
 0x199   :  { %v7191_v20 = vpack.c.bf16 %v248_v18, %v241_v17  ;;  %3798 = vmatprep.subr.bf16.mxu0 %v6350_v48  ;;  %v298_v48 = vld [vmem:[#allocation2 + $0x6b8] sm:$0xff] }
 0x19a   :  { %v7175_v12 = vpop.f32.mrb[28].mxu1 }
 0x19b   :  { %7974 = vst [vmem:[#allocation24_spill] sm:$0xff] %v7175_v12  ;;  %v7177_v28 = vpop.f32.mrb[29].mxu1  ;;  %v256_v12 = vld [vmem:[#allocation2 + $0x568] sm:$0xff] }
 0x19c   :  { %7975 = vst [vmem:[#allocation25_spill] sm:$0xff] %v7177_v28  ;;  %v7181_v4 = vpop.f32.mrb[30].mxu1  ;;  %v263_v28 = vld [vmem:[#allocation2 + $0x5a0] sm:$0xff] }
 0x19d   :  { %7976 = vst [vmem:[#allocation26_spill] sm:$0xff] %v7181_v4  ;;  %v7185_v54 = vpop.f32.mrb[31].mxu1  ;;  %v7193_v10 = vpack.c.bf16 %v263_v28, %v256_v12  ;;  %v276_v12 = vld [vmem:[#allocation2 + $0x608] sm:$0xff]  ;;  %v291_v28 = vld [vmem:[#allocation2 + $0x680] sm:$0xff] }
 0x19e   :  { %7977 = vst [vmem:[#allocation27_spill] sm:$0xff] %v7185_v54  ;;  %v277_v54 = vld [vmem:[#allocation2 + $0x610] sm:$0xff] }
 0x19f   :  { %2185 = vmatmul.mubr.bf16.gmra.mrb[40].mxu0 %v7179_v41  ;;  %2764 = vmatmul.mubr.bf16.gmra.mrb[72].mxu1 %v6991_v46  ;;  %v255_v46 = vld [vmem:[#allocation2 + $0x560] sm:$0xff] }
 0x1a0   :  { %2194 = vmatprep.mubr.bf16.mxu0 %v7183_v11  ;;  %2773 = vmatprep.mubr.bf16.mxu1 %v6993_v56  ;;  %v270_v56 = vld [vmem:[#allocation2 + $0x5d8] sm:$0xff]  ;;  %v7199_v4 = vpack.c.bf16 %v262_v51, %v255_v46 }
 0x1a1   :  { %v7201_v17 = vpack.c.bf16 %v277_v54, %v270_v56  ;;  %v290_v54 = vld [vmem:[#allocation2 + $0x678] sm:$0xff]  ;;  %v304_v56 = vld [vmem:[#allocation2 + $0x6e8] sm:$0xff] }
 0x1a7   :  { %2195 = vmatmul.mubr.bf16.gmra.mrb[44].mxu0 %v7191_v20  ;;  %2774 = vmatmul.mubr.bf16.gmra.mrb[76].mxu1 %v6999_v38  ;;  %v269_v38 = vld [vmem:[#allocation2 + $0x5d0] sm:$0xff] }
 0x1a8   :  { %2204 = vmatprep.mubr.bf16.mxu0 %v7193_v10  ;;  %2783 = vmatprep.mubr.bf16.mxu1 %v7001_v39  ;;  %v284_v39 = vld [vmem:[#allocation2 + $0x648] sm:$0xff]  ;;  %v7207_v18 = vpack.c.bf16 %v276_v12, %v269_v38  ;;  %v89_v12 = vld [vmem:[#allocation2 + $0x30] sm:$0xff] }
 0x1a9   :  { %v7209_v33 = vpack.c.bf16 %v291_v28, %v284_v39  ;;  %v96_v39 = vld [vmem:[#allocation2 + $0x68] sm:$0xff] }
 0x1aa   :  { %v6345_v28 = vld [vmem:[#allocation5 + $0x608] ss:$16 sps:$4 sm:$0xff]  }
 0x1af   :  { %2205 = vmatmul.mubr.bf16.gmra.mrb[48].mxu0 %v7199_v4  ;;  %2784 = vmatmul.mubr.bf16.gmra.mrb[80].mxu1 %v7007_v35  ;;  %v283_v35 = vld [vmem:[#allocation2 + $0x640] sm:$0xff] }
 0x1b0   :  { %2214 = vmatprep.mubr.bf16.mxu0 %v7201_v17  ;;  %2793 = vmatprep.mubr.bf16.mxu1 %v7009_v42  ;;  %v305_v42 = vld [vmem:[#allocation2 + $0x6f0] sm:$0xff]  ;;  %v7215_v46 = vpack.c.bf16 %v290_v54, %v283_v35  ;;  %v110_v54 = vld [vmem:[#allocation2 + $0xd8] sm:$0xff] }
 0x1b1   :  { %v7217_v51 = vpack.c.bf16 %v305_v42, %v298_v48  ;;  %v6353_v35 = vld [vmem:[#allocation7 + $0x14] ss:$8 sps:$4 sm:$0xff]   ;;  %v6356_v48 = vld [vmem:[#allocation7 + $0x24] ss:$8 sps:$4 sm:$0xff]  }
 0x1b7   :  { %2215 = vmatmul.mubr.bf16.gmra.mrb[52].mxu0 %v7207_v18  ;;  %2794 = vmatmul.mubr.bf16.gmra.mrb[84].mxu1 %v7015_v63  ;;  %v297_v63 = vld [vmem:[#allocation2 + $0x6b0] sm:$0xff] }
 0x1b8   :  { %2224 = vmatprep.mubr.bf16.mxu0 %v7209_v33  ;;  %2803 = vmatprep.mubr.bf16.mxu1 %v7017_v53  ;;  %v7223_v38 = vpack.c.bf16 %v304_v56, %v297_v63  ;;  %v6718_v53 = vmov 0   ;;  %v6354_v63 = vld [vmem:[#allocation7 + $0x20] ss:$8 sps:$4 sm:$0xff]   ;;  %v6359_v56 = vld [vmem:[#allocation7 + $0x34] ss:$8 sps:$4 sm:$0xff]  }
 0x1bf   :  { %2225 = vmatmul.mubr.bf16.gmra.mrb[56].mxu0 %v7215_v46  ;;  %2804 = vmatmul.mubr.bf16.gmra.mrb[88].mxu1 %v7023_v14  ;;  %v7229_v14 = vpack.c.bf16 %v96_v39, %v89_v12  ;;  %v6357_v12 = vld [vmem:[#allocation7 + $0x30] ss:$8 sps:$4 sm:$0xff]   ;;  %v6362_v39 = vld [vmem:[#allocation7 + $0x44] ss:$8 sps:$4 sm:$0xff]  }
 0x1c0   :  { %2234 = vmatprep.mubr.bf16.mxu0 %v7217_v51  ;;  %2813 = vmatprep.mubr.bf16.mxu1 %v7025_v3  ;;  %v6348_v3 = vld [vmem:[#allocation7] ss:$8 sps:$4 sm:$0xff]  }
 0x1c7   :  { %2235 = vmatmul.mubr.bf16.gmra.mrb[60].mxu0 %v7223_v38  ;;  %2814 = vmatmul.mubr.bf16.gmra.mrb[92].mxu1 %v7031_v6  ;;  %v103_v6 = vld [vmem:[#allocation2 + $0xa0] sm:$0xff] }
 0x1c8   :  { %2277 = vmatprep.mubr.bf16.mxu0 %v6718_v53  ;;  %2856 = vmatprep.mubr.bf16.mxu1 %v7033_v23  ;;  %v6351_v23 = vld [vmem:[#allocation7 + $0x10] ss:$8 sps:$4 sm:$0xff]   ;;  %v7236_v42 = vpack.c.bf16 %v110_v54, %v103_v6  ;;  %v6368_v54 = vld [vmem:[#allocation7 + $0x64] ss:$8 sps:$4 sm:$0xff]  }
 0x1c9   :  { %v6363_v6 = vld [vmem:[#allocation7 + $0x50] ss:$8 sps:$4 sm:$0xff]  }
 0x1cf   :  { %5143 = vmatmul.mubr.msk.bf16.vlgmr.msra.gmra.mrb[0].mxu0 %vm1617_vm0, %v7229_v14  ;;  %2857 = vmatmul.mubr.bf16.vlgmr.msra.gmra.mrb[32].mxu1 %v7039_v19  ;;  %v117_v19 = vld [vmem:[#allocation2 + $0x110] sm:$0xff] }
 0x1d0   :  { %3018 = vmatpush1.bf16.msra.mxu1 %v6345_v28  ;;  %2287 = vmatprep.mubr.bf16.mxu0 %v6718_v53 }
 0x1d1   :  { %2866 = vmatprep.mubr.bf16.mxu1 %v7041_v27  ;;  %3799 = vmatpush1.bf16.msra.mxu0 %v6348_v3  ;;  %v124_v27 = vld [vmem:[#allocation2 + $0x148] sm:$0xff] }
 0x1d2   :  { %3800 = vmatprep.subr.bf16.mxu0 %v6353_v35  ;;  %v7243_v28 = vpack.c.bf16 %v124_v27, %v117_v19  ;;  %v6360_v3 = vld [vmem:[#allocation7 + $0x40] ss:$8 sps:$4 sm:$0xff]   ;;  %v6365_v35 = vld [vmem:[#allocation7 + $0x54] ss:$8 sps:$4 sm:$0xff]   ;;  %v6374_v19 = vld [vmem:[#allocation7 + $0x84] ss:$8 sps:$4 sm:$0xff]  }
 0x1d5   :  { %3801 = vmatpush1.bf16.msra.mxu0 %v6351_v23 }
 0x1d6   :  { %3802 = vmatprep.subr.bf16.mxu0 %v6356_v48  ;;  %v6366_v48 = vld [vmem:[#allocation7 + $0x60] ss:$8 sps:$4 sm:$0xff]  }
 0x1d7   :  { %5144 = vmatmul.mubr.msk.bf16.gmra.mrb[4].mxu0 %vm1617_vm0, %v7236_v42  ;;  %2867 = vmatmul.mubr.bf16.gmra.mrb[36].mxu1 %v7047_v44  ;;  %v131_v44 = vld [vmem:[#allocation2 + $0x180] sm:$0xff] }
 0x1d8   :  { %2297 = vmatprep.mubr.bf16.mxu0 %v6718_v53  ;;  %2876 = vmatprep.mubr.bf16.mxu1 %v7049_v13  ;;  %v138_v13 = vld [vmem:[#allocation2 + $0x1b8] sm:$0xff] }
 0x1d9   :  { %3803 = vmatpush1.bf16.msra.mxu0 %v6354_v63  ;;  %v7250_v23 = vpack.c.bf16 %v138_v13, %v131_v44  ;;  %v6371_v63 = vld [vmem:[#allocation7 + $0x74] ss:$8 sps:$4 sm:$0xff]   ;;  %v6378_v44 = vld [vmem:[#allocation7 + $0xa0] ss:$8 sps:$4 sm:$0xff]  }
 0x1da   :  { %3804 = vmatprep.subr.bf16.mxu0 %v6359_v56  ;;  %v6369_v56 = vld [vmem:[#allocation7 + $0x70] ss:$8 sps:$4 sm:$0xff]   ;;  %v180_v13 = vld [vmem:[#allocation2 + $0x308] sm:$0xff] }
 0x1dd   :  { %3805 = vmatpush1.bf16.msra.mxu0 %v6357_v12  ;;  %v6372_v12 = vld [vmem:[#allocation7 + $0x80] ss:$8 sps:$4 sm:$0xff]  }
 0x1de   :  { %3806 = vmatprep.subr.bf16.mxu0 %v6362_v39  ;;  %v166_v39 = vld [vmem:[#allocation2 + $0x298] sm:$0xff] }
 0x1df   :  { %5145 = vmatmul.mubr.msk.bf16.gmra.mrb[8].mxu0 %vm1617_vm0, %v7243_v28  ;;  %2877 = vmatmul.mubr.bf16.gmra.mrb[40].mxu1 %v7055_v59  ;;  %v145_v59 = vld [vmem:[#allocation2 + $0x1f0] sm:$0xff] }
 0x1e0   :  { %2307 = vmatprep.mubr.bf16.mxu0 %v6718_v53  ;;  %2886 = vmatprep.mubr.bf16.mxu1 %v7057_v8  ;;  %v152_v8 = vld [vmem:[#allocation2 + $0x228] sm:$0xff] }
 0x1e1   :  { %3807 = vmatpush1.bf16.msra.mxu0 %v6360_v3  ;;  %v7257_v27 = vpack.c.bf16 %v152_v8, %v145_v59  ;;  %v6375_v3 = vld [vmem:[#allocation7 + $0x90] ss:$8 sps:$4 sm:$0xff]   ;;  %v6384_v59 = vld [vmem:[#allocation7 + $0xc0] ss:$8 sps:$4 sm:$0xff]   ;;  %v6386_v8 = vld [vmem:[#allocation7 + $0xc4] ss:$8 sps:$4 sm:$0xff]  }
 0x1e2   :  { %3808 = vmatprep.subr.bf16.mxu0 %v6365_v35 }
 0x1e5   :  { %3809 = vmatpush1.bf16.msra.mxu0 %v6363_v6 }
 0x1e6   :  { %3810 = vmatprep.subr.bf16.mxu0 %v6368_v54  ;;  %v6381_v54 = vld [vmem:[#allocation7 + $0xb0] ss:$8 sps:$4 sm:$0xff]  }
 0x1e7   :  { %5146 = vmatmul.mubr.msk.bf16.gmra.mrb[12].mxu0 %vm1617_vm0, %v7250_v23  ;;  %2887 = vmatmul.mubr.bf16.gmra.mrb[44].mxu1 %v7067_v29  ;;  %v6377_v29 = vld [vmem:[#allocation7 + $0x94] ss:$8 sps:$4 sm:$0xff]  }
 0x1e8   :  { %2317 = vmatprep.mubr.bf16.mxu0 %v6718_v53  ;;  %2896 = vmatprep.mubr.bf16.mxu1 %v7071_v43  ;;  %v159_v43 = vld [vmem:[#allocation2 + $0x260] sm:$0xff] }
 0x1e9   :  { %3811 = vmatpush1.bf16.msra.mxu0 %v6366_v48  ;;  %v7264_v35 = vpack.c.bf16 %v166_v39, %v159_v43  ;;  %v6383_v48 = vld [vmem:[#allocation7 + $0xb4] ss:$8 sps:$4 sm:$0xff]   ;;  %v6390_v43 = vld [vmem:[#allocation7 + $0xe0] ss:$8 sps:$4 sm:$0xff]   ;;  %v6392_v39 = vld [vmem:[#allocation7 + $0xe4] ss:$8 sps:$4 sm:$0xff]  }
 0x1ea   :  { %3812 = vmatprep.subr.bf16.mxu0 %v6371_v63  ;;  %v194_v63 = vld [vmem:[#allocation2 + $0x378] sm:$0xff] }
 0x1ed   :  { %3813 = vmatpush1.bf16.msra.mxu0 %v6369_v56  ;;  %v208_v56 = vld [vmem:[#allocation2 + $0x3e8] sm:$0xff] }
 0x1ee   :  { %3814 = vmatprep.subr.bf16.mxu0 %v6374_v19  ;;  %v6387_v19 = vld [vmem:[#allocation7 + $0xd0] ss:$8 sps:$4 sm:$0xff]  }
 0x1ef   :  { %5147 = vmatmul.mubr.msk.bf16.gmra.mrb[16].mxu0 %vm1617_vm0, %v7257_v27  ;;  %2897 = vmatmul.mubr.bf16.gmra.mrb[48].mxu1 %v7083_v24  ;;  %v6380_v24 = vld [vmem:[#allocation7 + $0xa4] ss:$8 sps:$4 sm:$0xff]  }
 0x1f0   :  { %2327 = vmatprep.mubr.bf16.mxu0 %v6718_v53  ;;  %2906 = vmatprep.mubr.bf16.mxu1 %v7087_v9  ;;  %v173_v9 = vld [vmem:[#allocation2 + $0x2d0] sm:$0xff] }
 0x1f1   :  { %3815 = vmatpush1.bf16.msra.mxu0 %v6372_v12  ;;  %v7271_v6 = vpack.c.bf16 %v180_v13, %v173_v9  ;;  %v6389_v12 = vld [vmem:[#allocation7 + $0xd4] ss:$8 sps:$4 sm:$0xff]   ;;  %v6393_v13 = vld [vmem:[#allocation7 + $0xf0] ss:$8 sps:$4 sm:$0xff]  }
 0x1f2   :  { %3816 = vmatprep.subr.bf16.mxu0 %v6377_v29  ;;  %v222_v29 = vld [vmem:[#allocation2 + $0x458] sm:$0xff]  ;;  %v257_v9 = vld [vmem:[#allocation2 + $0x570] sm:$0xff] }
 0x1f5   :  { %3817 = vmatpush1.bf16.msra.mxu0 %v6375_v3  ;;  %v236_v3 = vld [vmem:[#allocation2 + $0x4c8] sm:$0xff] }
 0x1f6   :  { %3818 = vmatprep.subr.bf16.mxu0 %v6380_v24 }
 0x1f7   :  { %5148 = vmatmul.mubr.msk.bf16.gmra.mrb[20].mxu0 %vm1617_vm0, %v7264_v35  ;;  %2907 = vmatmul.mubr.bf16.gmra.mrb[52].mxu1 %v7099_v21  ;;  %v187_v21 = vld [vmem:[#allocation2 + $0x340] sm:$0xff] }
 0x1f8   :  { %2337 = vmatprep.mubr.bf16.mxu0 %v6718_v53  ;;  %2916 = vmatprep.mubr.bf16.mxu1 %v7103_v32  ;;  %v7278_v32 = vpack.c.bf16 %v194_v63, %v187_v21  ;;  %v292_v21 = vld [vmem:[#allocation2 + $0x688] sm:$0xff] }
 0x1f9   :  { %3819 = vmatpush1.bf16.msra.mxu0 %v6378_v44  ;;  %v250_v44 = vld [vmem:[#allocation2 + $0x538] sm:$0xff] }
 0x1fa   :  { %3820 = vmatprep.subr.bf16.mxu0 %v6383_v48  ;;  %v6398_v48 = vld [vmem:[#allocation7 + $0x104] ss:$8 sps:$4 sm:$0xff]  }
 0x1fd   :  { %3821 = vmatpush1.bf16.msra.mxu0 %v6381_v54  ;;  %v278_v54 = vld [vmem:[#allocation2 + $0x618] sm:$0xff] }
 0x1fe   :  { %3822 = vmatprep.subr.bf16.mxu0 %v6386_v8 }
 0x1ff   :  { %5149 = vmatmul.mubr.msk.bf16.gmra.mrb[24].mxu0 %vm1617_vm0, %v7271_v6  ;;  %2917 = vmatmul.mubr.bf16.gmra.mrb[56].mxu1 %v7115_v15  ;;  %v201_v15 = vld [vmem:[#allocation2 + $0x3b0] sm:$0xff] }
 0x200   :  { %2347 = vmatprep.mubr.bf16.mxu0 %v6718_v53  ;;  %2926 = vmatprep.mubr.bf16.mxu1 %v7119_v60  ;;  %v7285_v60 = vpack.c.bf16 %v208_v56, %v201_v15 }
 0x201   :  { %3823 = vmatpush1.bf16.msra.mxu0 %v6384_v59  ;;  %v306_v59 = vld [vmem:[#allocation2 + $0x6f8] sm:$0xff] }
 0x202   :  { %3824 = vmatprep.subr.bf16.mxu0 %v6389_v12 }
 0x205   :  { %3825 = vmatpush1.bf16.msra.mxu0 %v6387_v19 }
 0x206   :  { %3826 = vmatprep.subr.bf16.mxu0 %v6392_v39  ;;  %v6396_v39 = vld [vmem:[#allocation7 + $0x100] ss:$8 sps:$4 sm:$0xff]  }
 0x207   :  { %5150 = vmatmul.mubr.msk.bf16.gmra.mrb[28].mxu0 %vm1617_vm0, %v7278_v32  ;;  %2927 = vmatmul.mubr.bf16.gmra.mrb[60].mxu1 %v7131_v26  ;;  %v215_v26 = vld [vmem:[#allocation2 + $0x420] sm:$0xff] }
 0x208   :  { %2357 = vmatprep.mubr.bf16.mxu0 %v6718_v53  ;;  %2936 = vmatprep.mubr.bf16.mxu1 %v7135_v45  ;;  %v7292_v45 = vpack.c.bf16 %v222_v29, %v215_v26 }
 0x209   :  { %3827 = vmatpush1.bf16.msra.mxu0 %v6390_v43 }
 0x20f   :  { %5151 = vmatmul.mubr.msk.bf16.gmra.mrb[32].mxu0 %vm1617_vm0, %v7285_v60  ;;  %2937 = vmatmul.mubr.bf16.gmra.mrb[64].mxu1 %v7147_v30  ;;  %v229_v30 = vld [vmem:[#allocation2 + $0x490] sm:$0xff] }
 0x210   :  { %2367 = vmatprep.mubr.bf16.mxu0 %v6718_v53  ;;  %2946 = vmatprep.mubr.bf16.mxu1 %v7151_v1  ;;  %v7299_v1 = vpack.c.bf16 %v236_v3, %v229_v30 }
 0x217   :  { %5152 = vmatmul.mubr.msk.bf16.gmra.mrb[36].mxu0 %vm1617_vm0, %v7292_v45  ;;  %2947 = vmatmul.mubr.bf16.gmra.mrb[68].mxu1 %v7163_v52  ;;  %v243_v52 = vld [vmem:[#allocation2 + $0x500] sm:$0xff] }
 0x218   :  { %2377 = vmatprep.mubr.bf16.mxu0 %v6718_v53  ;;  %2956 = vmatprep.mubr.bf16.mxu1 %v7167_v37  ;;  %v7306_v24 = vpack.c.bf16 %v250_v44, %v243_v52  ;;  %v6395_v37 = vld [vmem:[#allocation7 + $0xf4] ss:$8 sps:$4 sm:$0xff]  }
 0x219   :  { %3828 = vmatprep.subr.bf16.mxu0 %v6395_v37 }
 0x21a   :  { %3829 = vmatpush1.bf16.msra.mxu0 %v6393_v13 }
 0x21b   :  { %3991 = vmatprep.subr.bf16.mxu0 %v6398_v48 }
 0x21f   :  { %5153 = vmatmul.mubr.msk.bf16.gmra.mrb[40].mxu0 %vm1617_vm0, %v7299_v1  ;;  %2957 = vmatmul.mubr.bf16.gmra.mrb[72].mxu1 %v7179_v41  ;;  %v264_v41 = vld [vmem:[#allocation2 + $0x5a8] sm:$0xff] }
 0x220   :  { %2387 = vmatprep.mubr.bf16.mxu0 %v6718_v53  ;;  %2966 = vmatprep.mubr.bf16.mxu1 %v7183_v11  ;;  %v7313_v11 = vpack.c.bf16 %v264_v41, %v257_v9  ;;  %v6399_v41 = vld [vmem:[#allocation7 + $0x110] ss:$8 sps:$4 sm:$0xff]  }
 0x227   :  { %5154 = vmatmul.mubr.msk.bf16.gmra.mrb[44].mxu0 %vm1617_vm0, %v7306_v24  ;;  %2967 = vmatmul.mubr.bf16.gmra.mrb[76].mxu1 %v7191_v20  ;;  %v271_v20 = vld [vmem:[#allocation2 + $0x5e0] sm:$0xff] }
 0x228   :  { %2397 = vmatprep.mubr.bf16.mxu0 %v6718_v53  ;;  %2976 = vmatprep.mubr.bf16.mxu1 %v7193_v10  ;;  %v7320_v10 = vpack.c.bf16 %v278_v54, %v271_v20  ;;  %v6404_v54 = vld [vmem:[#allocation7 + $0x124] ss:$8 sps:$4 sm:$0xff]  }
 0x22f   :  { %5155 = vmatmul.mubr.msk.bf16.gmra.mrb[48].mxu0 %vm1617_vm0, %v7313_v11  ;;  %2977 = vmatmul.mubr.bf16.gmra.mrb[80].mxu1 %v7199_v4  ;;  %v285_v4 = vld [vmem:[#allocation2 + $0x650] sm:$0xff] }
 0x230   :  { %2407 = vmatprep.mubr.bf16.mxu0 %v6718_v53  ;;  %2986 = vmatprep.mubr.bf16.mxu1 %v7201_v17  ;;  %v7327_v63 = vpack.c.bf16 %v292_v21, %v285_v4  ;;  %v299_v17 = vld [vmem:[#allocation2 + $0x6c0] sm:$0xff] }
 0x237   :  { %5156 = vmatmul.mubr.msk.bf16.gmra.mrb[52].mxu0 %vm1617_vm0, %v7320_v10  ;;  %2987 = vmatmul.mubr.bf16.gmra.mrb[84].mxu1 %v7207_v18  ;;  %v7334_v18 = vpack.c.bf16 %v306_v59, %v299_v17 }
 0x238   :  { %2417 = vmatprep.mubr.bf16.mxu0 %v6718_v53  ;;  %2996 = vmatprep.mubr.bf16.mxu1 %v7209_v33  ;;  %v617_v33 = vlaneseq }
 0x23f   :  { %5157 = vmatmul.mubr.msk.bf16.gmra.mrb[56].mxu0 %vm1617_vm0, %v7327_v63  ;;  %2997 = vmatmul.mubr.bf16.gmra.mrb[88].mxu1 %v7215_v46  ;;  %v7370_v46 = vshrl.u32 %v617_v33, 7  ;;  %v6402_v33 = vld [vmem:[#allocation7 + $0x120] ss:$8 sps:$4 sm:$0xff]  }
 0x240   :  { %2427 = vmatprep.mubr.bf16.mxu0 %v6718_v53  ;;  %3006 = vmatprep.mubr.bf16.mxu1 %v7217_v51 }
 0x241   :  { %v619_v51 = vsub.s32 0, %v7370_v46 }
 0x247   :  { %5158 = vmatmul.mubr.msk.bf16.gmra.mrb[60].mxu0 %vm1617_vm0, %v7334_v18  ;;  %3007 = vmatmul.mubr.bf16.gmra.mrb[92].mxu1 %v7223_v38  ;;  %v7376_v38 = vld [vmem:[%s7959_s2] sm:$0xf] }
 0x248   :  { %3049 = vmatprep.mubr.bf16.mxu1 %v6718_v53 }
 0x24f   :  { %5159 = vmatmul.mubr.msk.bf16.vlgmr.msra.gmra.mrb[32].mxu1 %vm1617_vm0, %v7229_v14  ;;  %v623_v14 = vsub.s32 1, %v7370_v46 }
 0x250   :  { %3059 = vmatprep.mubr.bf16.mxu1 %v6718_v53 }
 0x257   :  { %5160 = vmatmul.mubr.msk.bf16.gmra.mrb[36].mxu1 %vm1617_vm0, %v7236_v42  ;;  %v7385_v42 = vrot.slane %v7376_v38, %v619_v51 }
 0x258   :  { %3069 = vmatprep.mubr.bf16.mxu1 %v6718_v53 }
 0x25f   :  { %5161 = vmatmul.mubr.msk.bf16.gmra.mrb[40].mxu1 %vm1617_vm0, %v7243_v28  ;;  %v7390_v28 = vrot.slane %v7376_v38, %v623_v14 }
 0x260   :  { %3079 = vmatprep.mubr.bf16.mxu1 %v6718_v53 }
 0x267   :  { %5162 = vmatmul.mubr.msk.bf16.gmra.mrb[44].mxu1 %vm1617_vm0, %v7250_v23 }
 0x268   :  { %3089 = vmatprep.mubr.bf16.mxu1 %v6718_v53 }
 0x26f   :  { %5163 = vmatmul.mubr.msk.bf16.gmra.mrb[48].mxu1 %vm1617_vm0, %v7257_v27 }
 0x270   :  { %3099 = vmatprep.mubr.bf16.mxu1 %v6718_v53 }
 0x277   :  { %5164 = vmatmul.mubr.msk.bf16.gmra.mrb[52].mxu1 %vm1617_vm0, %v7264_v35 }
 0x278   :  { %3109 = vmatprep.mubr.bf16.mxu1 %v6718_v53 }
 0x27f   :  { %5165 = vmatmul.mubr.msk.bf16.gmra.mrb[56].mxu1 %vm1617_vm0, %v7271_v6 }
 0x280   :  { %3119 = vmatprep.mubr.bf16.mxu1 %v6718_v53 }
 0x287   :  { %5166 = vmatmul.mubr.msk.bf16.gmra.mrb[60].mxu1 %vm1617_vm0, %v7278_v32 }
 0x288   :  { %3129 = vmatprep.mubr.bf16.mxu1 %v6718_v53 }
 0x28f   :  { %5167 = vmatmul.mubr.msk.bf16.gmra.mrb[64].mxu1 %vm1617_vm0, %v7285_v60 }
 0x290   :  { %3139 = vmatprep.mubr.bf16.mxu1 %v6718_v53 }
 0x297   :  { %5168 = vmatmul.mubr.msk.bf16.gmra.mrb[68].mxu1 %vm1617_vm0, %v7292_v45 }
 0x298   :  { %3149 = vmatprep.mubr.bf16.mxu1 %v6718_v53 }
 0x29f   :  { %5169 = vmatmul.mubr.msk.bf16.gmra.mrb[72].mxu1 %vm1617_vm0, %v7299_v1  ;;  %v6401_v1 = vld [vmem:[#allocation7 + $0x114] ss:$8 sps:$4 sm:$0xff]  }
 0x2a0   :  { %3159 = vmatprep.mubr.bf16.mxu1 %v6718_v53 }
 0x2a2   :  { %v2279_v23 = vpop.f32.mrb[0].mxu0 }
 0x2a3   :  { %v5400_v27 = vadd.f32 %v2279_v23, %v7385_v42  ;;  %v2281_v35 = vpop.f32.mrb[1].mxu0 }
 0x2a4   :  { %v5401_v6 = vadd.f32 %v2281_v35, %v7390_v28  ;;  %v2283_v32 = vpop.f32.mrb[2].mxu0  ;;  %v6407_v35 = vld [vmem:[#allocation7 + $0x134] ss:$8 sps:$4 sm:$0xff]  }
 0x2a5   :  { %v5402_v8 = vadd.f32 %v2283_v32, %v7385_v42  ;;  %v2285_v15 = vpop.f32.mrb[3].mxu0  ;;  %v3210_v60 = vmax.f32 %v5400_v27, 0.0 }
 0x2a6   :  { %v5403_v56 = vadd.f32 %v2285_v15, %v7390_v28  ;;  %v3211_v12 = vmax.f32 %v5401_v6, 0.0 }
 0x2a7   :  { %v3214_v19 = vmax.f32 %v5402_v8, 0.0  ;;  %5170 = vmatmul.mubr.msk.bf16.gmra.mrb[76].mxu1 %vm1617_vm0, %v7306_v24 }
 0x2a8   :  { %v3215_v26 = vmax.f32 %v5403_v56, 0.0  ;;  %3169 = vmatprep.mubr.bf16.mxu1 %v6718_v53  ;;  %v6405_v56 = vld [vmem:[#allocation7 + $0x130] ss:$8 sps:$4 sm:$0xff]  }
 0x2a9   :  { %v3338_v29 = vpack.c.bf16 %v3214_v19, %v3210_v60 }
 0x2aa   :  { %v3339_v45 = vpack.c.bf16 %v3215_v26, %v3211_v12  ;;  %v2289_v43 = vpop.f32.mrb[4].mxu0  ;;  %v6410_v12 = vld [vmem:[#allocation7 + $0x144] ss:$8 sps:$4 sm:$0xff]  }
 0x2ab   :  { %v5404_v30 = vadd.f32 %v2289_v43, %v7385_v42  ;;  %v2291_v3 = vpop.f32.mrb[5].mxu0 }
 0x2ac   :  { %v5405_v52 = vadd.f32 %v2291_v3, %v7390_v28  ;;  %v2293_v44 = vpop.f32.mrb[6].mxu0  ;;  %3830 = vmatprep.mubr.bf16.mxu0 %v3339_v45 }
 0x2ad   :  { %v5406_v37 = vadd.f32 %v2293_v44, %v7385_v42  ;;  %v2295_v9 = vpop.f32.mrb[7].mxu0  ;;  %3831 = vmatmul.mubr.bf16.vlgmr.msra.gmra.mrb[64].mxu0 %v3338_v29  ;;  %v3218_v13 = vmax.f32 %v5404_v30, 0.0  ;;  %v6408_v30 = vld [vmem:[#allocation7 + $0x140] ss:$8 sps:$4 sm:$0xff]  }
 0x2ae   :  { %v5407_v24 = vadd.f32 %v2295_v9, %v7390_v28  ;;  %3992 = vmatpush1.bf16.msra.mxu0 %v6396_v39  ;;  %v3219_v48 = vmax.f32 %v5405_v52, 0.0  ;;  %v6413_v52 = vld [vmem:[#allocation7 + $0x154] ss:$8 sps:$4 sm:$0xff]  }
 0x2af   :  { %v3222_v20 = vmax.f32 %v5406_v37, 0.0  ;;  %5171 = vmatmul.mubr.msk.bf16.gmra.mrb[80].mxu1 %vm1617_vm0, %v7313_v11  ;;  %3993 = vmatprep.subr.bf16.mxu0 %v6401_v1 }
 0x2b0   :  { %v3223_v4 = vmax.f32 %v5407_v24, 0.0  ;;  %3179 = vmatprep.mubr.bf16.mxu1 %v6718_v53 }
 0x2b1   :  { %v3342_v21 = vpack.c.bf16 %v3222_v20, %v3218_v13 }
 0x2b2   :  { %v3343_v17 = vpack.c.bf16 %v3223_v4, %v3219_v48  ;;  %v2299_v59 = vpop.f32.mrb[8].mxu0  ;;  %3994 = vmatpush1.bf16.msra.mxu0 %v6399_v41  ;;  %v6411_v41 = vld [vmem:[#allocation7 + $0x150] ss:$8 sps:$4 sm:$0xff]  }
 0x2b3   :  { %v5408_v23 = vadd.f32 %v2299_v59, %v7385_v42  ;;  %v2301_v27 = vpop.f32.mrb[9].mxu0  ;;  %3995 = vmatprep.subr.bf16.mxu0 %v6404_v54  ;;  %v6416_v54 = vld [vmem:[#allocation7 + $0x164] ss:$8 sps:$4 sm:$0xff]  }
 0x2b4   :  { %v5409_v6 = vadd.f32 %v2301_v27, %v7390_v28  ;;  %v2303_v32 = vpop.f32.mrb[10].mxu0  ;;  %3840 = vmatprep.mubr.bf16.mxu0 %v3343_v17 }
 0x2b5   :  { %v5410_v11 = vadd.f32 %v2303_v32, %v7385_v42  ;;  %v2305_v8 = vpop.f32.mrb[11].mxu0  ;;  %3841 = vmatmul.mubr.bf16.gmra.mrb[68].mxu0 %v3342_v21  ;;  %v3226_v60 = vmax.f32 %v5408_v23, 0.0 }
 0x2b6   :  { %v5411_v15 = vadd.f32 %v2305_v8, %v7390_v28  ;;  %3996 = vmatpush1.bf16.msra.mxu0 %v6402_v33  ;;  %v3227_v26 = vmax.f32 %v5409_v6, 0.0  ;;  %v6414_v33 = vld [vmem:[#allocation7 + $0x160] ss:$8 sps:$4 sm:$0xff]   ;;  %v6417_v8 = vld [vmem:[#allocation7 + $0x170] ss:$8 sps:$4 sm:$0xff]  }
 0x2b7   :  { %v3230_v19 = vmax.f32 %v5410_v11, 0.0  ;;  %5172 = vmatmul.mubr.msk.bf16.gmra.mrb[84].mxu1 %vm1617_vm0, %v7320_v10  ;;  %3997 = vmatprep.subr.bf16.mxu0 %v6407_v35  ;;  %v6419_v35 = vld [vmem:[#allocation7 + $0x174] ss:$8 sps:$4 sm:$0xff]  }
 0x2b8   :  { %v3231_v29 = vmax.f32 %v5411_v15, 0.0  ;;  %3189 = vmatprep.mubr.bf16.mxu1 %v6718_v53 }
 0x2b9   :  { %v3346_v45 = vpack.c.bf16 %v3230_v19, %v3226_v60  ;;  %v6422_v60 = vld [vmem:[#allocation7 + $0x184] ss:$8 sps:$4 sm:$0xff]  }
 0x2ba   :  { %v3347_v43 = vpack.c.bf16 %v3231_v29, %v3227_v26  ;;  %v2309_v39 = vpop.f32.mrb[12].mxu0  ;;  %3998 = vmatpush1.bf16.msra.mxu0 %v6405_v56 }
 0x2bb   :  { %v5412_v3 = vadd.f32 %v2309_v39, %v7385_v42  ;;  %v2311_v1 = vpop.f32.mrb[13].mxu0  ;;  %3999 = vmatprep.subr.bf16.mxu0 %v6410_v12 }
 0x2bc   :  { %v5413_v44 = vadd.f32 %v2311_v1, %v7390_v28  ;;  %v2313_v37 = vpop.f32.mrb[14].mxu0  ;;  %3850 = vmatprep.mubr.bf16.mxu0 %v3347_v43  ;;  %v6420_v43 = vld [vmem:[#allocation7 + $0x180] ss:$8 sps:$4 sm:$0xff]  }
 0x2bd   :  { %v5414_v10 = vadd.f32 %v2313_v37, %v7385_v42  ;;  %v2315_v9 = vpop.f32.mrb[15].mxu0  ;;  %3851 = vmatmul.mubr.bf16.gmra.mrb[72].mxu0 %v3346_v45  ;;  %v3234_v13 = vmax.f32 %v5412_v3, 0.0  ;;  %v6425_v3 = vld [vmem:[#allocation7 + $0x194] ss:$8 sps:$4 sm:$0xff]  }
 0x2be   :  { %v5415_v24 = vadd.f32 %v2315_v9, %v7390_v28  ;;  %4000 = vmatpush1.bf16.msra.mxu0 %v6408_v30  ;;  %v3235_v48 = vmax.f32 %v5413_v44, 0.0 }
 0x2bf   :  { %v3238_v20 = vmax.f32 %v5414_v10, 0.0  ;;  %5173 = vmatmul.mubr.msk.bf16.gmra.mrb[88].mxu1 %vm1617_vm0, %v7327_v63  ;;  %4001 = vmatprep.subr.bf16.mxu0 %v6413_v52  ;;  %v6423_v10 = vld [vmem:[#allocation7 + $0x190] ss:$8 sps:$4 sm:$0xff]  }
 0x2c0   :  { %v3239_v4 = vmax.f32 %v5415_v24, 0.0  ;;  %3199 = vmatprep.mubr.bf16.mxu1 %v6718_v53 }
 0x2c1   :  { %v3350_v21 = vpack.c.bf16 %v3238_v20, %v3234_v13 }
 0x2c2   :  { %v3351_v17 = vpack.c.bf16 %v3239_v4, %v3235_v48  ;;  %v2319_v59 = vpop.f32.mrb[16].mxu0  ;;  %4002 = vmatpush1.bf16.msra.mxu0 %v6411_v41  ;;  %v6428_v41 = vld [vmem:[#allocation7 + $0x1a4] ss:$8 sps:$4 sm:$0xff]  }
 0x2c3   :  { %v5416_v23 = vadd.f32 %v2319_v59, %v7385_v42  ;;  %v2321_v27 = vpop.f32.mrb[17].mxu0  ;;  %4003 = vmatprep.subr.bf16.mxu0 %v6416_v54 }
 0x2c4   :  { %v5417_v6 = vadd.f32 %v2321_v27, %v7390_v28  ;;  %v2323_v32 = vpop.f32.mrb[18].mxu0  ;;  %3860 = vmatprep.mubr.bf16.mxu0 %v3351_v17 }
 0x2c5   :  { %v5418_v63 = vadd.f32 %v2323_v32, %v7385_v42  ;;  %v2325_v11 = vpop.f32.mrb[19].mxu0  ;;  %3861 = vmatmul.mubr.bf16.gmra.mrb[76].mxu0 %v3350_v21  ;;  %v3242_v15 = vmax.f32 %v5416_v23, 0.0  ;;  %v6426_v21 = vld [vmem:[#allocation7 + $0x1a0] ss:$8 sps:$4 sm:$0xff]  }
 0x2c6   :  { %v5419_v53 = vadd.f32 %v2325_v11, %v7390_v28  ;;  %4004 = vmatpush1.bf16.msra.mxu0 %v6414_v33  ;;  %v3243_v19 = vmax.f32 %v5417_v6, 0.0  ;;  %v6431_v33 = vld [vmem:[#allocation7 + $0x1b4] ss:$8 sps:$4 sm:$0xff]  }
 0x2c7   :  { %v3246_v56 = vmax.f32 %v5418_v63, 0.0  ;;  %5174 = vmatmul.mubr.msk.bf16.gmra.mrb[92].mxu1 %vm1617_vm0, %v7334_v18  ;;  %4005 = vmatprep.subr.bf16.mxu0 %v6419_v35  ;;  %v6429_v63 = vld [vmem:[#allocation7 + $0x1b0] ss:$8 sps:$4 sm:$0xff]  }
 0x2c8   :  { %v3247_v12 = vmax.f32 %v5419_v53, 0.0 }
 0x2c9   :  { %v3354_v26 = vpack.c.bf16 %v3246_v56, %v3242_v15 }
 0x2ca   :  { %v3355_v29 = vpack.c.bf16 %v3247_v12, %v3243_v19  ;;  %v2329_v45 = vpop.f32.mrb[20].mxu0  ;;  %4006 = vmatpush1.bf16.msra.mxu0 %v6417_v8  ;;  %v6434_v8 = vld [vmem:[#allocation7 + $0x1c4] ss:$8 sps:$4 sm:$0xff]  }
 0x2cb   :  { %v5420_v39 = vadd.f32 %v2329_v45, %v7385_v42  ;;  %v2331_v30 = vpop.f32.mrb[21].mxu0  ;;  %4007 = vmatprep.subr.bf16.mxu0 %v6422_v60 }
 0x2cc   :  { %v5421_v1 = vadd.f32 %v2331_v30, %v7390_v28  ;;  %v2333_v52 = vpop.f32.mrb[22].mxu0  ;;  %3870 = vmatprep.mubr.bf16.mxu0 %v3355_v29 }
 0x2cd   :  { %v5422_v18 = vadd.f32 %v2333_v52, %v7385_v42  ;;  %v2335_v44 = vpop.f32.mrb[23].mxu0  ;;  %3871 = vmatmul.mubr.bf16.gmra.mrb[80].mxu0 %v3354_v26  ;;  %v3250_v9 = vmax.f32 %v5420_v39, 0.0  ;;  %v6432_v26 = vld [vmem:[#allocation7 + $0x1c0] ss:$8 sps:$4 sm:$0xff]  }
 0x2ce   :  { %v5423_v37 = vadd.f32 %v2335_v44, %v7390_v28  ;;  %4008 = vmatpush1.bf16.msra.mxu0 %v6420_v43  ;;  %v3251_v13 = vmax.f32 %v5421_v1, 0.0  ;;  %v6437_v43 = vld [vmem:[#allocation7 + $0x1d4] ss:$8 sps:$4 sm:$0xff]  }
 0x2cf   :  { %v3254_v24 = vmax.f32 %v5422_v18, 0.0  ;;  %4009 = vmatprep.subr.bf16.mxu0 %v6425_v3  ;;  %v6435_v18 = vld [vmem:[#allocation7 + $0x1d0] ss:$8 sps:$4 sm:$0xff]  }
 0x2d0   :  { %v3255_v20 = vmax.f32 %v5423_v37, 0.0 }
 0x2d1   :  { %v3358_v54 = vpack.c.bf16 %v3254_v24, %v3250_v9 }
 0x2d2   :  { %v3359_v48 = vpack.c.bf16 %v3255_v20, %v3251_v13  ;;  %v2339_v4 = vpop.f32.mrb[24].mxu0  ;;  %4010 = vmatpush1.bf16.msra.mxu0 %v6423_v10  ;;  %v6440_v10 = vld [vmem:[#allocation7 + $0x1e4] ss:$8 sps:$4 sm:$0xff]   ;;  %v1783_v20 = vadd.f32 %v7065_v0, %v7390_v28 }
 0x2d3   :  { %v5424_v17 = vadd.f32 %v2339_v4, %v7385_v42  ;;  %v2341_v59 = vpop.f32.mrb[25].mxu0  ;;  %4011 = vmatprep.subr.bf16.mxu0 %v6428_v41  ;;  %v1781_v41 = vadd.f32 %v7063_v5, %v7385_v42  ;;  %v6438_v4 = vld [vmem:[#allocation7 + $0x1e0] ss:$8 sps:$4 sm:$0xff]  }
 0x2d4   :  { %v5425_v23 = vadd.f32 %v2341_v59, %v7390_v28  ;;  %v2343_v27 = vpop.f32.mrb[26].mxu0  ;;  %3880 = vmatprep.mubr.bf16.mxu0 %v3359_v48 }
 0x2d5   :  { %v5426_v35 = vadd.f32 %v2343_v27, %v7385_v42  ;;  %v2345_v6 = vpop.f32.mrb[27].mxu0  ;;  %3881 = vmatmul.mubr.bf16.gmra.mrb[84].mxu0 %v3358_v54  ;;  %v3258_v11 = vmax.f32 %v5424_v17, 0.0 }
 0x2d6   :  { %v5427_v32 = vadd.f32 %v2345_v6, %v7390_v28  ;;  %4012 = vmatpush1.bf16.msra.mxu0 %v6426_v21  ;;  %v3259_v15 = vmax.f32 %v5425_v23, 0.0  ;;  %v1785_v21 = vadd.f32 %v7069_v34, %v7385_v42  ;;  %v1787_v23 = vadd.f32 %v7073_v16, %v7390_v28 }
 0x2d7   :  { %v3262_v53 = vmax.f32 %v5426_v35, 0.0  ;;  %4013 = vmatprep.subr.bf16.mxu0 %v6431_v33  ;;  %v6443_v33 = vld [vmem:[#allocation7 + $0x1f4] ss:$8 sps:$4 sm:$0xff]   ;;  %v1793_v16 = vadd.f32 %v7081_v47, %v7390_v28 }
 0x2d8   :  { %v3263_v56 = vmax.f32 %v5427_v32, 0.0  ;;  %v6441_v32 = vld [vmem:[#allocation7 + $0x1f0] ss:$8 sps:$4 sm:$0xff]  }
 0x2d9   :  { %v3362_v60 = vpack.c.bf16 %v3262_v53, %v3258_v11 }
 0x2da   :  { %v3363_v19 = vpack.c.bf16 %v3263_v56, %v3259_v15  ;;  %v2349_v12 = vpop.f32.mrb[28].mxu0  ;;  %4014 = vmatpush1.bf16.msra.mxu0 %v6429_v63 }
 0x2db   :  { %v5428_v29 = vadd.f32 %v2349_v12, %v7385_v42  ;;  %v2351_v45 = vpop.f32.mrb[29].mxu0  ;;  %4015 = vmatprep.subr.bf16.mxu0 %v6434_v8  ;;  %v1791_v8 = vadd.f32 %v7079_v57, %v7385_v42 }
 0x2dc   :  { %v5429_v39 = vadd.f32 %v2351_v45, %v7390_v28  ;;  %v2353_v30 = vpop.f32.mrb[30].mxu0  ;;  %3890 = vmatprep.mubr.bf16.mxu0 %v3363_v19  ;;  %v1795_v19 = vadd.f32 %v7085_v55, %v7385_v42 }
 0x2dd   :  { %v5430_v3 = vadd.f32 %v2353_v30, %v7385_v42  ;;  %v2355_v1 = vpop.f32.mrb[31].mxu0  ;;  %3891 = vmatmul.mubr.bf16.gmra.mrb[88].mxu0 %v3362_v60  ;;  %v3266_v44 = vmax.f32 %v5428_v29, 0.0  ;;  %v1797_v29 = vadd.f32 %v7089_v62, %v7390_v28 }
 0x2de   :  { %v5431_v52 = vadd.f32 %v2355_v1, %v7390_v28  ;;  %4016 = vmatpush1.bf16.msra.mxu0 %v6432_v26  ;;  %v3267_v9 = vmax.f32 %v5429_v39, 0.0 }
 0x2df   :  { %v3270_v37 = vmax.f32 %v5430_v3, 0.0  ;;  %4017 = vmatprep.subr.bf16.mxu0 %v6437_v43 }
 0x2e0   :  { %v3271_v24 = vmax.f32 %v5431_v52, 0.0 }
 0x2e1   :  { %v3366_v13 = vpack.c.bf16 %v3270_v37, %v3266_v44  ;;  %v1803_v44 = vadd.f32 %v7097_v61, %v7390_v28 }
 0x2e2   :  { %v3367_v54 = vpack.c.bf16 %v3271_v24, %v3267_v9  ;;  %v2359_v48 = vpop.f32.mrb[32].mxu0  ;;  %4018 = vmatpush1.bf16.msra.mxu0 %v6435_v18  ;;  %v1801_v18 = vadd.f32 %v7095_v22, %v7385_v42 }
 0x2e3   :  { %v5433_v17 = vadd.f32 %v2359_v48, %v1781_v41  ;;  %v2361_v59 = vpop.f32.mrb[33].mxu0  ;;  %4019 = vmatprep.subr.bf16.mxu0 %v6440_v10  ;;  %v1805_v10 = vadd.f32 %v7101_v36, %v7385_v42  ;;  %v1807_v41 = vadd.f32 %v7105_v7, %v7390_v28 }
 0x2e4   :  { %v5435_v27 = vadd.f32 %v2361_v59, %v1783_v20  ;;  %v2363_v5 = vpop.f32.mrb[34].mxu0  ;;  %3900 = vmatprep.mubr.bf16.mxu0 %v3367_v54  ;;  %v1811_v59 = vadd.f32 %v7111_v31, %v7385_v42 }
 0x2e5   :  { %v5437_v35 = vadd.f32 %v2363_v5, %v1785_v21  ;;  %v2365_v6 = vpop.f32.mrb[35].mxu0  ;;  %3901 = vmatmul.mubr.bf16.gmra.mrb[92].mxu0 %v3366_v13  ;;  %v3274_v63 = vmax.f32 %v5433_v17, 0.0 }
 0x2e6   :  { %v5439_v0 = vadd.f32 %v2365_v6, %v1787_v23  ;;  %4020 = vmatpush1.bf16.msra.mxu0 %v6438_v4  ;;  %v3275_v34 = vmax.f32 %v5435_v27, 0.0  ;;  %v1815_v27 = vadd.f32 %v7117_v58, %v7385_v42  ;;  %v1817_v6 = vadd.f32 %v7121_v40, %v7390_v28 }
 0x2e7   :  { %v3278_v11 = vmax.f32 %v5437_v35, 0.0  ;;  %4021 = vmatprep.subr.bf16.mxu0 %v6443_v33  ;;  %v1813_v33 = vadd.f32 %v7113_v2, %v7390_v28 }
 0x2e8   :  { %v3279_v53 = vmax.f32 %v5439_v0, 0.0 }
 0x2e9   :  { %v3370_v15 = vpack.c.bf16 %v3278_v11, %v3274_v63 }
 0x2ea   :  { %v3371_v56 = vpack.c.bf16 %v3279_v53, %v3275_v34  ;;  %v2369_v60 = vpop.f32.mrb[36].mxu0  ;;  %4022 = vmatpush1.bf16.msra.mxu0 %v6441_v32 }
 0x2eb   :  { %v5441_v12 = vadd.f32 %v2369_v60, %v1791_v8  ;;  %v2371_v26 = vpop.f32.mrb[37].mxu0 }
 0x2ec   :  { %v5443_v45 = vadd.f32 %v2371_v26, %v1793_v16  ;;  %v2373_v43 = vpop.f32.mrb[38].mxu0  ;;  %3910 = vmatprep.mubr.bf16.mxu0 %v3371_v56  ;;  %v7978_v16 = vld [vmem:[#allocation15_spill] sm:$0xff] }
 0x2ed   :  { %v5445_v39 = vadd.f32 %v2373_v43, %v1795_v19  ;;  %v2375_v57 = vpop.f32.mrb[39].mxu0  ;;  %3911 = vmatmul.mubr.bf16.gmra.mrb[96].mxu0 %v3370_v15  ;;  %v3282_v3 = vmax.f32 %v5441_v12, 0.0  ;;  %v1821_v15 = vadd.f32 %v7127_v49, %v7385_v42  ;;  %v1823_v56 = vadd.f32 %v7978_v16, %v7390_v28  ;;  %v7979_v19 = vld [vmem:[#allocation16_spill] sm:$0xff] }
 0x2ee   :  { %v5447_v30 = vadd.f32 %v2375_v57, %v1797_v29  ;;  %v3283_v1 = vmax.f32 %v5443_v45, 0.0  ;;  %v1825_v12 = vadd.f32 %v7979_v19, %v7385_v42  ;;  %v7980_v45 = vld [vmem:[#allocation17_spill] sm:$0xff] }
 0x2ef   :  { %v3286_v47 = vmax.f32 %v5445_v39, 0.0  ;;  %v1827_v43 = vadd.f32 %v7980_v45, %v7390_v28  ;;  %v7988_v45 = vld [vmem:[#allocation25_spill] sm:$0xff] }
 0x2f0   :  { %v3287_v52 = vmax.f32 %v5447_v30, 0.0 }
 0x2f1   :  { %v3374_v55 = vpack.c.bf16 %v3286_v47, %v3282_v3 }
 0x2f2   :  { %v3375_v37 = vpack.c.bf16 %v3287_v52, %v3283_v1  ;;  %v2379_v62 = vpop.f32.mrb[40].mxu0 }
 0x2f3   :  { %v5449_v9 = vadd.f32 %v2379_v62, %v1801_v18  ;;  %v2381_v24 = vpop.f32.mrb[41].mxu0 }
 0x2f4   :  { %v5451_v13 = vadd.f32 %v2381_v24, %v1803_v44  ;;  %v2383_v20 = vpop.f32.mrb[42].mxu0  ;;  %3920 = vmatprep.mubr.bf16.mxu0 %v3375_v37  ;;  %v1833_v37 = vadd.f32 %v7145_v50, %v7390_v28 }
 0x2f5   :  { %v5453_v54 = vadd.f32 %v2383_v20, %v1805_v10  ;;  %v2385_v48 = vpop.f32.mrb[43].mxu0  ;;  %3921 = vmatmul.mubr.bf16.gmra.mrb[100].mxu0 %v3374_v55  ;;  %v3290_v4 = vmax.f32 %v5449_v9, 0.0  ;;  %v1831_v55 = vadd.f32 %v7143_v25, %v7385_v42  ;;  %v7981_v9 = vld [vmem:[#allocation18_spill] sm:$0xff]  ;;  %v7982_v20 = vld [vmem:[#allocation19_spill] sm:$0xff] }
 0x2f6   :  { %v5455_v22 = vadd.f32 %v2385_v48, %v1807_v41  ;;  %v3291_v61 = vmax.f32 %v5451_v13, 0.0  ;;  %v1835_v24 = vadd.f32 %v7981_v9, %v7385_v42 }
 0x2f7   :  { %v3294_v21 = vmax.f32 %v5453_v54, 0.0  ;;  %v1837_v54 = vadd.f32 %v7982_v20, %v7390_v28 }
 0x2f8   :  { %v3295_v17 = vmax.f32 %v5455_v22, 0.0 }
 0x2f9   :  { %v3378_v36 = vpack.c.bf16 %v3294_v21, %v3290_v4 }
 0x2fa   :  { %v3379_v23 = vpack.c.bf16 %v3295_v17, %v3291_v61  ;;  %v2389_v7 = vpop.f32.mrb[44].mxu0  ;;  %v6444_v61 = vld [vmem:[#allocation8 + $0x40] sm:$0xff]  }
 0x2fb   :  { %v5457_v5 = vadd.f32 %v2389_v7, %v1811_v59  ;;  %v2391_v35 = vpop.f32.mrb[45].mxu0  ;;  %5256 = vmatprep.subr.bf16.mxu1 %v6444_v61 }
 0x2fc   :  { %v5459_v0 = vadd.f32 %v2391_v35, %v1813_v33  ;;  %v2393_v32 = vpop.f32.mrb[46].mxu0  ;;  %3930 = vmatprep.mubr.bf16.mxu0 %v3379_v23  ;;  %v7983_v33 = vld [vmem:[#allocation20_spill] sm:$0xff] }
 0x2fd   :  { %v5461_v63 = vadd.f32 %v2393_v32, %v1815_v27  ;;  %v2395_v11 = vpop.f32.mrb[47].mxu0  ;;  %3931 = vmatmul.mubr.bf16.gmra.mrb[104].mxu0 %v3378_v36  ;;  %v3298_v34 = vmax.f32 %v5457_v5, 0.0  ;;  %v1841_v23 = vadd.f32 %v7983_v33, %v7385_v42  ;;  %v6445_v27 = vld [vmem:[#allocation8] sm:$0xff]   ;;  %v7984_v5 = vld [vmem:[#allocation21_spill] sm:$0xff]  ;;  %v7985_v32 = vld [vmem:[#allocation22_spill] sm:$0xff] }
 0x2fe   :  { %v5463_v31 = vadd.f32 %v2395_v11, %v1817_v6  ;;  %v3299_v2 = vmax.f32 %v5459_v0, 0.0  ;;  %v1843_v35 = vadd.f32 %v7984_v5, %v7390_v28  ;;  %5257 = vmatpush3.bf16.msra.mxu1 %v6445_v27  ;;  %v6448_v33 = vld [vmem:[#allocation8 + $0x50] sm:$0xff]  }
 0x2ff   :  { %v3302_v53 = vmax.f32 %v5461_v63, 0.0  ;;  %v1845_v63 = vadd.f32 %v7985_v32, %v7385_v42 }
 0x300   :  { %v3303_v8 = vmax.f32 %v5463_v31, 0.0 }
 0x301   :  { %v3382_v58 = vpack.c.bf16 %v3302_v53, %v3298_v34  ;;  %v7986_v34 = vld [vmem:[#allocation23_spill] sm:$0xff] }
 0x302   :  { %v3383_v60 = vpack.c.bf16 %v3303_v8, %v3299_v2  ;;  %v2399_v40 = vpop.f32.mrb[48].mxu0  ;;  %v1847_v53 = vadd.f32 %v7986_v34, %v7390_v28 }
 0x303   :  { %v5465_v26 = vadd.f32 %v2399_v40, %v1821_v15  ;;  %v2401_v29 = vpop.f32.mrb[49].mxu0 }
 0x304   :  { %v5467_v39 = vadd.f32 %v2401_v29, %v1823_v56  ;;  %v2403_v57 = vpop.f32.mrb[50].mxu0  ;;  %3940 = vmatprep.mubr.bf16.mxu0 %v3383_v60 }
 0x305   :  { %v5469_v30 = vadd.f32 %v2403_v57, %v1825_v12  ;;  %v2405_v3 = vpop.f32.mrb[51].mxu0  ;;  %3941 = vmatmul.mubr.bf16.gmra.mrb[108].mxu0 %v3382_v58  ;;  %v3306_v47 = vmax.f32 %v5465_v26, 0.0  ;;  %v7987_v12 = vld [vmem:[#allocation24_spill] sm:$0xff] }
 0x306   :  { %v5471_v49 = vadd.f32 %v2405_v3, %v1827_v43  ;;  %v3307_v52 = vmax.f32 %v5467_v39, 0.0  ;;  %v1851_v26 = vadd.f32 %v7987_v12, %v7385_v42  ;;  %v1853_v43 = vadd.f32 %v7988_v45, %v7390_v28 }
 0x307   :  { %v3310_v1 = vmax.f32 %v5469_v30, 0.0  ;;  %v7989_v30 = vld [vmem:[#allocation26_spill] sm:$0xff] }
 0x308   :  { %v3311_v18 = vmax.f32 %v5471_v49, 0.0  ;;  %v1855_v3 = vadd.f32 %v7989_v30, %v7385_v42 }
 0x309   :  { %v3386_v44 = vpack.c.bf16 %v3310_v1, %v3306_v47  ;;  %v627_v1 = vsub.s32 2, %v7370_v46 }
 0x30a   :  { %v3387_v62 = vpack.c.bf16 %v3311_v18, %v3307_v52  ;;  %v2409_v10 = vpop.f32.mrb[52].mxu0  ;;  %v7990_v52 = vld [vmem:[#allocation27_spill] sm:$0xff] }
 0x30b   :  { %v5473_v41 = vadd.f32 %v2409_v10, %v1831_v55  ;;  %v2411_v13 = vpop.f32.mrb[53].mxu0  ;;  %v1857_v18 = vadd.f32 %v7990_v52, %v7390_v28  ;;  %v7505_v42 = vrot.slane %v7376_v38, %v627_v1  ;;  %v6457_v1 = vld [vmem:[#allocation8 + $0x30] sm:$0xff]  }
 0x30c   :  { %v5475_v48 = vadd.f32 %v2411_v13, %v1833_v37  ;;  %v2413_v22 = vpop.f32.mrb[54].mxu0  ;;  %3950 = vmatprep.mubr.bf16.mxu0 %v3387_v62  ;;  %v631_v37 = vsub.s32 3, %v7370_v46 }
 0x30d   :  { %v5477_v4 = vadd.f32 %v2413_v22, %v1835_v24  ;;  %v2415_v21 = vpop.f32.mrb[55].mxu0  ;;  %3951 = vmatmul.mubr.bf16.gmra.mrb[112].mxu0 %v3386_v44  ;;  %v3314_v17 = vmax.f32 %v5473_v41, 0.0  ;;  %v6446_v24 = vld [vmem:[#allocation8 + $0x48] sm:$0xff]  }
 0x30e   :  { %v5479_v25 = vadd.f32 %v2415_v21, %v1837_v54  ;;  %v3315_v59 = vmax.f32 %v5475_v48, 0.0  ;;  %v7508_v48 = vrot.slane %v7376_v38, %v631_v37  ;;  %5258 = vmatprep.subr.bf16.mxu1 %v6446_v24  ;;  %v6447_v22 = vld [vmem:[#allocation8 + $0x8] sm:$0xff]   ;;  %v6449_v38 = vld [vmem:[#allocation8 + $0x10] sm:$0xff]   ;;  %v6459_v24 = vld [vmem:[#allocation8 + $0x38] sm:$0xff]  }
 0x30f   :  { %v3318_v50 = vmax.f32 %v5477_v4, 0.0  ;;  %5259 = vmatpush3.bf16.msra.mxu1 %v6447_v22 }
 0x310   :  { %v3319_v36 = vmax.f32 %v5479_v25, 0.0  ;;  %5260 = vmatprep.subr.bf16.mxu1 %v6448_v33 }
 0x311   :  { %v3390_v7 = vpack.c.bf16 %v3318_v50, %v3314_v17 }
 0x312   :  { %v3391_v6 = vpack.c.bf16 %v3319_v36, %v3315_v59  ;;  %v2419_v0 = vpop.f32.mrb[56].mxu0 }
 0x313   :  { %v5481_v11 = vadd.f32 %v2419_v0, %v1841_v23  ;;  %v2421_v31 = vpop.f32.mrb[57].mxu0  ;;  %v6450_v23 = vld [vmem:[#allocation8 + $0x58] sm:$0xff]   ;;  %5261 = vmatpush3.bf16.msra.mxu1 %v6449_v38 }
 0x314   :  { %v5483_v2 = vadd.f32 %v2421_v31, %v1843_v35  ;;  %v2423_v8 = vpop.f32.mrb[58].mxu0  ;;  %3960 = vmatprep.mubr.bf16.mxu0 %v3391_v6  ;;  %v6451_v0 = vld [vmem:[#allocation8 + $0x18] sm:$0xff]   ;;  %5262 = vmatprep.subr.bf16.mxu1 %v6450_v23 }
 0x315   :  { %v5485_v15 = vadd.f32 %v2423_v8, %v1845_v63  ;;  %v2425_v58 = vpop.f32.mrb[59].mxu0  ;;  %3961 = vmatmul.mubr.bf16.gmra.mrb[116].mxu0 %v3390_v7  ;;  %v3322_v56 = vmax.f32 %v5481_v11, 0.0  ;;  %v6452_v63 = vld [vmem:[#allocation8 + $0x60] sm:$0xff]  }
 0x316   :  { %v5487_v16 = vadd.f32 %v2425_v58, %v1847_v53  ;;  %v3323_v40 = vmax.f32 %v5483_v2, 0.0 }
 0x317   :  { %v3326_v60 = vmax.f32 %v5485_v15, 0.0  ;;  %5263 = vmatpush3.bf16.msra.mxu1 %v6451_v0  ;;  %v6453_v15 = vld [vmem:[#allocation8 + $0x20] sm:$0xff]  }
 0x318   :  { %v3327_v19 = vmax.f32 %v5487_v16, 0.0  ;;  %5264 = vmatprep.subr.bf16.mxu1 %v6452_v63 }
 0x319   :  { %v3394_v29 = vpack.c.bf16 %v3326_v60, %v3322_v56  ;;  %v6454_v56 = vld [vmem:[#allocation8 + $0x68] sm:$0xff]  }
 0x31a   :  { %v3395_v39 = vpack.c.bf16 %v3327_v19, %v3323_v40  ;;  %v2429_v57 = vpop.f32.mrb[60].mxu0 }
 0x31b   :  { %v5489_v49 = vadd.f32 %v2429_v57, %v1851_v26  ;;  %v2431_v47 = vpop.f32.mrb[61].mxu0  ;;  %5265 = vmatpush3.bf16.msra.mxu1 %v6453_v15 }
 0x31c   :  { %v5491_v55 = vadd.f32 %v2431_v47, %v1853_v43  ;;  %v2433_v44 = vpop.f32.mrb[62].mxu0  ;;  %3970 = vmatprep.mubr.bf16.mxu0 %v3395_v39  ;;  %5266 = vmatprep.subr.bf16.mxu1 %v6454_v56  ;;  %v6456_v43 = vld [vmem:[#allocation8 + $0x70] sm:$0xff]  }
 0x31d   :  { %v5493_v62 = vadd.f32 %v2433_v44, %v1855_v3  ;;  %v2435_v10 = vpop.f32.mrb[63].mxu0  ;;  %3971 = vmatmul.mubr.bf16.gmra.mrb[120].mxu0 %v3394_v29  ;;  %v3330_v41 = vmax.f32 %v5489_v49, 0.0  ;;  %v6455_v29 = vld [vmem:[#allocation8 + $0x28] sm:$0xff]  }
 0x31e   :  { %v5495_v9 = vadd.f32 %v2435_v10, %v1857_v18  ;;  %v3331_v20 = vmax.f32 %v5491_v55, 0.0  ;;  %v6458_v55 = vld [vmem:[#allocation8 + $0x78] sm:$0xff]  }
 0x31f   :  { %v3334_v13 = vmax.f32 %v5493_v62, 0.0  ;;  %5267 = vmatpush3.bf16.msra.mxu1 %v6455_v29 }
 0x320   :  { %v3335_v54 = vmax.f32 %v5495_v9, 0.0  ;;  %5268 = vmatprep.subr.bf16.mxu1 %v6456_v43 }
 0x321   :  { %v3398_v28 = vpack.c.bf16 %v3334_v13, %v3330_v41 }
 0x322   :  { %v3399_v4 = vpack.c.bf16 %v3335_v54, %v3331_v20  ;;  %v3051_v21 = vpop.f32.mrb[32].mxu1 }
 0x323   :  { %v5496_v25 = vadd.f32 %v3051_v21, %v7505_v42  ;;  %v3053_v61 = vpop.f32.mrb[33].mxu1  ;;  %5269 = vmatpush3.bf16.msra.mxu1 %v6457_v1 }
 0x324   :  { %v5497_v17 = vadd.f32 %v3053_v61, %v7508_v48  ;;  %v3055_v50 = vpop.f32.mrb[34].mxu1  ;;  %3980 = vmatprep.mubr.bf16.mxu0 %v3399_v4  ;;  %5270 = vmatprep.subr.bf16.mxu1 %v6458_v55 }
 0x325   :  { %v5498_v59 = vadd.f32 %v3055_v50, %v7505_v42  ;;  %v3057_v36 = vpop.f32.mrb[35].mxu1  ;;  %3981 = vmatmul.mubr.bf16.gmra.mrb[124].mxu0 %v3398_v28  ;;  %v3212_v27 = vmax.f32 %v5496_v25, 0.0 }
 0x326   :  { %v5499_v7 = vadd.f32 %v3057_v36, %v7508_v48  ;;  %v3213_v35 = vmax.f32 %v5497_v17, 0.0 }
 0x327   :  { %v3216_v5 = vmax.f32 %v5498_v59, 0.0  ;;  %5271 = vmatpush3.bf16.msra.mxu1 %v6459_v24 }
 0x328   :  { %v3217_v6 = vmax.f32 %v5499_v7, 0.0 }
 0x329   :  { %v3340_v32 = vpack.c.bf16 %v3216_v5, %v3212_v27 }
 0x32a   :  { %v3341_v11 = vpack.c.bf16 %v3217_v6, %v3213_v35  ;;  %v3061_v31 = vpop.f32.mrb[36].mxu1 }
 0x32b   :  { %v5500_v34 = vadd.f32 %v3061_v31, %v7505_v42  ;;  %v3063_v53 = vpop.f32.mrb[37].mxu1 }
 0x32c   :  { %v5501_v2 = vadd.f32 %v3063_v53, %v7508_v48  ;;  %v3065_v8 = vpop.f32.mrb[38].mxu1  ;;  %4023 = vmatprep.mubr.bf16.mxu0 %v3341_v11 }
 0x32d   :  { %v5502_v58 = vadd.f32 %v3065_v8, %v7505_v42  ;;  %v3067_v16 = vpop.f32.mrb[39].mxu1  ;;  %4024 = vmatmul.mubr.bf16.vlgmr.msra.gmra.mrb[64].mxu0 %v3340_v32  ;;  %v3220_v40 = vmax.f32 %v5500_v34, 0.0 }
 0x32e   :  { %v5503_v60 = vadd.f32 %v3067_v16, %v7508_v48  ;;  %v3221_v12 = vmax.f32 %v5501_v2, 0.0 }
 0x32f   :  { %v3224_v19 = vmax.f32 %v5502_v58, 0.0 }
 0x330   :  { %v3225_v26 = vmax.f32 %v5503_v60, 0.0 }
 0x331   :  { %v3344_v45 = vpack.c.bf16 %v3224_v19, %v3220_v40 }
 0x332   :  { %v3345_v39 = vpack.c.bf16 %v3225_v26, %v3221_v12  ;;  %v3071_v57 = vpop.f32.mrb[40].mxu1 }
 0x333   :  { %v5504_v30 = vadd.f32 %v3071_v57, %v7505_v42  ;;  %v3073_v3 = vpop.f32.mrb[41].mxu1 }
 0x334   :  { %v5505_v49 = vadd.f32 %v3073_v3, %v7508_v48  ;;  %v3075_v47 = vpop.f32.mrb[42].mxu1  ;;  %4033 = vmatprep.mubr.bf16.mxu0 %v3345_v39 }
 0x335   :  { %v5506_v52 = vadd.f32 %v3075_v47, %v7505_v42  ;;  %v3077_v18 = vpop.f32.mrb[43].mxu1  ;;  %4034 = vmatmul.mubr.bf16.gmra.mrb[68].mxu0 %v3344_v45  ;;  %v3228_v37 = vmax.f32 %v5504_v30, 0.0 }
 0x336   :  { %v5507_v44 = vadd.f32 %v3077_v18, %v7508_v48  ;;  %v3229_v10 = vmax.f32 %v5505_v49, 0.0 }
 0x337   :  { %v3232_v62 = vmax.f32 %v5506_v52, 0.0 }
 0x338   :  { %v3233_v9 = vmax.f32 %v5507_v44, 0.0 }
 0x339   :  { %v3348_v41 = vpack.c.bf16 %v3232_v62, %v3228_v37 }
 0x33a   :  { %v3349_v13 = vpack.c.bf16 %v3233_v9, %v3229_v10  ;;  %v3081_v20 = vpop.f32.mrb[44].mxu1 }
 0x33b   :  { %v5508_v54 = vadd.f32 %v3081_v20, %v7505_v42  ;;  %v3083_v28 = vpop.f32.mrb[45].mxu1 }
 0x33c   :  { %v5509_v22 = vadd.f32 %v3083_v28, %v7508_v48  ;;  %v3085_v4 = vpop.f32.mrb[46].mxu1  ;;  %4043 = vmatprep.mubr.bf16.mxu0 %v3349_v13 }
 0x33d   :  { %v5510_v21 = vadd.f32 %v3085_v4, %v7505_v42  ;;  %v3087_v25 = vpop.f32.mrb[47].mxu1  ;;  %4044 = vmatmul.mubr.bf16.gmra.mrb[72].mxu0 %v3348_v41  ;;  %v3236_v17 = vmax.f32 %v5508_v54, 0.0 }
 0x33e   :  { %v5511_v61 = vadd.f32 %v3087_v25, %v7508_v48  ;;  %v3237_v59 = vmax.f32 %v5509_v22, 0.0 }
 0x33f   :  { %v3240_v50 = vmax.f32 %v5510_v21, 0.0 }
 0x340   :  { %v3241_v36 = vmax.f32 %v5511_v61, 0.0 }
 0x341   :  { %v3352_v33 = vpack.c.bf16 %v3240_v50, %v3236_v17 }
 0x342   :  { %v3353_v38 = vpack.c.bf16 %v3241_v36, %v3237_v59  ;;  %v3091_v23 = vpop.f32.mrb[48].mxu1 }
 0x343   :  { %v5512_v7 = vadd.f32 %v3091_v23, %v7505_v42  ;;  %v3093_v27 = vpop.f32.mrb[49].mxu1 }
 0x344   :  { %v5513_v5 = vadd.f32 %v3093_v27, %v7508_v48  ;;  %v3095_v35 = vpop.f32.mrb[50].mxu1  ;;  %4053 = vmatprep.mubr.bf16.mxu0 %v3353_v38 }
 0x345   :  { %v5514_v6 = vadd.f32 %v3095_v35, %v7505_v42  ;;  %v3097_v0 = vpop.f32.mrb[51].mxu1  ;;  %4054 = vmatmul.mubr.bf16.gmra.mrb[76].mxu0 %v3352_v33  ;;  %v3244_v63 = vmax.f32 %v5512_v7, 0.0 }
 0x346   :  { %v5515_v32 = vadd.f32 %v3097_v0, %v7508_v48  ;;  %v3245_v31 = vmax.f32 %v5513_v5, 0.0 }
 0x347   :  { %v3248_v11 = vmax.f32 %v5514_v6, 0.0 }
 0x348   :  { %v3249_v34 = vmax.f32 %v5515_v32, 0.0 }
 0x349   :  { %v3356_v53 = vpack.c.bf16 %v3248_v11, %v3244_v63 }
 0x34a   :  { %v3357_v2 = vpack.c.bf16 %v3249_v34, %v3245_v31  ;;  %v3101_v8 = vpop.f32.mrb[52].mxu1 }
 0x34b   :  { %v5516_v15 = vadd.f32 %v3101_v8, %v7505_v42  ;;  %v3103_v58 = vpop.f32.mrb[53].mxu1 }
 0x34c   :  { %v5517_v16 = vadd.f32 %v3103_v58, %v7508_v48  ;;  %v3105_v56 = vpop.f32.mrb[54].mxu1  ;;  %4063 = vmatprep.mubr.bf16.mxu0 %v3357_v2 }
 0x34d   :  { %v5518_v60 = vadd.f32 %v3105_v56, %v7505_v42  ;;  %v3107_v40 = vpop.f32.mrb[55].mxu1  ;;  %4064 = vmatmul.mubr.bf16.gmra.mrb[80].mxu0 %v3356_v53  ;;  %v3252_v12 = vmax.f32 %v5516_v15, 0.0 }
 0x34e   :  { %v5519_v19 = vadd.f32 %v3107_v40, %v7508_v48  ;;  %v3253_v29 = vmax.f32 %v5517_v16, 0.0 }
 0x34f   :  { %v3256_v26 = vmax.f32 %v5518_v60, 0.0 }
 0x350   :  { %v3257_v45 = vmax.f32 %v5519_v19, 0.0 }
 0x351   :  { %v3360_v43 = vpack.c.bf16 %v3256_v26, %v3252_v12 }
 0x352   :  { %v3361_v39 = vpack.c.bf16 %v3257_v45, %v3253_v29  ;;  %v3111_v57 = vpop.f32.mrb[56].mxu1 }
 0x353   :  { %v5520_v30 = vadd.f32 %v3111_v57, %v7505_v42  ;;  %v3113_v3 = vpop.f32.mrb[57].mxu1 }
 0x354   :  { %v5521_v49 = vadd.f32 %v3113_v3, %v7508_v48  ;;  %v3115_v47 = vpop.f32.mrb[58].mxu1  ;;  %4073 = vmatprep.mubr.bf16.mxu0 %v3361_v39 }
 0x355   :  { %v5522_v1 = vadd.f32 %v3115_v47, %v7505_v42  ;;  %v3117_v52 = vpop.f32.mrb[59].mxu1  ;;  %4074 = vmatmul.mubr.bf16.gmra.mrb[84].mxu0 %v3360_v43  ;;  %v3260_v55 = vmax.f32 %v5520_v30, 0.0 }
 0x356   :  { %v5523_v18 = vadd.f32 %v3117_v52, %v7508_v48  ;;  %v3261_v37 = vmax.f32 %v5521_v49, 0.0 }
 0x357   :  { %v3264_v44 = vmax.f32 %v5522_v1, 0.0 }
 0x358   :  { %v3265_v62 = vmax.f32 %v5523_v18, 0.0 }
 0x359   :  { %v3364_v10 = vpack.c.bf16 %v3264_v44, %v3260_v55 }
 0x35a   :  { %v3365_v9 = vpack.c.bf16 %v3265_v62, %v3261_v37  ;;  %v3121_v24 = vpop.f32.mrb[60].mxu1 }
 0x35b   :  { %v5524_v41 = vadd.f32 %v3121_v24, %v7505_v42  ;;  %v3123_v13 = vpop.f32.mrb[61].mxu1 }
 0x35c   :  { %v5525_v20 = vadd.f32 %v3123_v13, %v7508_v48  ;;  %v3125_v54 = vpop.f32.mrb[62].mxu1  ;;  %4083 = vmatprep.mubr.bf16.mxu0 %v3365_v9 }
 0x35d   :  { %v5526_v28 = vadd.f32 %v3125_v54, %v7505_v42  ;;  %v3127_v22 = vpop.f32.mrb[63].mxu1  ;;  %4084 = vmatmul.mubr.bf16.gmra.mrb[88].mxu0 %v3364_v10  ;;  %v3268_v21 = vmax.f32 %v5524_v41, 0.0 }
 0x35e   :  { %v5527_v4 = vadd.f32 %v3127_v22, %v7508_v48  ;;  %v3269_v61 = vmax.f32 %v5525_v20, 0.0 }
 0x35f   :  { %v3272_v25 = vmax.f32 %v5526_v28, 0.0 }
 0x360   :  { %v3273_v17 = vmax.f32 %v5527_v4, 0.0 }
 0x361   :  { %v3368_v50 = vpack.c.bf16 %v3272_v25, %v3268_v21 }
 0x362   :  { %v3369_v59 = vpack.c.bf16 %v3273_v17, %v3269_v61  ;;  %v3131_v36 = vpop.f32.mrb[64].mxu1 }
 0x363   :  { %v5528_v33 = vadd.f32 %v3131_v36, %v7505_v42  ;;  %v3133_v38 = vpop.f32.mrb[65].mxu1 }
 0x364   :  { %v5529_v23 = vadd.f32 %v3133_v38, %v7508_v48  ;;  %v3135_v7 = vpop.f32.mrb[66].mxu1  ;;  %4093 = vmatprep.mubr.bf16.mxu0 %v3369_v59 }
 0x365   :  { %v5530_v27 = vadd.f32 %v3135_v7, %v7505_v42  ;;  %v3137_v5 = vpop.f32.mrb[67].mxu1  ;;  %4094 = vmatmul.mubr.bf16.gmra.mrb[92].mxu0 %v3368_v50  ;;  %v3276_v6 = vmax.f32 %v5528_v33, 0.0 }
 0x366   :  { %v5531_v35 = vadd.f32 %v3137_v5, %v7508_v48  ;;  %v3277_v32 = vmax.f32 %v5529_v23, 0.0 }
 0x367   :  { %v3280_v0 = vmax.f32 %v5530_v27, 0.0 }
 0x368   :  { %v3281_v63 = vmax.f32 %v5531_v35, 0.0 }
 0x369   :  { %v3372_v11 = vpack.c.bf16 %v3280_v0, %v3276_v6 }
 0x36a   :  { %v3373_v31 = vpack.c.bf16 %v3281_v63, %v3277_v32  ;;  %v3141_v34 = vpop.f32.mrb[68].mxu1 }
 0x36b   :  { %v5532_v53 = vadd.f32 %v3141_v34, %v7505_v42  ;;  %v3143_v2 = vpop.f32.mrb[69].mxu1 }
 0x36c   :  { %v5533_v8 = vadd.f32 %v3143_v2, %v7508_v48  ;;  %v3145_v15 = vpop.f32.mrb[70].mxu1  ;;  %4103 = vmatprep.mubr.bf16.mxu0 %v3373_v31 }
 0x36d   :  { %v5534_v58 = vadd.f32 %v3145_v15, %v7505_v42  ;;  %v3147_v16 = vpop.f32.mrb[71].mxu1  ;;  %4104 = vmatmul.mubr.bf16.gmra.mrb[96].mxu0 %v3372_v11  ;;  %v3284_v60 = vmax.f32 %v5532_v53, 0.0 }
 0x36e   :  { %v5535_v56 = vadd.f32 %v3147_v16, %v7508_v48  ;;  %v3285_v19 = vmax.f32 %v5533_v8, 0.0 }
 0x36f   :  { %v3288_v40 = vmax.f32 %v5534_v58, 0.0 }
 0x370   :  { %v3289_v12 = vmax.f32 %v5535_v56, 0.0 }
 0x371   :  { %v3376_v26 = vpack.c.bf16 %v3288_v40, %v3284_v60 }
 0x372   :  { %v3377_v29 = vpack.c.bf16 %v3289_v12, %v3285_v19  ;;  %v3151_v45 = vpop.f32.mrb[72].mxu1 }
 0x373   :  { %v5536_v43 = vadd.f32 %v3151_v45, %v7505_v42  ;;  %v3153_v39 = vpop.f32.mrb[73].mxu1 }
 0x374   :  { %v5537_v57 = vadd.f32 %v3153_v39, %v7508_v48  ;;  %v3155_v30 = vpop.f32.mrb[74].mxu1  ;;  %4113 = vmatprep.mubr.bf16.mxu0 %v3377_v29 }
 0x375   :  { %v5538_v3 = vadd.f32 %v3155_v30, %v7505_v42  ;;  %v3157_v49 = vpop.f32.mrb[75].mxu1  ;;  %4114 = vmatmul.mubr.bf16.gmra.mrb[100].mxu0 %v3376_v26  ;;  %v3292_v1 = vmax.f32 %v5536_v43, 0.0 }
 0x376   :  { %v5539_v47 = vadd.f32 %v3157_v49, %v7508_v48  ;;  %v3293_v18 = vmax.f32 %v5537_v57, 0.0 }
 0x377   :  { %v3296_v52 = vmax.f32 %v5538_v3, 0.0 }
 0x378   :  { %v3297_v55 = vmax.f32 %v5539_v47, 0.0 }
 0x379   :  { %v3380_v44 = vpack.c.bf16 %v3296_v52, %v3292_v1 }
 0x37a   :  { %v3381_v37 = vpack.c.bf16 %v3297_v55, %v3293_v18  ;;  %v3161_v62 = vpop.f32.mrb[76].mxu1 }
 0x37b   :  { %v5540_v10 = vadd.f32 %v3161_v62, %v7505_v42  ;;  %v3163_v9 = vpop.f32.mrb[77].mxu1 }
 0x37c   :  { %v5541_v24 = vadd.f32 %v3163_v9, %v7508_v48  ;;  %v3165_v41 = vpop.f32.mrb[78].mxu1  ;;  %4123 = vmatprep.mubr.bf16.mxu0 %v3381_v37 }
 0x37d   :  { %v5542_v13 = vadd.f32 %v3165_v41, %v7505_v42  ;;  %v3167_v20 = vpop.f32.mrb[79].mxu1  ;;  %4124 = vmatmul.mubr.bf16.gmra.mrb[104].mxu0 %v3380_v44  ;;  %v3300_v28 = vmax.f32 %v5540_v10, 0.0 }
 0x37e   :  { %v5543_v54 = vadd.f32 %v3167_v20, %v7508_v48  ;;  %v3301_v4 = vmax.f32 %v5541_v24, 0.0 }
 0x37f   :  { %v3304_v22 = vmax.f32 %v5542_v13, 0.0 }
 0x380   :  { %v3305_v21 = vmax.f32 %v5543_v54, 0.0 }
 0x381   :  { %v3384_v25 = vpack.c.bf16 %v3304_v22, %v3300_v28 }
 0x382   :  { %v3385_v61 = vpack.c.bf16 %v3305_v21, %v3301_v4  ;;  %v3171_v17 = vpop.f32.mrb[80].mxu1  ;;  %v3466_v21 = vld [vmem:[%s7961_s4] sm:$0x3] }
 0x383   :  { %v5544_v50 = vadd.f32 %v3171_v17, %v7505_v42  ;;  %v3173_v59 = vpop.f32.mrb[81].mxu1 }
 0x384   :  { %v5545_v36 = vadd.f32 %v3173_v59, %v7508_v48  ;;  %v3175_v33 = vpop.f32.mrb[82].mxu1  ;;  %4133 = vmatprep.mubr.bf16.mxu0 %v3385_v61 }
 0x385   :  { %v5546_v38 = vadd.f32 %v3175_v33, %v7505_v42  ;;  %v3177_v23 = vpop.f32.mrb[83].mxu1  ;;  %4134 = vmatmul.mubr.bf16.gmra.mrb[108].mxu0 %v3384_v25  ;;  %v3308_v27 = vmax.f32 %v5544_v50, 0.0  ;;  %v7579_v25 = vrot.slane %v3466_v21, %v619_v51 }
 0x386   :  { %v5547_v7 = vadd.f32 %v3177_v23, %v7508_v48  ;;  %v3309_v35 = vmax.f32 %v5545_v36, 0.0 }
 0x387   :  { %v3312_v5 = vmax.f32 %v5546_v38, 0.0 }
 0x388   :  { %v3313_v6 = vmax.f32 %v5547_v7, 0.0 }
 0x389   :  { %v3388_v0 = vpack.c.bf16 %v3312_v5, %v3308_v27 }
 0x38a   :  { %v3389_v32 = vpack.c.bf16 %v3313_v6, %v3309_v35  ;;  %v3181_v63 = vpop.f32.mrb[84].mxu1 }
 0x38b   :  { %v5548_v11 = vadd.f32 %v3181_v63, %v7505_v42  ;;  %v3183_v31 = vpop.f32.mrb[85].mxu1 }
 0x38c   :  { %v5549_v34 = vadd.f32 %v3183_v31, %v7508_v48  ;;  %v3185_v53 = vpop.f32.mrb[86].mxu1  ;;  %4143 = vmatprep.mubr.bf16.mxu0 %v3389_v32 }
 0x38d   :  { %v5550_v2 = vadd.f32 %v3185_v53, %v7505_v42  ;;  %v3187_v8 = vpop.f32.mrb[87].mxu1  ;;  %4144 = vmatmul.mubr.bf16.gmra.mrb[112].mxu0 %v3388_v0  ;;  %v3316_v58 = vmax.f32 %v5548_v11, 0.0 }
 0x38e   :  { %v5551_v15 = vadd.f32 %v3187_v8, %v7508_v48  ;;  %v3317_v56 = vmax.f32 %v5549_v34, 0.0 }
 0x38f   :  { %v3320_v16 = vmax.f32 %v5550_v2, 0.0 }
 0x390   :  { %v3321_v60 = vmax.f32 %v5551_v15, 0.0 }
 0x391   :  { %v3392_v40 = vpack.c.bf16 %v3320_v16, %v3316_v58 }
 0x392   :  { %v3393_v19 = vpack.c.bf16 %v3321_v60, %v3317_v56  ;;  %v3191_v12 = vpop.f32.mrb[88].mxu1 }
 0x393   :  { %v5552_v26 = vadd.f32 %v3191_v12, %v7505_v42  ;;  %v3193_v29 = vpop.f32.mrb[89].mxu1 }
 0x394   :  { %v5553_v45 = vadd.f32 %v3193_v29, %v7508_v48  ;;  %v3195_v43 = vpop.f32.mrb[90].mxu1  ;;  %4153 = vmatprep.mubr.bf16.mxu0 %v3393_v19 }
 0x395   :  { %v5554_v39 = vadd.f32 %v3195_v43, %v7505_v42  ;;  %v3197_v57 = vpop.f32.mrb[91].mxu1  ;;  %4154 = vmatmul.mubr.bf16.gmra.mrb[116].mxu0 %v3392_v40  ;;  %v3324_v3 = vmax.f32 %v5552_v26, 0.0 }
 0x396   :  { %v5555_v30 = vadd.f32 %v3197_v57, %v7508_v48  ;;  %v3325_v47 = vmax.f32 %v5553_v45, 0.0 }
 0x397   :  { %v3328_v49 = vmax.f32 %v5554_v39, 0.0 }
 0x398   :  { %v3329_v1 = vmax.f32 %v5555_v30, 0.0 }
 0x399   :  { %v3396_v52 = vpack.c.bf16 %v3328_v49, %v3324_v3 }
 0x39a   :  { %v3397_v18 = vpack.c.bf16 %v3329_v1, %v3325_v47  ;;  %v3201_v55 = vpop.f32.mrb[92].mxu1 }
 0x39b   :  { %v5556_v44 = vadd.f32 %v3201_v55, %v7505_v42  ;;  %v3203_v37 = vpop.f32.mrb[93].mxu1 }
 0x39c   :  { %v5557_v62 = vadd.f32 %v3203_v37, %v7508_v48  ;;  %v3205_v10 = vpop.f32.mrb[94].mxu1  ;;  %4163 = vmatprep.mubr.bf16.mxu0 %v3397_v18 }
 0x39d   :  { %v5558_v9 = vadd.f32 %v3205_v10, %v7505_v42  ;;  %v3207_v24 = vpop.f32.mrb[95].mxu1  ;;  %4164 = vmatmul.mubr.bf16.gmra.mrb[120].mxu0 %v3396_v52  ;;  %v3332_v13 = vmax.f32 %v5556_v44, 0.0  ;;  %v7583_v42 = vrot.slane %v3466_v21, %v623_v14 }
 0x39e   :  { %v5559_v41 = vadd.f32 %v3207_v24, %v7508_v48  ;;  %v3333_v54 = vmax.f32 %v5557_v62, 0.0 }
 0x39f   :  { %v3336_v20 = vmax.f32 %v5558_v9, 0.0 }
 0x3a0   :  { %v3337_v28 = vmax.f32 %v5559_v41, 0.0 }
 0x3a1   :  { %v3400_v22 = vpack.c.bf16 %v3336_v20, %v3332_v13 }
 0x3a2   :  { %v3401_v4 = vpack.c.bf16 %v3337_v28, %v3333_v54 }
 0x3a4   :  { %4173 = vmatprep.mubr.bf16.mxu0 %v3401_v4 }
 0x3a5   :  { %4174 = vmatmul.mubr.bf16.gmra.mrb[124].mxu0 %v3400_v22 }
 0x400   :  { %v4025_v48 = vpop.f32.mrb[64].mxu0 }
 0x401   :  { %v5560_v61 = vadd.f32 %v4025_v48, %v7579_v25  ;;  %v4027_v17 = vpop.f32.mrb[65].mxu0 }
 0x402   :  { %v5561_v50 = vadd.f32 %v4027_v17, %v7583_v42  ;;  %v4029_v59 = vpop.f32.mrb[66].mxu0 }
 0x403   :  { %v5562_v36 = vadd.f32 %v4029_v59, %v7579_v25  ;;  %v4031_v33 = vpop.f32.mrb[67].mxu0  ;;  %v4184_v23 = vmax.f32 %v5560_v61, 0.0 }
 0x404   :  { %v5563_v38 = vadd.f32 %v4031_v33, %v7583_v42  ;;  %v4185_v51 = vmax.f32 %v5561_v50, 0.0 }
 0x405   :  { %v4186_v7 = vmax.f32 %v5562_v36, 0.0 }
 0x406   :  { %v4187_v27 = vmax.f32 %v5563_v38, 0.0 }
 0x407   :  { %v4248_v5 = vpack.c.bf16 %v4186_v7, %v4184_v23 }
 0x408   :  { %v4249_v46 = vpack.c.bf16 %v4187_v27, %v4185_v51  ;;  %v4035_v14 = vpop.f32.mrb[68].mxu0 }
 0x409   :  { %v5564_v35 = vadd.f32 %v4035_v14, %v7579_v25  ;;  %v4037_v6 = vpop.f32.mrb[69].mxu0 }
 0x40a   :  { %v5565_v0 = vadd.f32 %v4037_v6, %v7583_v42  ;;  %v4039_v32 = vpop.f32.mrb[70].mxu0  ;;  %4447 = vmatprep.mubr.bf16.mxu1 %v4249_v46 }
 0x40b   :  { %v5566_v63 = vadd.f32 %v4039_v32, %v7579_v25  ;;  %v4041_v11 = vpop.f32.mrb[71].mxu0  ;;  %4448 = vmatmul.mubr.bf16.vlgmr.msra.gmra.mrb[96].mxu1 %v4248_v5  ;;  %v4188_v34 = vmax.f32 %v5564_v35, 0.0 }
 0x40c   :  { %v5567_v31 = vadd.f32 %v4041_v11, %v7583_v42  ;;  %v4189_v2 = vmax.f32 %v5565_v0, 0.0 }
 0x40d   :  { %v4190_v53 = vmax.f32 %v5566_v63, 0.0 }
 0x40e   :  { %v4191_v8 = vmax.f32 %v5567_v31, 0.0 }
 0x40f   :  { %v4250_v15 = vpack.c.bf16 %v4190_v53, %v4188_v34 }
 0x410   :  { %v4251_v58 = vpack.c.bf16 %v4191_v8, %v4189_v2  ;;  %v4045_v16 = vpop.f32.mrb[72].mxu0 }
 0x411   :  { %v5568_v56 = vadd.f32 %v4045_v16, %v7579_v25  ;;  %v4047_v60 = vpop.f32.mrb[73].mxu0 }
 0x412   :  { %v5569_v40 = vadd.f32 %v4047_v60, %v7583_v42  ;;  %v4049_v19 = vpop.f32.mrb[74].mxu0  ;;  %4455 = vmatprep.mubr.bf16.mxu1 %v4251_v58 }
 0x413   :  { %v5570_v12 = vadd.f32 %v4049_v19, %v7579_v25  ;;  %v4051_v26 = vpop.f32.mrb[75].mxu0  ;;  %4456 = vmatmul.mubr.bf16.gmra.mrb[100].mxu1 %v4250_v15  ;;  %v4192_v45 = vmax.f32 %v5568_v56, 0.0 }
 0x414   :  { %v5571_v29 = vadd.f32 %v4051_v26, %v7583_v42  ;;  %v4193_v39 = vmax.f32 %v5569_v40, 0.0 }
 0x415   :  { %v4194_v43 = vmax.f32 %v5570_v12, 0.0 }
 0x416   :  { %v4195_v57 = vmax.f32 %v5571_v29, 0.0 }
 0x417   :  { %v4252_v30 = vpack.c.bf16 %v4194_v43, %v4192_v45 }
 0x418   :  { %v4253_v3 = vpack.c.bf16 %v4195_v57, %v4193_v39  ;;  %v4055_v49 = vpop.f32.mrb[76].mxu0 }
 0x419   :  { %v5572_v47 = vadd.f32 %v4055_v49, %v7579_v25  ;;  %v4057_v1 = vpop.f32.mrb[77].mxu0 }
 0x41a   :  { %v5573_v52 = vadd.f32 %v4057_v1, %v7583_v42  ;;  %v4059_v18 = vpop.f32.mrb[78].mxu0  ;;  %4463 = vmatprep.mubr.bf16.mxu1 %v4253_v3 }
 0x41b   :  { %v5574_v55 = vadd.f32 %v4059_v18, %v7579_v25  ;;  %v4061_v44 = vpop.f32.mrb[79].mxu0  ;;  %4464 = vmatmul.mubr.bf16.gmra.mrb[104].mxu1 %v4252_v30  ;;  %v4196_v62 = vmax.f32 %v5572_v47, 0.0 }
 0x41c   :  { %v5575_v37 = vadd.f32 %v4061_v44, %v7583_v42  ;;  %v4197_v9 = vmax.f32 %v5573_v52, 0.0 }
 0x41d   :  { %v4198_v10 = vmax.f32 %v5574_v55, 0.0 }
 0x41e   :  { %v4199_v24 = vmax.f32 %v5575_v37, 0.0 }
 0x41f   :  { %v4254_v41 = vpack.c.bf16 %v4198_v10, %v4196_v62 }
 0x420   :  { %v4255_v13 = vpack.c.bf16 %v4199_v24, %v4197_v9  ;;  %v4065_v20 = vpop.f32.mrb[80].mxu0 }
 0x421   :  { %v5576_v54 = vadd.f32 %v4065_v20, %v7579_v25  ;;  %v4067_v28 = vpop.f32.mrb[81].mxu0 }
 0x422   :  { %v5577_v22 = vadd.f32 %v4067_v28, %v7583_v42  ;;  %v4069_v4 = vpop.f32.mrb[82].mxu0  ;;  %4471 = vmatprep.mubr.bf16.mxu1 %v4255_v13 }
 0x423   :  { %v5578_v21 = vadd.f32 %v4069_v4, %v7579_v25  ;;  %v4071_v48 = vpop.f32.mrb[83].mxu0  ;;  %4472 = vmatmul.mubr.bf16.gmra.mrb[108].mxu1 %v4254_v41  ;;  %v4200_v17 = vmax.f32 %v5576_v54, 0.0 }
 0x424   :  { %v5579_v61 = vadd.f32 %v4071_v48, %v7583_v42  ;;  %v4201_v59 = vmax.f32 %v5577_v22, 0.0 }
 0x425   :  { %v4202_v50 = vmax.f32 %v5578_v21, 0.0 }
 0x426   :  { %v4203_v36 = vmax.f32 %v5579_v61, 0.0 }
 0x427   :  { %v4256_v33 = vpack.c.bf16 %v4202_v50, %v4200_v17 }
 0x428   :  { %v4257_v38 = vpack.c.bf16 %v4203_v36, %v4201_v59  ;;  %v4075_v23 = vpop.f32.mrb[84].mxu0 }
 0x429   :  { %v5580_v7 = vadd.f32 %v4075_v23, %v7579_v25  ;;  %v4077_v51 = vpop.f32.mrb[85].mxu0 }
 0x42a   :  { %v5581_v27 = vadd.f32 %v4077_v51, %v7583_v42  ;;  %v4079_v5 = vpop.f32.mrb[86].mxu0  ;;  %4479 = vmatprep.mubr.bf16.mxu1 %v4257_v38 }
 0x42b   :  { %v5582_v46 = vadd.f32 %v4079_v5, %v7579_v25  ;;  %v4081_v14 = vpop.f32.mrb[87].mxu0  ;;  %4480 = vmatmul.mubr.bf16.gmra.mrb[112].mxu1 %v4256_v33  ;;  %v4204_v6 = vmax.f32 %v5580_v7, 0.0 }
 0x42c   :  { %v5583_v35 = vadd.f32 %v4081_v14, %v7583_v42  ;;  %v4205_v32 = vmax.f32 %v5581_v27, 0.0 }
 0x42d   :  { %v4206_v0 = vmax.f32 %v5582_v46, 0.0 }
 0x42e   :  { %v4207_v63 = vmax.f32 %v5583_v35, 0.0 }
 0x42f   :  { %v4258_v11 = vpack.c.bf16 %v4206_v0, %v4204_v6 }
 0x430   :  { %v4259_v31 = vpack.c.bf16 %v4207_v63, %v4205_v32  ;;  %v4085_v34 = vpop.f32.mrb[88].mxu0 }
 0x431   :  { %v5584_v53 = vadd.f32 %v4085_v34, %v7579_v25  ;;  %v4087_v2 = vpop.f32.mrb[89].mxu0 }
 0x432   :  { %v5585_v8 = vadd.f32 %v4087_v2, %v7583_v42  ;;  %v4089_v15 = vpop.f32.mrb[90].mxu0  ;;  %4487 = vmatprep.mubr.bf16.mxu1 %v4259_v31 }
 0x433   :  { %v5586_v58 = vadd.f32 %v4089_v15, %v7579_v25  ;;  %v4091_v16 = vpop.f32.mrb[91].mxu0  ;;  %4488 = vmatmul.mubr.bf16.gmra.mrb[116].mxu1 %v4258_v11  ;;  %v4208_v60 = vmax.f32 %v5584_v53, 0.0 }
 0x434   :  { %v5587_v56 = vadd.f32 %v4091_v16, %v7583_v42  ;;  %v4209_v19 = vmax.f32 %v5585_v8, 0.0 }
 0x435   :  { %v4210_v40 = vmax.f32 %v5586_v58, 0.0 }
 0x436   :  { %v4211_v12 = vmax.f32 %v5587_v56, 0.0 }
 0x437   :  { %v4260_v26 = vpack.c.bf16 %v4210_v40, %v4208_v60 }
 0x438   :  { %v4261_v29 = vpack.c.bf16 %v4211_v12, %v4209_v19  ;;  %v4095_v45 = vpop.f32.mrb[92].mxu0 }
 0x439   :  { %v5588_v43 = vadd.f32 %v4095_v45, %v7579_v25  ;;  %v4097_v39 = vpop.f32.mrb[93].mxu0 }
 0x43a   :  { %v5589_v57 = vadd.f32 %v4097_v39, %v7583_v42  ;;  %v4099_v30 = vpop.f32.mrb[94].mxu0  ;;  %4495 = vmatprep.mubr.bf16.mxu1 %v4261_v29 }
 0x43b   :  { %v5590_v3 = vadd.f32 %v4099_v30, %v7579_v25  ;;  %v4101_v49 = vpop.f32.mrb[95].mxu0  ;;  %4496 = vmatmul.mubr.bf16.gmra.mrb[120].mxu1 %v4260_v26  ;;  %v4212_v1 = vmax.f32 %v5588_v43, 0.0 }
 0x43c   :  { %v5591_v47 = vadd.f32 %v4101_v49, %v7583_v42  ;;  %v4213_v18 = vmax.f32 %v5589_v57, 0.0 }
 0x43d   :  { %v4214_v52 = vmax.f32 %v5590_v3, 0.0 }
 0x43e   :  { %v4215_v55 = vmax.f32 %v5591_v47, 0.0 }
 0x43f   :  { %v4262_v44 = vpack.c.bf16 %v4214_v52, %v4212_v1 }
 0x440   :  { %v4263_v37 = vpack.c.bf16 %v4215_v55, %v4213_v18  ;;  %v4105_v62 = vpop.f32.mrb[96].mxu0 }
 0x441   :  { %v5592_v10 = vadd.f32 %v4105_v62, %v7579_v25  ;;  %v4107_v9 = vpop.f32.mrb[97].mxu0 }
 0x442   :  { %v5593_v24 = vadd.f32 %v4107_v9, %v7583_v42  ;;  %v4109_v41 = vpop.f32.mrb[98].mxu0  ;;  %4503 = vmatprep.mubr.bf16.mxu1 %v4263_v37 }
 0x443   :  { %v5594_v13 = vadd.f32 %v4109_v41, %v7579_v25  ;;  %v4111_v20 = vpop.f32.mrb[99].mxu0  ;;  %4504 = vmatmul.mubr.bf16.gmra.mrb[124].mxu1 %v4262_v44  ;;  %v4216_v28 = vmax.f32 %v5592_v10, 0.0 }
 0x444   :  { %v5595_v54 = vadd.f32 %v4111_v20, %v7583_v42  ;;  %v4217_v4 = vmax.f32 %v5593_v24, 0.0 }
 0x445   :  { %v4218_v22 = vmax.f32 %v5594_v13, 0.0 }
 0x446   :  { %v4219_v21 = vmax.f32 %v5595_v54, 0.0 }
 0x447   :  { %v4264_v48 = vpack.c.bf16 %v4218_v22, %v4216_v28 }
 0x448   :  { %v4265_v61 = vpack.c.bf16 %v4219_v21, %v4217_v4  ;;  %v4115_v17 = vpop.f32.mrb[100].mxu0 }
 0x449   :  { %v5596_v50 = vadd.f32 %v4115_v17, %v7579_v25  ;;  %v4117_v59 = vpop.f32.mrb[101].mxu0 }
 0x44a   :  { %v5597_v36 = vadd.f32 %v4117_v59, %v7583_v42  ;;  %v4119_v33 = vpop.f32.mrb[102].mxu0  ;;  %4511 = vmatprep.mubr.bf16.mxu1 %v4265_v61 }
 0x44b   :  { %v5598_v38 = vadd.f32 %v4119_v33, %v7579_v25  ;;  %v4121_v23 = vpop.f32.mrb[103].mxu0  ;;  %4512 = vmatmul.mubr.bf16.gmra.mrb[128].mxu1 %v4264_v48  ;;  %v4220_v51 = vmax.f32 %v5596_v50, 0.0 }
 0x44c   :  { %v5599_v7 = vadd.f32 %v4121_v23, %v7583_v42  ;;  %v4221_v5 = vmax.f32 %v5597_v36, 0.0 }
 0x44d   :  { %v4222_v27 = vmax.f32 %v5598_v38, 0.0 }
 0x44e   :  { %v4223_v46 = vmax.f32 %v5599_v7, 0.0 }
 0x44f   :  { %v4266_v14 = vpack.c.bf16 %v4222_v27, %v4220_v51 }
 0x450   :  { %v4267_v35 = vpack.c.bf16 %v4223_v46, %v4221_v5  ;;  %v4125_v6 = vpop.f32.mrb[104].mxu0 }
 0x451   :  { %v5600_v0 = vadd.f32 %v4125_v6, %v7579_v25  ;;  %v4127_v32 = vpop.f32.mrb[105].mxu0 }
 0x452   :  { %v5601_v63 = vadd.f32 %v4127_v32, %v7583_v42  ;;  %v4129_v11 = vpop.f32.mrb[106].mxu0  ;;  %4519 = vmatprep.mubr.bf16.mxu1 %v4267_v35 }
 0x453   :  { %v5602_v31 = vadd.f32 %v4129_v11, %v7579_v25  ;;  %v4131_v34 = vpop.f32.mrb[107].mxu0  ;;  %4520 = vmatmul.mubr.bf16.gmra.mrb[132].mxu1 %v4266_v14  ;;  %v4224_v2 = vmax.f32 %v5600_v0, 0.0 }
 0x454   :  { %v5603_v53 = vadd.f32 %v4131_v34, %v7583_v42  ;;  %v4225_v15 = vmax.f32 %v5601_v63, 0.0 }
 0x455   :  { %v4226_v8 = vmax.f32 %v5602_v31, 0.0 }
 0x456   :  { %v4227_v58 = vmax.f32 %v5603_v53, 0.0 }
 0x457   :  { %v4268_v16 = vpack.c.bf16 %v4226_v8, %v4224_v2 }
 0x458   :  { %v4269_v56 = vpack.c.bf16 %v4227_v58, %v4225_v15  ;;  %v4135_v60 = vpop.f32.mrb[108].mxu0 }
 0x459   :  { %v5604_v40 = vadd.f32 %v4135_v60, %v7579_v25  ;;  %v4137_v19 = vpop.f32.mrb[109].mxu0 }
 0x45a   :  { %v5605_v12 = vadd.f32 %v4137_v19, %v7583_v42  ;;  %v4139_v26 = vpop.f32.mrb[110].mxu0  ;;  %4527 = vmatprep.mubr.bf16.mxu1 %v4269_v56 }
 0x45b   :  { %v5606_v29 = vadd.f32 %v4139_v26, %v7579_v25  ;;  %v4141_v45 = vpop.f32.mrb[111].mxu0  ;;  %4528 = vmatmul.mubr.bf16.gmra.mrb[136].mxu1 %v4268_v16  ;;  %v4228_v39 = vmax.f32 %v5604_v40, 0.0 }
 0x45c   :  { %v5607_v43 = vadd.f32 %v4141_v45, %v7583_v42  ;;  %v4229_v30 = vmax.f32 %v5605_v12, 0.0 }
 0x45d   :  { %v4230_v57 = vmax.f32 %v5606_v29, 0.0 }
 0x45e   :  { %v4231_v3 = vmax.f32 %v5607_v43, 0.0 }
 0x45f   :  { %v4270_v49 = vpack.c.bf16 %v4230_v57, %v4228_v39 }
 0x460   :  { %v4271_v47 = vpack.c.bf16 %v4231_v3, %v4229_v30  ;;  %v4145_v1 = vpop.f32.mrb[112].mxu0  ;;  %v7652_v30 = vld [vmem:[%s7963_s6] ss:$0 sm:$0xff] }
 0x461   :  { %v5608_v52 = vadd.f32 %v4145_v1, %v7579_v25  ;;  %v4147_v18 = vpop.f32.mrb[113].mxu0 }
 0x462   :  { %v5609_v55 = vadd.f32 %v4147_v18, %v7583_v42  ;;  %v4149_v44 = vpop.f32.mrb[114].mxu0  ;;  %4535 = vmatprep.mubr.bf16.mxu1 %v4271_v47 }
 0x463   :  { %v5610_v37 = vadd.f32 %v4149_v44, %v7579_v25  ;;  %v4151_v62 = vpop.f32.mrb[115].mxu0  ;;  %4536 = vmatmul.mubr.bf16.gmra.mrb[140].mxu1 %v4270_v49  ;;  %v4232_v9 = vmax.f32 %v5608_v52, 0.0 }
 0x464   :  { %v5611_v10 = vadd.f32 %v4151_v62, %v7583_v42  ;;  %v4233_v41 = vmax.f32 %v5609_v55, 0.0 }
 0x465   :  { %v4234_v24 = vmax.f32 %v5610_v37, 0.0 }
 0x466   :  { %v4235_v13 = vmax.f32 %v5611_v10, 0.0 }
 0x467   :  { %v4272_v20 = vpack.c.bf16 %v4234_v24, %v4232_v9 }
 0x468   :  { %v4273_v54 = vpack.c.bf16 %v4235_v13, %v4233_v41  ;;  %v4155_v28 = vpop.f32.mrb[116].mxu0 }
 0x469   :  { %v5612_v22 = vadd.f32 %v4155_v28, %v7579_v25  ;;  %v4157_v4 = vpop.f32.mrb[117].mxu0 }
 0x46a   :  { %v5613_v21 = vadd.f32 %v4157_v4, %v7583_v42  ;;  %v4159_v48 = vpop.f32.mrb[118].mxu0  ;;  %4543 = vmatprep.mubr.bf16.mxu1 %v4273_v54 }
 0x46b   :  { %v5614_v61 = vadd.f32 %v4159_v48, %v7579_v25  ;;  %v4161_v17 = vpop.f32.mrb[119].mxu0  ;;  %4544 = vmatmul.mubr.bf16.gmra.mrb[144].mxu1 %v4272_v20  ;;  %v4236_v59 = vmax.f32 %v5612_v22, 0.0 }
 0x46c   :  { %v5615_v50 = vadd.f32 %v4161_v17, %v7583_v42  ;;  %v4237_v33 = vmax.f32 %v5613_v21, 0.0 }
 0x46d   :  { %v4238_v36 = vmax.f32 %v5614_v61, 0.0 }
 0x46e   :  { %v4239_v38 = vmax.f32 %v5615_v50, 0.0 }
 0x46f   :  { %v4274_v23 = vpack.c.bf16 %v4238_v36, %v4236_v59 }
 0x470   :  { %v4275_v7 = vpack.c.bf16 %v4239_v38, %v4237_v33  ;;  %v4165_v51 = vpop.f32.mrb[120].mxu0 }
 0x471   :  { %v5616_v27 = vadd.f32 %v4165_v51, %v7579_v25  ;;  %v4167_v5 = vpop.f32.mrb[121].mxu0 }
 0x472   :  { %v5617_v46 = vadd.f32 %v4167_v5, %v7583_v42  ;;  %v4169_v14 = vpop.f32.mrb[122].mxu0  ;;  %4551 = vmatprep.mubr.bf16.mxu1 %v4275_v7 }
 0x473   :  { %v5618_v35 = vadd.f32 %v4169_v14, %v7579_v25  ;;  %v4171_v6 = vpop.f32.mrb[123].mxu0  ;;  %4552 = vmatmul.mubr.bf16.gmra.mrb[148].mxu1 %v4274_v23  ;;  %v4240_v32 = vmax.f32 %v5616_v27, 0.0 }
 0x474   :  { %v5619_v0 = vadd.f32 %v4171_v6, %v7583_v42  ;;  %v4241_v11 = vmax.f32 %v5617_v46, 0.0 }
 0x475   :  { %v4242_v63 = vmax.f32 %v5618_v35, 0.0 }
 0x476   :  { %v4243_v31 = vmax.f32 %v5619_v0, 0.0 }
 0x477   :  { %v4276_v34 = vpack.c.bf16 %v4242_v63, %v4240_v32 }
 0x478   :  { %v4277_v53 = vpack.c.bf16 %v4243_v31, %v4241_v11  ;;  %v4175_v2 = vpop.f32.mrb[124].mxu0 }
 0x479   :  { %v5620_v8 = vadd.f32 %v4175_v2, %v7579_v25  ;;  %v4177_v15 = vpop.f32.mrb[125].mxu0 }
 0x47a   :  { %v5621_v58 = vadd.f32 %v4177_v15, %v7583_v42  ;;  %v4179_v16 = vpop.f32.mrb[126].mxu0  ;;  %4559 = vmatprep.mubr.bf16.mxu1 %v4277_v53 }
 0x47b   :  { %v5622_v56 = vadd.f32 %v4179_v16, %v7579_v25  ;;  %v4181_v60 = vpop.f32.mrb[127].mxu0  ;;  %4560 = vmatmul.mubr.bf16.gmra.mrb[152].mxu1 %v4276_v34  ;;  %v4244_v19 = vmax.f32 %v5620_v8, 0.0 }
 0x47c   :  { %v5623_v40 = vadd.f32 %v4181_v60, %v7583_v42  ;;  %v4245_v26 = vmax.f32 %v5621_v58, 0.0 }
 0x47d   :  { %v4246_v12 = vmax.f32 %v5622_v56, 0.0 }
 0x47e   :  { %v4247_v29 = vmax.f32 %v5623_v40, 0.0 }
 0x47f   :  { %v4278_v45 = vpack.c.bf16 %v4246_v12, %v4244_v19 }
 0x480   :  { %v4279_v43 = vpack.c.bf16 %v4247_v29, %v4245_v26 }
 0x482   :  { %4567 = vmatprep.mubr.bf16.mxu1 %v4279_v43 }
 0x483   :  { %4568 = vmatmul.mubr.bf16.gmra.mrb[156].mxu1 %v4278_v45 }
 0x4de   :  { %v5272_v39 = vpop.f32.mrb[96].mxu1 }
 0x4df   :  { %v5273_v57 = vpop.f32.mrb[97].mxu1 }
 0x4e0   :  { %v5274_v25 = vadd.f32 %v5273_v57, %v5272_v39  ;;  %v5275_v3 = vpop.f32.mrb[98].mxu1 }
 0x4e1   :  { %v5276_v49 = vpop.f32.mrb[99].mxu1 }
 0x4e2   :  { %v5277_v47 = vadd.f32 %v5276_v49, %v5275_v3  ;;  %v7655_v42 = vadd.f32 %v5274_v25, %v7652_v30 }
 0x4e4   :  { %4576 = vmax.xlane.f32.xlu0 %v7655_v42  ;;  %v7659_v52 = vadd.f32 %v5277_v47, %v7652_v30 }
 0x4e6   :  { %v5278_v1 = vpop.f32.mrb[100].mxu1 }
 0x4e7   :  { %v5279_v18 = vpop.f32.mrb[101].mxu1 }
 0x4e8   :  { %v5280_v55 = vadd.f32 %v5279_v18, %v5278_v1  ;;  %v5281_v44 = vpop.f32.mrb[102].mxu1  ;;  %4578 = vmax.xlane.f32.xlu0 %v7659_v52 }
 0x4e9   :  { %v5282_v37 = vpop.f32.mrb[103].mxu1 }
 0x4ea   :  { %v5283_v62 = vadd.f32 %v5282_v37, %v5281_v44  ;;  %v7663_v10 = vadd.f32 %v5280_v55, %v7652_v30 }
 0x4ec   :  { %4580 = vmax.xlane.f32.xlu1 %v7663_v10  ;;  %v7667_v24 = vadd.f32 %v5283_v62, %v7652_v30 }
 0x4ee   :  { %v5284_v9 = vpop.f32.mrb[104].mxu1 }
 0x4ef   :  { %v5285_v41 = vpop.f32.mrb[105].mxu1 }
 0x4f0   :  { %v5286_v13 = vadd.f32 %v5285_v41, %v5284_v9  ;;  %v5287_v20 = vpop.f32.mrb[106].mxu1  ;;  %4582 = vmax.xlane.f32.xlu1 %v7667_v24 }
 0x4f1   :  { %v5288_v54 = vpop.f32.mrb[107].mxu1 }
 0x4f2   :  { %v5289_v28 = vadd.f32 %v5288_v54, %v5287_v20  ;;  %v7671_v22 = vadd.f32 %v5286_v13, %v7652_v30 }
 0x4f4   :  { %4584 = vmax.xlane.f32.xlu0 %v7671_v22  ;;  %v7675_v4 = vadd.f32 %v5289_v28, %v7652_v30 }
 0x4f6   :  { %v5290_v21 = vpop.f32.mrb[108].mxu1  ;;  %4586 = vmax.xlane.f32.xlu1 %v7675_v4 }
 0x4f7   :  { %v5291_v48 = vpop.f32.mrb[109].mxu1 }
 0x4f8   :  { %v5292_v61 = vadd.f32 %v5291_v48, %v5290_v21  ;;  %v5293_v17 = vpop.f32.mrb[110].mxu1 }
 0x4f9   :  { %v5294_v50 = vpop.f32.mrb[111].mxu1 }
 0x4fa   :  { %v5295_v59 = vadd.f32 %v5294_v50, %v5293_v17  ;;  %v7679_v36 = vadd.f32 %v5292_v61, %v7652_v30 }
 0x4fc   :  { %4588 = vmax.xlane.f32.xlu0 %v7679_v36  ;;  %v7683_v33 = vadd.f32 %v5295_v59, %v7652_v30 }
 0x4fe   :  { %v5296_v38 = vpop.f32.mrb[112].mxu1  ;;  %4590 = vmax.xlane.f32.xlu1 %v7683_v33 }
 0x4ff   :  { %v5297_v23 = vpop.f32.mrb[113].mxu1 }
 0x500   :  { %v5298_v7 = vadd.f32 %v5297_v23, %v5296_v38  ;;  %v5299_v51 = vpop.f32.mrb[114].mxu1 }
 0x501   :  { %v5300_v27 = vpop.f32.mrb[115].mxu1 }
 0x502   :  { %v5301_v5 = vadd.f32 %v5300_v27, %v5299_v51  ;;  %v7687_v46 = vadd.f32 %v5298_v7, %v7652_v30 }
 0x504   :  { %4592 = vmax.xlane.f32.xlu0 %v7687_v46  ;;  %v7691_v14 = vadd.f32 %v5301_v5, %v7652_v30 }
 0x506   :  { %v5302_v35 = vpop.f32.mrb[116].mxu1  ;;  %4594 = vmax.xlane.f32.xlu1 %v7691_v14 }
 0x507   :  { %v5303_v6 = vpop.f32.mrb[117].mxu1 }
 0x508   :  { %v5304_v0 = vadd.f32 %v5303_v6, %v5302_v35  ;;  %v5305_v32 = vpop.f32.mrb[118].mxu1 }
 0x509   :  { %v5306_v63 = vpop.f32.mrb[119].mxu1 }
 0x50a   :  { %v5307_v11 = vadd.f32 %v5306_v63, %v5305_v32  ;;  %v7695_v31 = vadd.f32 %v5304_v0, %v7652_v30 }
 0x50c   :  { %4596 = vmax.xlane.f32.xlu0 %v7695_v31  ;;  %v7699_v34 = vadd.f32 %v5307_v11, %v7652_v30 }
 0x50e   :  { %v5308_v53 = vpop.f32.mrb[120].mxu1  ;;  %4598 = vmax.xlane.f32.xlu1 %v7699_v34 }
 0x50f   :  { %v5309_v2 = vpop.f32.mrb[121].mxu1 }
 0x510   :  { %v5310_v8 = vadd.f32 %v5309_v2, %v5308_v53  ;;  %v5311_v15 = vpop.f32.mrb[122].mxu1 }
 0x511   :  { %v5312_v58 = vpop.f32.mrb[123].mxu1 }
 0x512   :  { %v5313_v16 = vadd.f32 %v5312_v58, %v5311_v15  ;;  %v7703_v56 = vadd.f32 %v5310_v8, %v7652_v30 }
 0x514   :  { %4600 = vmax.xlane.f32.xlu0 %v7703_v56  ;;  %v7707_v60 = vadd.f32 %v5313_v16, %v7652_v30 }
 0x516   :  { %v5314_v40 = vpop.f32.mrb[124].mxu1  ;;  %4602 = vmax.xlane.f32.xlu1 %v7707_v60 }
 0x517   :  { %v5315_v19 = vpop.f32.mrb[125].mxu1 }
 0x518   :  { %v5316_v12 = vadd.f32 %v5315_v19, %v5314_v40  ;;  %v5317_v26 = vpop.f32.mrb[126].mxu1 }
 0x519   :  { %v5318_v29 = vpop.f32.mrb[127].mxu1 }
 0x51a   :  { %v5319_v45 = vadd.f32 %v5318_v29, %v5317_v26  ;;  %v7711_v43 = vadd.f32 %v5316_v12, %v7652_v30 }
 0x51c   :  { %4604 = vmax.xlane.f32.xlu0 %v7711_v43  ;;  %v7715_v39 = vadd.f32 %v5319_v45, %v7652_v30 }
 0x51e   :  { %v5320_v57 = vpop.f32.mrb[128].mxu1  ;;  %4606 = vmax.xlane.f32.xlu1 %v7715_v39 }
 0x51f   :  { %v5321_v25 = vpop.f32.mrb[129].mxu1 }
 0x520   :  { %v5322_v3 = vadd.f32 %v5321_v25, %v5320_v57  ;;  %v5323_v49 = vpop.f32.mrb[130].mxu1 }
 0x521   :  { %v5324_v47 = vpop.f32.mrb[131].mxu1 }
 0x522   :  { %v5325_v1 = vadd.f32 %v5324_v47, %v5323_v49  ;;  %v7719_v18 = vadd.f32 %v5322_v3, %v7652_v30 }
 0x524   :  { %4608 = vmax.xlane.f32.xlu0 %v7719_v18  ;;  %v7723_v55 = vadd.f32 %v5325_v1, %v7652_v30 }
 0x526   :  { %v5326_v44 = vpop.f32.mrb[132].mxu1  ;;  %4610 = vmax.xlane.f32.xlu1 %v7723_v55 }
 0x527   :  { %v5327_v37 = vpop.f32.mrb[133].mxu1 }
 0x528   :  { %v5328_v62 = vadd.f32 %v5327_v37, %v5326_v44  ;;  %v5329_v9 = vpop.f32.mrb[134].mxu1 }
 0x529   :  { %v5330_v41 = vpop.f32.mrb[135].mxu1 }
 0x52a   :  { %v5331_v13 = vadd.f32 %v5330_v41, %v5329_v9  ;;  %v7727_v20 = vadd.f32 %v5328_v62, %v7652_v30 }
 0x52c   :  { %4612 = vmax.xlane.f32.xlu0 %v7727_v20  ;;  %v7731_v54 = vadd.f32 %v5331_v13, %v7652_v30 }
 0x52e   :  { %v5332_v28 = vpop.f32.mrb[136].mxu1  ;;  %4614 = vmax.xlane.f32.xlu1 %v7731_v54 }
 0x52f   :  { %v5333_v21 = vpop.f32.mrb[137].mxu1 }
 0x530   :  { %v5334_v48 = vadd.f32 %v5333_v21, %v5332_v28  ;;  %v5335_v61 = vpop.f32.mrb[138].mxu1 }
 0x531   :  { %v5336_v17 = vpop.f32.mrb[139].mxu1 }
 0x532   :  { %v5337_v50 = vadd.f32 %v5336_v17, %v5335_v61  ;;  %v7735_v59 = vadd.f32 %v5334_v48, %v7652_v30 }
 0x534   :  { %4616 = vmax.xlane.f32.xlu0 %v7735_v59  ;;  %v7739_v38 = vadd.f32 %v5337_v50, %v7652_v30 }
 0x536   :  { %v5338_v23 = vpop.f32.mrb[140].mxu1  ;;  %4618 = vmax.xlane.f32.xlu1 %v7739_v38 }
 0x537   :  { %v5339_v7 = vpop.f32.mrb[141].mxu1 }
 0x538   :  { %v5340_v51 = vadd.f32 %v5339_v7, %v5338_v23  ;;  %v5341_v27 = vpop.f32.mrb[142].mxu1 }
 0x539   :  { %v5342_v5 = vpop.f32.mrb[143].mxu1 }
 0x53a   :  { %v5343_v35 = vadd.f32 %v5342_v5, %v5341_v27  ;;  %v7743_v6 = vadd.f32 %v5340_v51, %v7652_v30 }
 0x53c   :  { %4620 = vmax.xlane.f32.xlu0 %v7743_v6  ;;  %v7747_v0 = vadd.f32 %v5343_v35, %v7652_v30 }
 0x53e   :  { %v5344_v32 = vpop.f32.mrb[144].mxu1  ;;  %4622 = vmax.xlane.f32.xlu1 %v7747_v0 }
 0x53f   :  { %v5345_v63 = vpop.f32.mrb[145].mxu1 }
 0x540   :  { %v5346_v11 = vadd.f32 %v5345_v63, %v5344_v32  ;;  %v5347_v53 = vpop.f32.mrb[146].mxu1 }
 0x541   :  { %v5348_v2 = vpop.f32.mrb[147].mxu1 }
 0x542   :  { %v5349_v8 = vadd.f32 %v5348_v2, %v5347_v53  ;;  %v7751_v15 = vadd.f32 %v5346_v11, %v7652_v30 }
 0x544   :  { %4624 = vmax.xlane.f32.xlu0 %v7751_v15  ;;  %v7755_v58 = vadd.f32 %v5349_v8, %v7652_v30 }
 0x546   :  { %v5350_v16 = vpop.f32.mrb[148].mxu1  ;;  %4626 = vmax.xlane.f32.xlu1 %v7755_v58 }
 0x547   :  { %v5351_v40 = vpop.f32.mrb[149].mxu1 }
 0x548   :  { %v5352_v19 = vadd.f32 %v5351_v40, %v5350_v16  ;;  %v5353_v12 = vpop.f32.mrb[150].mxu1 }
 0x549   :  { %v5354_v26 = vpop.f32.mrb[151].mxu1 }
 0x54a   :  { %v5355_v29 = vadd.f32 %v5354_v26, %v5353_v12  ;;  %v7759_v45 = vadd.f32 %v5352_v19, %v7652_v30 }
 0x54c   :  { %4628 = vmax.xlane.f32.xlu0 %v7759_v45  ;;  %v7763_v57 = vadd.f32 %v5355_v29, %v7652_v30 }
 0x54e   :  { %v5356_v25 = vpop.f32.mrb[152].mxu1  ;;  %4630 = vmax.xlane.f32.xlu1 %v7763_v57 }
 0x54f   :  { %v5357_v3 = vpop.f32.mrb[153].mxu1 }
 0x550   :  { %v5358_v49 = vadd.f32 %v5357_v3, %v5356_v25  ;;  %v5359_v47 = vpop.f32.mrb[154].mxu1 }
 0x551   :  { %v5360_v1 = vpop.f32.mrb[155].mxu1 }
 0x552   :  { %v5361_v44 = vadd.f32 %v5360_v1, %v5359_v47  ;;  %v7767_v37 = vadd.f32 %v5358_v49, %v7652_v30 }
 0x554   :  { %4632 = vmax.xlane.f32.xlu0 %v7767_v37  ;;  %v7771_v62 = vadd.f32 %v5361_v44, %v7652_v30 }
 0x556   :  { %v5362_v9 = vpop.f32.mrb[156].mxu1  ;;  %4634 = vmax.xlane.f32.xlu1 %v7771_v62 }
 0x557   :  { %v5363_v41 = vpop.f32.mrb[157].mxu1 }
 0x558   :  { %v5364_v13 = vadd.f32 %v5363_v41, %v5362_v9  ;;  %v5365_v28 = vpop.f32.mrb[158].mxu1 }
 0x559   :  { %v5366_v21 = vpop.f32.mrb[159].mxu1 }
 0x55a   :  { %v5367_v48 = vadd.f32 %v5366_v21, %v5365_v28  ;;  %v7775_v61 = vadd.f32 %v5364_v13, %v7652_v30 }
 0x55c   :  { %4636 = vmax.xlane.f32.xlu0 %v7775_v61  ;;  %v7779_v17 = vadd.f32 %v5367_v48, %v7652_v30 }
 0x55e   :  { %4638 = vmax.xlane.f32.xlu1 %v7779_v17 }
 0x571   :  { %v4577_v50 = vpop.xlane.xlu0 %4576 }
 0x572   :  { %v7783_v23 = vsub.f32 %v7655_v42, %v4577_v50 }
 0x574   :  { %v4672_v7 = vmul.f32 1.442695, %v7783_v23 }
 0x575   :  { %v4579_v51 = vpop.xlane.xlu0 %4578 }
 0x576   :  { %6460 = vpow2.f32 %v4672_v7  ;;  %v7787_v27 = vsub.f32 %v7659_v52, %v4579_v51 }
 0x578   :  { %v4674_v5 = vmul.f32 1.442695, %v7787_v27 }
 0x579   :  { %v4581_v35 = vpop.xlane.xlu1 %4580 }
 0x57a   :  { %6462 = vpow2.f32 %v4674_v5  ;;  %v7791_v30 = vsub.f32 %v7663_v10, %v4581_v35 }
 0x57c   :  { %v4676_v32 = vmul.f32 1.442695, %v7791_v30 }
 0x57d   :  { %v4583_v63 = vpop.xlane.xlu1 %4582 }
 0x57e   :  { %6464 = vpow2.f32 %v4676_v32  ;;  %v7795_v42 = vsub.f32 %v7667_v24, %v4583_v63 }
 0x580   :  { %v6461_v11 = vpop.eup %6460  ;;  %v4678_v53 = vmul.f32 1.442695, %v7795_v42 }
 0x581   :  { %4736 = vadd.xlane.f32.xlu0 %v6461_v11  ;;  %v4585_v52 = vpop.xlane.xlu0 %4584 }
 0x582   :  { %6466 = vpow2.f32 %v4678_v53  ;;  %v7799_v2 = vsub.f32 %v7671_v22, %v4585_v52 }
 0x583   :  { %v4587_v8 = vpop.xlane.xlu1 %4586 }
 0x584   :  { %v6463_v16 = vpop.eup %6462  ;;  %v4680_v10 = vmul.f32 1.442695, %v7799_v2  ;;  %v7803_v40 = vsub.f32 %v7675_v4, %v4587_v8 }
 0x585   :  { %4738 = vadd.xlane.f32.xlu1 %v6463_v16 }
 0x586   :  { %6468 = vpow2.f32 %v4680_v10  ;;  %v4682_v24 = vmul.f32 1.442695, %v7803_v40 }
 0x588   :  { %v6465_v19 = vpop.eup %6464  ;;  %6470 = vpow2.f32 %v4682_v24 }
 0x589   :  { %4740 = vadd.xlane.f32.xlu0 %v6465_v19  ;;  %v4589_v12 = vpop.xlane.xlu0 %4588 }
 0x58a   :  { %v7807_v26 = vsub.f32 %v7679_v36, %v4589_v12 }
 0x58b   :  { %v4591_v22 = vpop.xlane.xlu1 %4590 }
 0x58c   :  { %v6467_v29 = vpop.eup %6466  ;;  %v4684_v25 = vmul.f32 1.442695, %v7807_v26  ;;  %v7811_v3 = vsub.f32 %v7683_v33, %v4591_v22 }
 0x58d   :  { %4742 = vadd.xlane.f32.xlu1 %v6467_v29 }
 0x58e   :  { %6472 = vpow2.f32 %v4684_v25  ;;  %v4686_v4 = vmul.f32 1.442695, %v7811_v3 }
 0x590   :  { %v6469_v49 = vpop.eup %6468  ;;  %6474 = vpow2.f32 %v4686_v4 }
 0x591   :  { %4744 = vadd.xlane.f32.xlu0 %v6469_v49  ;;  %v4593_v47 = vpop.xlane.xlu0 %4592 }
 0x592   :  { %v6471_v1 = vpop.eup %6470  ;;  %v7815_v44 = vsub.f32 %v7687_v46, %v4593_v47 }
 0x593   :  { %v4595_v36 = vpop.xlane.xlu1 %4594  ;;  %4746 = vadd.xlane.f32.xlu1 %v6471_v1 }
 0x594   :  { %v4688_v9 = vmul.f32 1.442695, %v7815_v44  ;;  %v7819_v41 = vsub.f32 %v7691_v14, %v4595_v36 }
 0x596   :  { %6476 = vpow2.f32 %v4688_v9  ;;  %v4690_v33 = vmul.f32 1.442695, %v7819_v41 }
 0x598   :  { %v6473_v13 = vpop.eup %6472  ;;  %6478 = vpow2.f32 %v4690_v33 }
 0x599   :  { %4748 = vadd.xlane.f32.xlu0 %v6473_v13  ;;  %v4597_v28 = vpop.xlane.xlu0 %4596 }
 0x59a   :  { %v6475_v21 = vpop.eup %6474  ;;  %v7823_v48 = vsub.f32 %v7695_v31, %v4597_v28 }
 0x59b   :  { %v4599_v46 = vpop.xlane.xlu1 %4598  ;;  %4750 = vadd.xlane.f32.xlu1 %v6475_v21 }
 0x59c   :  { %v4692_v50 = vmul.f32 1.442695, %v7823_v48  ;;  %v7827_v7 = vsub.f32 %v7699_v34, %v4599_v46 }
 0x59e   :  { %6480 = vpow2.f32 %v4692_v50  ;;  %v4694_v14 = vmul.f32 1.442695, %v7827_v7 }
 0x5a0   :  { %v6477_v51 = vpop.eup %6476  ;;  %6482 = vpow2.f32 %v4694_v14 }
 0x5a1   :  { %4752 = vadd.xlane.f32.xlu0 %v6477_v51  ;;  %v4601_v5 = vpop.xlane.xlu0 %4600 }
 0x5a2   :  { %v6479_v35 = vpop.eup %6478  ;;  %v7831_v32 = vsub.f32 %v7703_v56, %v4601_v5 }
 0x5a3   :  { %v4603_v31 = vpop.xlane.xlu1 %4602  ;;  %4754 = vadd.xlane.f32.xlu1 %v6479_v35 }
 0x5a4   :  { %v4696_v63 = vmul.f32 1.442695, %v7831_v32  ;;  %v7835_v11 = vsub.f32 %v7707_v60, %v4603_v31 }
 0x5a6   :  { %6484 = vpow2.f32 %v4696_v63  ;;  %v4698_v34 = vmul.f32 1.442695, %v7835_v11 }
 0x5a8   :  { %v6481_v53 = vpop.eup %6480  ;;  %6486 = vpow2.f32 %v4698_v34 }
 0x5a9   :  { %4756 = vadd.xlane.f32.xlu0 %v6481_v53  ;;  %v4605_v52 = vpop.xlane.xlu0 %4604 }
 0x5aa   :  { %v6483_v8 = vpop.eup %6482  ;;  %v7839_v16 = vsub.f32 %v7711_v43, %v4605_v52 }
 0x5ab   :  { %v4607_v56 = vpop.xlane.xlu1 %4606  ;;  %4758 = vadd.xlane.f32.xlu1 %v6483_v8 }
 0x5ac   :  { %v4700_v10 = vmul.f32 1.442695, %v7839_v16  ;;  %v7843_v24 = vsub.f32 %v7715_v39, %v4607_v56 }
 0x5ae   :  { %6488 = vpow2.f32 %v4700_v10  ;;  %v4702_v60 = vmul.f32 1.442695, %v7843_v24 }
 0x5b0   :  { %v6485_v19 = vpop.eup %6484  ;;  %6490 = vpow2.f32 %v4702_v60 }
 0x5b1   :  { %4760 = vadd.xlane.f32.xlu0 %v6485_v19  ;;  %v4609_v12 = vpop.xlane.xlu0 %4608 }
 0x5b2   :  { %v6487_v22 = vpop.eup %6486  ;;  %v7847_v29 = vsub.f32 %v7719_v18, %v4609_v12 }
 0x5b3   :  { %v4611_v43 = vpop.xlane.xlu1 %4610  ;;  %4762 = vadd.xlane.f32.xlu1 %v6487_v22 }
 0x5b4   :  { %v4704_v25 = vmul.f32 1.442695, %v7847_v29  ;;  %v7851_v4 = vsub.f32 %v7723_v55, %v4611_v43 }
 0x5b6   :  { %6492 = vpow2.f32 %v4704_v25  ;;  %v4706_v39 = vmul.f32 1.442695, %v7851_v4 }
 0x5b8   :  { %v6489_v49 = vpop.eup %6488  ;;  %6494 = vpow2.f32 %v4706_v39 }
 0x5b9   :  { %4764 = vadd.xlane.f32.xlu0 %v6489_v49  ;;  %v4613_v47 = vpop.xlane.xlu0 %4612 }
 0x5ba   :  { %v6491_v1 = vpop.eup %6490  ;;  %v7855_v36 = vsub.f32 %v7727_v20, %v4613_v47 }
 0x5bb   :  { %v4615_v18 = vpop.xlane.xlu1 %4614  ;;  %4766 = vadd.xlane.f32.xlu1 %v6491_v1 }
 0x5bc   :  { %v4708_v9 = vmul.f32 1.442695, %v7855_v36  ;;  %v7859_v33 = vsub.f32 %v7731_v54, %v4615_v18 }
 0x5be   :  { %6496 = vpow2.f32 %v4708_v9  ;;  %v4710_v55 = vmul.f32 1.442695, %v7859_v33 }
 0x5c0   :  { %v6493_v13 = vpop.eup %6492  ;;  %6498 = vpow2.f32 %v4710_v55 }
 0x5c1   :  { %4768 = vadd.xlane.f32.xlu0 %v6493_v13  ;;  %v4617_v28 = vpop.xlane.xlu0 %4616 }
 0x5c2   :  { %v6495_v21 = vpop.eup %6494  ;;  %v7863_v46 = vsub.f32 %v7735_v59, %v4617_v28 }
 0x5c3   :  { %v4619_v20 = vpop.xlane.xlu1 %4618  ;;  %4770 = vadd.xlane.f32.xlu1 %v6495_v21 }
 0x5c4   :  { %v4712_v50 = vmul.f32 1.442695, %v7863_v46  ;;  %v7867_v14 = vsub.f32 %v7739_v38, %v4619_v20 }
 0x5c6   :  { %6500 = vpow2.f32 %v4712_v50  ;;  %v4714_v54 = vmul.f32 1.442695, %v7867_v14 }
 0x5c8   :  { %v6497_v51 = vpop.eup %6496  ;;  %6502 = vpow2.f32 %v4714_v54 }
 0x5c9   :  { %4772 = vadd.xlane.f32.xlu0 %v6497_v51  ;;  %v4621_v5 = vpop.xlane.xlu0 %4620 }
 0x5ca   :  { %v6499_v35 = vpop.eup %6498  ;;  %v7871_v31 = vsub.f32 %v7743_v6, %v4621_v5 }
 0x5cb   :  { %v4623_v59 = vpop.xlane.xlu1 %4622  ;;  %4774 = vadd.xlane.f32.xlu1 %v6499_v35 }
 0x5cc   :  { %v4716_v63 = vmul.f32 1.442695, %v7871_v31  ;;  %v7875_v34 = vsub.f32 %v7747_v0, %v4623_v59 }
 0x5ce   :  { %6504 = vpow2.f32 %v4716_v63  ;;  %v4718_v38 = vmul.f32 1.442695, %v7875_v34 }
 0x5d0   :  { %v6501_v53 = vpop.eup %6500  ;;  %6506 = vpow2.f32 %v4718_v38 }
 0x5d1   :  { %4776 = vadd.xlane.f32.xlu0 %v6501_v53  ;;  %v4625_v52 = vpop.xlane.xlu0 %4624 }
 0x5d2   :  { %v6503_v8 = vpop.eup %6502  ;;  %v7879_v56 = vsub.f32 %v7751_v15, %v4625_v52 }
 0x5d3   :  { %v4627_v6 = vpop.xlane.xlu1 %4626  ;;  %4778 = vadd.xlane.f32.xlu1 %v6503_v8 }
 0x5d4   :  { %v4720_v10 = vmul.f32 1.442695, %v7879_v56  ;;  %v7883_v60 = vsub.f32 %v7755_v58, %v4627_v6 }
 0x5d6   :  { %6508 = vpow2.f32 %v4720_v10  ;;  %v4722_v0 = vmul.f32 1.442695, %v7883_v60 }
 0x5d8   :  { %v6505_v19 = vpop.eup %6504  ;;  %6510 = vpow2.f32 %v4722_v0 }
 0x5d9   :  { %4780 = vadd.xlane.f32.xlu0 %v6505_v19  ;;  %v4629_v12 = vpop.xlane.xlu0 %4628 }
 0x5da   :  { %v6507_v22 = vpop.eup %6506  ;;  %v7887_v43 = vsub.f32 %v7759_v45, %v4629_v12 }
 0x5db   :  { %v4631_v15 = vpop.xlane.xlu1 %4630  ;;  %4782 = vadd.xlane.f32.xlu1 %v6507_v22 }
 0x5dc   :  { %v4724_v25 = vmul.f32 1.442695, %v7887_v43  ;;  %v7891_v39 = vsub.f32 %v7763_v57, %v4631_v15 }
 0x5de   :  { %6512 = vpow2.f32 %v4724_v25  ;;  %v4726_v58 = vmul.f32 1.442695, %v7891_v39 }
 0x5e0   :  { %v6509_v49 = vpop.eup %6508  ;;  %6514 = vpow2.f32 %v4726_v58 }
 0x5e1   :  { %4784 = vadd.xlane.f32.xlu0 %v6509_v49  ;;  %v4633_v47 = vpop.xlane.xlu0 %4632 }
 0x5e2   :  { %v6511_v1 = vpop.eup %6510  ;;  %v7895_v18 = vsub.f32 %v7767_v37, %v4633_v47 }
 0x5e3   :  { %v4635_v45 = vpop.xlane.xlu1 %4634  ;;  %4786 = vadd.xlane.f32.xlu1 %v6511_v1 }
 0x5e4   :  { %v4728_v9 = vmul.f32 1.442695, %v7895_v18  ;;  %v7899_v55 = vsub.f32 %v7771_v62, %v4635_v45 }
 0x5e6   :  { %6516 = vpow2.f32 %v4728_v9  ;;  %v4730_v57 = vmul.f32 1.442695, %v7899_v55 }
 0x5e8   :  { %v6513_v13 = vpop.eup %6512  ;;  %6518 = vpow2.f32 %v4730_v57 }
 0x5e9   :  { %4788 = vadd.xlane.f32.xlu0 %v6513_v13  ;;  %v4637_v28 = vpop.xlane.xlu0 %4636 }
 0x5ea   :  { %v6515_v21 = vpop.eup %6514  ;;  %v7903_v20 = vsub.f32 %v7775_v61, %v4637_v28 }
 0x5eb   :  { %v4639_v37 = vpop.xlane.xlu1 %4638  ;;  %4790 = vadd.xlane.f32.xlu1 %v6515_v21 }
 0x5ec   :  { %v4732_v50 = vmul.f32 1.442695, %v7903_v20  ;;  %v7907_v54 = vsub.f32 %v7779_v17, %v4639_v37 }
 0x5ee   :  { %6520 = vpow2.f32 %v4732_v50  ;;  %v4734_v62 = vmul.f32 1.442695, %v7907_v54 }
 0x5f0   :  { %v6517_v51 = vpop.eup %6516  ;;  %6522 = vpow2.f32 %v4734_v62 }
 0x5f1   :  { %4792 = vadd.xlane.f32.xlu0 %v6517_v51 }
 0x5f2   :  { %v6519_v5 = vpop.eup %6518 }
 0x5f3   :  { %4794 = vadd.xlane.f32.xlu1 %v6519_v5 }
 0x5f8   :  { %v6521_v35 = vpop.eup %6520 }
 0x5f9   :  { %4796 = vadd.xlane.f32.xlu0 %v6521_v35 }
 0x5fa   :  { %v6523_v59 = vpop.eup %6522 }
 0x5fb   :  { %4798 = vadd.xlane.f32.xlu1 %v6523_v59 }
 0x60e   :  { %v4737_v61 = vpop.xlane.xlu0 %4736 }
 0x60f   :  { %6524 = vlog2.f32 %v4737_v61 }
 0x612   :  { %v4739_v63 = vpop.xlane.xlu1 %4738 }
 0x613   :  { %6526 = vlog2.f32 %v4739_v63 }
 0x616   :  { %v4741_v38 = vpop.xlane.xlu0 %4740 }
 0x617   :  { %6528 = vlog2.f32 %v4741_v38 }
 0x619   :  { %v6525_v17 = vpop.eup %6524 }
 0x61a   :  { %v4801_v53 = vmul.f32 0.6931472, %v6525_v17  ;;  %v4743_v52 = vpop.xlane.xlu1 %4742 }
 0x61b   :  { %6530 = vlog2.f32 %v4743_v52 }
 0x61c   :  { %v4864_v8 = vsub.f32 %v7783_v23, %v4801_v53 }
 0x61d   :  { %v6527_v6 = vpop.eup %6526 }
 0x61e   :  { %4896 = vst [vmem:[#allocation10] sm:$0xff] %v4864_v8  ;;  %v4803_v10 = vmul.f32 0.6931472, %v6527_v6  ;;  %v4745_v0 = vpop.xlane.xlu0 %4744 }
 0x61f   :  { %6532 = vlog2.f32 %v4745_v0 }
 0x620   :  { %v4865_v19 = vsub.f32 %v7787_v27, %v4803_v10  ;;  %v4747_v12 = vpop.xlane.xlu1 %4746 }
 0x621   :  { %v6529_v22 = vpop.eup %6528  ;;  %6534 = vlog2.f32 %v4747_v12 }
 0x622   :  { %4897 = vst [vmem:[#allocation10 + $0x8] sm:$0xff] %v4865_v19  ;;  %v4805_v15 = vmul.f32 0.6931472, %v6529_v22 }
 0x624   :  { %v4866_v25 = vsub.f32 %v7791_v30, %v4805_v15 }
 0x625   :  { %v6531_v58 = vpop.eup %6530 }
 0x626   :  { %4898 = vst [vmem:[#allocation10 + $0x10] sm:$0xff] %v4866_v25  ;;  %v4807_v49 = vmul.f32 0.6931472, %v6531_v58  ;;  %v4749_v47 = vpop.xlane.xlu0 %4748 }
 0x627   :  { %6536 = vlog2.f32 %v4749_v47 }
 0x628   :  { %v4867_v23 = vsub.f32 %v7795_v42, %v4807_v49  ;;  %v4751_v1 = vpop.xlane.xlu1 %4750 }
 0x629   :  { %v6533_v45 = vpop.eup %6532  ;;  %6538 = vlog2.f32 %v4751_v1 }
 0x62a   :  { %4899 = vst [vmem:[#allocation10 + $0x18] sm:$0xff] %v4867_v23  ;;  %v4809_v9 = vmul.f32 0.6931472, %v6533_v45 }
 0x62b   :  { %v6535_v27 = vpop.eup %6534 }
 0x62c   :  { %v4868_v57 = vsub.f32 %v7799_v2, %v4809_v9  ;;  %v4811_v13 = vmul.f32 0.6931472, %v6535_v27 }
 0x62e   :  { %4900 = vst [vmem:[#allocation10 + $0x20] sm:$0xff] %v4868_v57  ;;  %v4869_v28 = vsub.f32 %v7803_v40, %v4811_v13  ;;  %v4753_v30 = vpop.xlane.xlu0 %4752 }
 0x62f   :  { %6540 = vlog2.f32 %v4753_v30 }
 0x630   :  { %4901 = vst [vmem:[#allocation10 + $0x28] sm:$0xff] %v4869_v28  ;;  %v4755_v21 = vpop.xlane.xlu1 %4754 }
 0x631   :  { %v6537_v37 = vpop.eup %6536  ;;  %6542 = vlog2.f32 %v4755_v21 }
 0x632   :  { %v4813_v50 = vmul.f32 0.6931472, %v6537_v37 }
 0x633   :  { %v6539_v42 = vpop.eup %6538 }
 0x634   :  { %v4870_v62 = vsub.f32 %v7807_v26, %v4813_v50  ;;  %v4815_v51 = vmul.f32 0.6931472, %v6539_v42 }
 0x636   :  { %4902 = vst [vmem:[#allocation10 + $0x30] sm:$0xff] %v4870_v62  ;;  %v4871_v5 = vsub.f32 %v7811_v3, %v4815_v51  ;;  %v4757_v35 = vpop.xlane.xlu0 %4756 }
 0x637   :  { %6544 = vlog2.f32 %v4757_v35 }
 0x638   :  { %4903 = vst [vmem:[#allocation10 + $0x38] sm:$0xff] %v4871_v5  ;;  %v4759_v2 = vpop.xlane.xlu1 %4758 }
 0x639   :  { %v6541_v59 = vpop.eup %6540  ;;  %6546 = vlog2.f32 %v4759_v2 }
 0x63a   :  { %v4817_v40 = vmul.f32 0.6931472, %v6541_v59 }
 0x63b   :  { %v6543_v61 = vpop.eup %6542 }
 0x63c   :  { %v4872_v63 = vsub.f32 %v7815_v44, %v4817_v40  ;;  %v4819_v38 = vmul.f32 0.6931472, %v6543_v61 }
 0x63e   :  { %4904 = vst [vmem:[#allocation10 + $0x40] sm:$0xff] %v4872_v63  ;;  %v4873_v17 = vsub.f32 %v7819_v41, %v4819_v38  ;;  %v4761_v53 = vpop.xlane.xlu0 %4760 }
 0x63f   :  { %6548 = vlog2.f32 %v4761_v53 }
 0x640   :  { %4905 = vst [vmem:[#allocation10 + $0x48] sm:$0xff] %v4873_v17  ;;  %v4763_v26 = vpop.xlane.xlu1 %4762 }
 0x641   :  { %v6545_v52 = vpop.eup %6544  ;;  %6550 = vlog2.f32 %v4763_v26 }
 0x642   :  { %v4821_v3 = vmul.f32 0.6931472, %v6545_v52 }
 0x643   :  { %v6547_v8 = vpop.eup %6546 }
 0x644   :  { %v4874_v6 = vsub.f32 %v7823_v48, %v4821_v3  ;;  %v4823_v10 = vmul.f32 0.6931472, %v6547_v8 }
 0x646   :  { %4906 = vst [vmem:[#allocation10 + $0x50] sm:$0xff] %v4874_v6  ;;  %v4875_v0 = vsub.f32 %v7827_v7, %v4823_v10  ;;  %v4765_v19 = vpop.xlane.xlu0 %4764 }
 0x647   :  { %6552 = vlog2.f32 %v4765_v19 }
 0x648   :  { %4907 = vst [vmem:[#allocation10 + $0x58] sm:$0xff] %v4875_v0  ;;  %v4767_v44 = vpop.xlane.xlu1 %4766 }
 0x649   :  { %v6549_v12 = vpop.eup %6548  ;;  %6554 = vlog2.f32 %v4767_v44 }
 0x64a   :  { %v4825_v41 = vmul.f32 0.6931472, %v6549_v12 }
 0x64b   :  { %v6551_v22 = vpop.eup %6550 }
 0x64c   :  { %v4876_v15 = vsub.f32 %v7831_v32, %v4825_v41  ;;  %v4827_v25 = vmul.f32 0.6931472, %v6551_v22 }
 0x64e   :  { %4908 = vst [vmem:[#allocation10 + $0x60] sm:$0xff] %v4876_v15  ;;  %v4877_v58 = vsub.f32 %v7835_v11, %v4827_v25  ;;  %v4769_v49 = vpop.xlane.xlu0 %4768 }
 0x64f   :  { %6556 = vlog2.f32 %v4769_v49 }
 0x650   :  { %4909 = vst [vmem:[#allocation10 + $0x68] sm:$0xff] %v4877_v58  ;;  %v4771_v48 = vpop.xlane.xlu1 %4770 }
 0x651   :  { %v6553_v47 = vpop.eup %6552  ;;  %6558 = vlog2.f32 %v4771_v48 }
 0x652   :  { %v4829_v7 = vmul.f32 0.6931472, %v6553_v47 }
 0x653   :  { %v6555_v23 = vpop.eup %6554 }
 0x654   :  { %v4878_v1 = vsub.f32 %v7839_v16, %v4829_v7  ;;  %v4831_v45 = vmul.f32 0.6931472, %v6555_v23 }
 0x656   :  { %4910 = vst [vmem:[#allocation10 + $0x70] sm:$0xff] %v4878_v1  ;;  %v4879_v9 = vsub.f32 %v7843_v24, %v4831_v45  ;;  %v4773_v27 = vpop.xlane.xlu0 %4772 }
 0x657   :  { %6560 = vlog2.f32 %v4773_v27 }
 0x658   :  { %4911 = vst [vmem:[#allocation10 + $0x78] sm:$0xff] %v4879_v9  ;;  %v4775_v32 = vpop.xlane.xlu1 %4774 }
 0x659   :  { %v6557_v57 = vpop.eup %6556  ;;  %6562 = vlog2.f32 %v4775_v32 }
 0x65a   :  { %v4833_v11 = vmul.f32 0.6931472, %v6557_v57 }
 0x65b   :  { %v6559_v13 = vpop.eup %6558 }
 0x65c   :  { %v4880_v28 = vsub.f32 %v7847_v29, %v4833_v11  ;;  %v4835_v30 = vmul.f32 0.6931472, %v6559_v13 }
 0x65e   :  { %4912 = vst [vmem:[#allocation10 + $0x80] sm:$0xff] %v4880_v28  ;;  %v4881_v21 = vsub.f32 %v7851_v4, %v4835_v30  ;;  %v4777_v37 = vpop.xlane.xlu0 %4776 }
 0x65f   :  { %6564 = vlog2.f32 %v4777_v37 }
 0x660   :  { %4913 = vst [vmem:[#allocation10 + $0x88] sm:$0xff] %v4881_v21  ;;  %v4779_v16 = vpop.xlane.xlu1 %4778 }
 0x661   :  { %v6561_v50 = vpop.eup %6560  ;;  %6566 = vlog2.f32 %v4779_v16 }
 0x662   :  { %v4837_v24 = vmul.f32 0.6931472, %v6561_v50 }
 0x663   :  { %v6563_v42 = vpop.eup %6562 }
 0x664   :  { %v4882_v62 = vsub.f32 %v7855_v36, %v4837_v24  ;;  %v4839_v51 = vmul.f32 0.6931472, %v6563_v42 }
 0x666   :  { %4914 = vst [vmem:[#allocation10 + $0x90] sm:$0xff] %v4882_v62  ;;  %v4883_v5 = vsub.f32 %v7859_v33, %v4839_v51  ;;  %v4781_v35 = vpop.xlane.xlu0 %4780 }
 0x667   :  { %6568 = vlog2.f32 %v4781_v35 }
 0x668   :  { %4915 = vst [vmem:[#allocation10 + $0x98] sm:$0xff] %v4883_v5  ;;  %v4783_v29 = vpop.xlane.xlu1 %4782 }
 0x669   :  { %v6565_v2 = vpop.eup %6564  ;;  %6570 = vlog2.f32 %v4783_v29 }
 0x66a   :  { %v4841_v4 = vmul.f32 0.6931472, %v6565_v2 }
 0x66b   :  { %v6567_v59 = vpop.eup %6566 }
 0x66c   :  { %v4884_v40 = vsub.f32 %v7863_v46, %v4841_v4  ;;  %v4843_v61 = vmul.f32 0.6931472, %v6567_v59 }
 0x66e   :  { %4916 = vst [vmem:[#allocation10 + $0xa0] sm:$0xff] %v4884_v40  ;;  %v4885_v63 = vsub.f32 %v7867_v14, %v4843_v61  ;;  %v4785_v38 = vpop.xlane.xlu0 %4784 }
 0x66f   :  { %6572 = vlog2.f32 %v4785_v38 }
 0x670   :  { %4917 = vst [vmem:[#allocation10 + $0xa8] sm:$0xff] %v4885_v63  ;;  %v4787_v36 = vpop.xlane.xlu1 %4786 }
 0x671   :  { %v6569_v17 = vpop.eup %6568  ;;  %6574 = vlog2.f32 %v4787_v36 }
 0x672   :  { %v4845_v33 = vmul.f32 0.6931472, %v6569_v17 }
 0x673   :  { %v6571_v53 = vpop.eup %6570 }
 0x674   :  { %v4886_v26 = vsub.f32 %v7871_v31, %v4845_v33  ;;  %v4847_v52 = vmul.f32 0.6931472, %v6571_v53 }
 0x676   :  { %4918 = vst [vmem:[#allocation10 + $0xb0] sm:$0xff] %v4886_v26  ;;  %v4887_v3 = vsub.f32 %v7875_v34, %v4847_v52  ;;  %v4789_v8 = vpop.xlane.xlu0 %4788 }
 0x677   :  { %6576 = vlog2.f32 %v4789_v8 }
 0x678   :  { %4919 = vst [vmem:[#allocation10 + $0xb8] sm:$0xff] %v4887_v3  ;;  %v4791_v46 = vpop.xlane.xlu1 %4790 }
 0x679   :  { %v6573_v6 = vpop.eup %6572  ;;  %6578 = vlog2.f32 %v4791_v46 }
 0x67a   :  { %v4849_v14 = vmul.f32 0.6931472, %v6573_v6 }
 0x67b   :  { %v6575_v10 = vpop.eup %6574 }
 0x67c   :  { %v4888_v0 = vsub.f32 %v7879_v56, %v4849_v14  ;;  %v4851_v19 = vmul.f32 0.6931472, %v6575_v10 }
 0x67e   :  { %4920 = vst [vmem:[#allocation10 + $0xc0] sm:$0xff] %v4888_v0  ;;  %v4889_v44 = vsub.f32 %v7883_v60, %v4851_v19  ;;  %v4793_v12 = vpop.xlane.xlu0 %4792 }
 0x67f   :  { %6580 = vlog2.f32 %v4793_v12 }
 0x680   :  { %4921 = vst [vmem:[#allocation10 + $0xc8] sm:$0xff] %v4889_v44  ;;  %v4795_v31 = vpop.xlane.xlu1 %4794 }
 0x681   :  { %v6577_v41 = vpop.eup %6576  ;;  %6582 = vlog2.f32 %v4795_v31 }
 0x682   :  { %v4853_v34 = vmul.f32 0.6931472, %v6577_v41 }
 0x683   :  { %v6579_v22 = vpop.eup %6578 }
 0x684   :  { %v4890_v15 = vsub.f32 %v7887_v43, %v4853_v34  ;;  %v4855_v25 = vmul.f32 0.6931472, %v6579_v22 }
 0x686   :  { %4922 = vst [vmem:[#allocation10 + $0xd0] sm:$0xff] %v4890_v15  ;;  %v4891_v58 = vsub.f32 %v7891_v39, %v4855_v25  ;;  %v4797_v49 = vpop.xlane.xlu0 %4796 }
 0x687   :  { %6584 = vlog2.f32 %v4797_v49 }
 0x688   :  { %4923 = vst [vmem:[#allocation10 + $0xd8] sm:$0xff] %v4891_v58  ;;  %v4799_v56 = vpop.xlane.xlu1 %4798 }
 0x689   :  { %v6581_v48 = vpop.eup %6580  ;;  %6586 = vlog2.f32 %v4799_v56 }
 0x68a   :  { %v4857_v60 = vmul.f32 0.6931472, %v6581_v48 }
 0x68b   :  { %v6583_v47 = vpop.eup %6582 }
 0x68c   :  { %v4892_v7 = vsub.f32 %v7895_v18, %v4857_v60  ;;  %v4859_v23 = vmul.f32 0.6931472, %v6583_v47 }
 0x68e   :  { %4924 = vst [vmem:[#allocation10 + $0xe0] sm:$0xff] %v4892_v7  ;;  %v4893_v1 = vsub.f32 %v7899_v55, %v4859_v23 }
 0x690   :  { %4925 = vst [vmem:[#allocation10 + $0xe8] sm:$0xff] %v4893_v1 }
 0x691   :  { %v6585_v43 = vpop.eup %6584 }
 0x692   :  { %v4861_v45 = vmul.f32 0.6931472, %v6585_v43 }
 0x693   :  { %v6587_v9 = vpop.eup %6586 }
 0x694   :  { %v4894_v39 = vsub.f32 %v7903_v20, %v4861_v45  ;;  %v4863_v27 = vmul.f32 0.6931472, %v6587_v9 }
 0x696   :  { %4926 = vst [vmem:[#allocation10 + $0xf0] sm:$0xff] %v4894_v39  ;;  %v4895_v32 = vsub.f32 %v7907_v54, %v4863_v27 }
 0x698   :  { %4927 = vst [vmem:[#allocation10 + $0xf8] sm:$0xff] %v4895_v32 }
 0x699   :  { %4932 = vsyncadd [#allocation4], 3968  ;;  %s6719_s6 = smov [#allocation10]  }
 0x69a   :  { %s4933_s11 = sshll.u32 %s6719_s6, 4  ;;  %s4934_s11 = int_to_ptr.vmem [resolvable:$true] %s4933_s11 }
 0x69b   :  { %s6676_s12 = scalar_lea.vmem %s4934_s11, 128  ;;  %s6680_s13 = scalar_lea.vmem %s4934_s11, 4096 }
 0x69c   :  { %p6677_p4 = scmp.ne.s32.totalorder %s4934_s11, %s6676_s12  ;;  %p6681_p5 = scmp.lt.s32.totalorder %s4934_s11, %s4934_s11 }
 0x69d   :  { %p6682_p6 = scmp.lt.s32.totalorder %s6680_s13, %s6676_s12 }
 0x69f   :  { %p6683_p7 = por %p6682_p6, %p6681_p5 }
 0x6a1   :  { %p6684_p8 = pnand %p6683_p7, %p6677_p4 }
 0x6a3   :  { %6687 = shalt.err (!%p6684_p8)
}
 0x6a4   :  { %s6688_s17 = scalar_lea.hbm %s7964_s7, 128 }
 0x6a5   :  { %p6689_p9 = scmp.ne.s32.totalorder %s7964_s7, %s6688_s17  ;;  %p6692_p10 = scmp.lt.u32.totalorder %s6688_s17, %s7964_s7 }
 0x6a7   :  { %p6694_p11 = pnand %p6692_p10, %p6689_p9 }
 0x6a9   :  { %6697 = shalt.err (!%p6694_p11)
}
 0x6aa   :  { %4939 = dma.vmem_to_hbm [thread:$0]  %s4934_s11, 128, %s7964_s7, [#allocation4], %s6713_s0, %s6713_s0, %s6714_s16  }
 0x6ab   :  { %6704 = dma.done.wait [#allocation4], 4096  }
 0x6ac   :  { %6705 = vsyncadd [#allocation4], 4294963200 }
 0x6ad   :  { %4943 = vsyncpa [#allocation3], 1 }
 0x6ae   :  { %4944 = vsyncpa [#allocation6], 1 }
 0x6af   :  { %4945 = vsyncpa [#allocation9], 1 }
 0x6b0   :  { %4946 = vsyncpa [#allocation4], 1 }

</bundles_post_ra>
